<compile_context>
chip_gen: v7x
topology: tpu7x:2x2x1
jax: 0.10.0
libtpu: 0.0.40
codegen_flags: <defaults>
</compile_context>

<pallas_src>
import functools
import math

import jax
import jax.numpy as jnp
import numpy as np
from jax.experimental import pallas as pl
from jax.experimental.pallas import tpu as pltpu


# ----------------------------- small helpers -----------------------------

def _const_spec(arr):
    """Full-array block with a grid-invariant index map (weights resident in VMEM)."""
    if arr.ndim == 2:
        return pl.BlockSpec(arr.shape, lambda i: (0, 0))
    if arr.ndim == 3:
        return pl.BlockSpec(arr.shape, lambda i: (0, 0, 0))
    raise ValueError(f"unsupported weight rank {arr.ndim}")


def _choose_rows(nseq, seq_len, target_rows=256):
    """Row-block size: multiple of seq_len (whole sequences per block), divides the
    total row count (no ragged attention blocks), and sublane-friendly when tiling."""
    m = nseq * seq_len
    if m <= target_rows:
        return m
    spb = max(1, min(nseq, target_rows // seq_len))
    while spb > 1 and (nseq % spb or (spb * seq_len) % 8):
        spb -= 1
    rows = spb * seq_len
    if nseq % spb or (rows % 8 and rows != m):
        return m                       # pathological seq_len: fall back to one block
    return rows


def _block_diag_bias(rows, seq_len):
    """Additive attention mask: 0 within a sequence, -1e30 across sequences."""
    sid = np.arange(rows) // seq_len
    same = sid[:, None] == sid[None, :]
    return jnp.asarray(np.where(same, 0.0, -1e30).astype(np.float32))


def _layernorm(x, g, b, eps):
    mu = jnp.mean(x, axis=-1, keepdims=True)
    var = jnp.mean(jnp.square(x - mu), axis=-1, keepdims=True)
    return (x - mu) * jax.lax.rsqrt(var + eps) * g + b


# ----------------------------- Pallas kernels -----------------------------

def _patch_embed_kernel(x_ref, w_ref, b_ref, pos_ref, o_ref):
    # Conv2d(kernel=(patch,1), stride=(patch,1)) lowered to a matmul + bias, fused with
    # the positional-encoding add (pos_ref is pre-tiled to the block's row pattern).
    y = jnp.dot(x_ref[...].astype(jnp.bfloat16), w_ref[...],
                preferred_element_type=jnp.float32)
    o_ref[...] = y + b_ref[...] + pos_ref[...]


def _transformer_layer_kernel(x_ref, mask_ref,
                              wq_ref, wk_ref, wv_ref, bq_ref, bk_ref, bv_ref,
                              wo_ref, bo_ref,
                              ff1_w_ref, ff1_b_ref, ff2_w_ref, ff2_b_ref,
                              ln1_g_ref, ln1_b_ref, ln2_g_ref, ln2_b_ref,
                              o_ref, *, num_heads, pre_scale, eps):
    """Post-norm nn.TransformerEncoderLayer (ReLU MLP, dropout=identity), fully fused.

    The block holds `rows = sequences_per_block * seq_len` token rows; attention is
    computed with 2-D matmuls on all rows at once and restricted to within-sequence
    pairs by the additive block-diagonal mask."""
    rows, d = x_ref.shape
    dh = d // num_heads
    scale = 1.0 / math.sqrt(dh)

    x = x_ref[...]
    if pre_scale != 1.0:                       # TransformerLayers: src * sqrt(d_model)
        x = x * pre_scale
    x_bf = x.astype(jnp.bfloat16)
    mask = mask_ref[...]

    attn = jnp.zeros((rows, d), jnp.float32)
    for h in range(num_heads):                 # H is small & static — unrolled
        q = jnp.dot(x_bf, wq_ref[h], preferred_element_type=jnp.float32) + bq_ref[h]
        k = jnp.dot(x_bf, wk_ref[h], preferred_element_type=jnp.float32) + bk_ref[h]
        v = jnp.dot(x_bf, wv_ref[h], preferred_element_type=jnp.float32) + bv_ref[h]
        s = jax.lax.dot_general(q.astype(jnp.bfloat16), k.astype(jnp.bfloat16),
                                (((1,), (1,)), ((), ())),
                                preferred_element_type=jnp.float32)
        s = s * scale + mask
        s = s - jnp.max(s, axis=-1, keepdims=True)
        p = jnp.exp(s)
        p = p * pl.reciprocal(jnp.sum(p, axis=-1, keepdims=True), approx=True)
        o = jnp.dot(p.astype(jnp.bfloat16), v.astype(jnp.bfloat16),
                    preferred_element_type=jnp.float32)
        attn = attn + jnp.dot(o.astype(jnp.bfloat16), wo_ref[h],
                              preferred_element_type=jnp.float32)
    attn = attn + bo_ref[...]

    z = _layernorm(x + attn, ln1_g_ref[...], ln1_b_ref[...], eps)          # norm1(x+attn)

    ff = jnp.dot(z.astype(jnp.bfloat16), ff1_w_ref[...],
                 preferred_element_type=jnp.float32) + ff1_b_ref[...]
    ff = jnp.maximum(ff, 0.0)
    ff = jnp.dot(ff.astype(jnp.bfloat16), ff2_w_ref[...],
                 preferred_element_type=jnp.float32) + ff2_b_ref[...]

    o_ref[...] = _layernorm(z + ff, ln2_g_ref[...], ln2_b_ref[...], eps)   # norm2(z+ff)


def _ln_linear_kernel(x_ref, g_ref, b_ref, w_ref, wb_ref, o_ref, *, eps):
    xn = _layernorm(x_ref[...], g_ref[...], b_ref[...], eps)
    o_ref[...] = jnp.dot(xn.astype(jnp.bfloat16), w_ref[...],
                         preferred_element_type=jnp.float32) + wb_ref[...]


# ----------------------------- kernel wrappers -----------------------------

def pallas_patch_embed(pv, w, b, pos, num_token):
    """pv: [B*N*P, C*L] -> [B*N*P, D] (matmul + bias + positional encoding)."""
    m, cl = pv.shape
    d = w.shape[1]
    nodes = m // num_token
    rows = _choose_rows(nodes, num_token, target_rows=512)
    pos_tile = jnp.tile(pos, (rows // num_token, 1))           # [rows, D]
    grid = (pl.cdiv(m, rows),)
    return pl.pallas_call(
        _patch_embed_kernel,
        out_shape=jax.ShapeDtypeStruct((m, d), jnp.float32),
        grid=grid,
        in_specs=[pl.BlockSpec((rows, cl), lambda i: (i, 0)),
                  _const_spec(w), _const_spec(b), _const_spec(pos_tile)],
        out_specs=pl.BlockSpec((rows, d), lambda i: (i, 0)),
        compiler_params=pltpu.CompilerParams(dimension_semantics=("parallel",)),
    )(pv, w, b, pos_tile)


def pallas_transformer_layer(x, lp, num_heads, seq_len, pre_scale):
    """x: [num_sequences*seq_len, D] -> same shape. One fused kernel per layer."""
    m, d = x.shape
    nseq = m // seq_len
    rows = _choose_rows(nseq, seq_len, target_rows=256)
    bias_mask = _block_diag_bias(rows, seq_len)
    grid = (pl.cdiv(m, rows),)
    row_spec = pl.BlockSpec((rows, d), lambda i: (i, 0))

    names = ("wq", "wk", "wv", "bq", "bk", "bv", "wo", "bo",
             "ff1_w", "ff1_b", "ff2_w", "ff2_b",
             "ln1_g", "ln1_b", "ln2_g", "ln2_b")
    weights = [lp[n] for n in names]

    return pl.pallas_call(
        functools.partial(_transformer_layer_kernel, num_heads=num_heads,
                          pre_scale=pre_scale, eps=1e-5),
        out_shape=jax.ShapeDtypeStruct((m, d), jnp.float32),
        grid=grid,
        in_specs=[row_spec, _const_spec(bias_mask)] + [_const_spec(w) for w in weights],
        out_specs=pl.BlockSpec((rows, d), lambda i: (i, 0)),
        compiler_params=pltpu.CompilerParams(
            dimension_semantics=("parallel",),
            vmem_limit_bytes=32 * 1024 * 1024),   # safe on v5e/v6e (128 MiB) and v7x (64 MiB)
    )(x, bias_mask, *weights)


def pallas_ln_linear(x, g, b, w, wb, eps=1e-5):
    """Fused LayerNorm + Linear: [M, D] -> [M, N]."""
    m, d = x.shape
    n = w.shape[1]
    tm = min(m, 512)
    grid = (pl.cdiv(m, tm),)
    return pl.pallas_call(
        functools.partial(_ln_linear_kernel, eps=eps),
        out_shape=jax.ShapeDtypeStruct((m, n), jnp.float32),
        grid=grid,
        in_specs=[pl.BlockSpec((tm, d), lambda i: (i, 0)),
                  _const_spec(g), _const_spec(b), _const_spec(w), _const_spec(wb)],
        out_specs=pl.BlockSpec((tm, n), lambda i: (i, 0)),
        compiler_params=pltpu.CompilerParams(dimension_semantics=("parallel",)),
    )(x, g, b, w, wb)


# ----------------------------- model forward -----------------------------

def tsformer_forward(history_data, params, cfg, unmasked_idx, masked_idx):
    """Pre-train mode forward of TSFormer.
    history_data: [B, T, N, 1] with T = patch_size * num_token.
    Returns (reconstruction_masked_tokens, label_masked_tokens): each [B, Pm*patch_size, N]."""
    B, T, N, _ = history_data.shape
    L = cfg["patch_size"]
    P = cfg["num_token"]
    D = cfg["embed_dim"]
    H = cfg["num_heads"]
    C = cfg["in_channel"]
    S = B * N
    sqrt_d = math.sqrt(D)

    # ---- encoding: patchify + embed + positional encoding ----
    x = jnp.transpose(history_data, (0, 2, 3, 1))                  # [B, N, C, T]
    pv = x.reshape(B, N, C, P, L)
    pv = jnp.transpose(pv, (0, 1, 3, 2, 4)).reshape(S * P, C * L)  # per-patch vectors (c-major)
    pos_p = params["pos_emb"][:P]                                  # [P, D]
    patches = pallas_patch_embed(pv, params["pe_w"], params["pe_b"], pos_p, P)
    patches = patches.reshape(S, P, D)

    unm = jnp.asarray(unmasked_idx, jnp.int32)
    msk = jnp.asarray(masked_idx, jnp.int32)
    Pu, Pm = len(unmasked_idx), len(masked_idx)

    h = jnp.take(patches, unm, axis=1).reshape(S * Pu, D)          # unmasked tokens
    for li, lp in enumerate(params["encoder"]):
        h = pallas_transformer_layer(h, lp, H, seq_len=Pu,
                                     pre_scale=(sqrt_d if li == 0 else 1.0))
    # encoder_norm + enc_2_dec_emb fused
    h_unm = pallas_ln_linear(h, params["enc_norm_g"], params["enc_norm_b"],
                             params["e2d_w"], params["e2d_b"]).reshape(S, Pu, D)

    # ---- decoding ----
    # TODO(synk): decoding_knn > 0 branch (batch_cosine_similarity / topk / one_hot KNN
    #             tokens) is not exercised (default decoding_knn = 0).
    h_msk = params["mask_token"].reshape(1, 1, D) + params["pos_emb"][msk][None]  # [1, Pm, D]
    h_msk = jnp.broadcast_to(h_msk, (S, Pm, D))
    h_full = jnp.concatenate([h_unm, h_msk], axis=1).reshape(S * P, D)

    for li, lp in enumerate(params["decoder"]):
        h_full = pallas_transformer_layer(h_full, lp, H, seq_len=P,
                                          pre_scale=(sqrt_d if li == 0 else 1.0))
    # decoder_norm + output_layer fused
    recon_full = pallas_ln_linear(h_full, params["dec_norm_g"], params["dec_norm_b"],
                                  params["out_w"], params["out_b"]).reshape(B, N, P, L)

    # ---- get_reconstructed_masked_tokens ----
    rec_masked = recon_full[:, :, Pu:, :].reshape(B, N, Pm * L)
    rec_masked = jnp.transpose(rec_masked, (0, 2, 1))              # [B, Pm*L, N]

    label_full = history_data.reshape(B, P, L, N)                  # [B, P, L, N]
    label_full = jnp.transpose(label_full, (0, 3, 1, 2))           # [B, N, P, L]
    label_masked = jnp.take(label_full, msk, axis=2).reshape(B, N, Pm * L)
    label_masked = jnp.transpose(label_masked, (0, 2, 1))          # [B, Pm*L, N]
    return rec_masked, label_masked


# ----------------------------- parameter init -----------------------------

def init_params(key, cfg):
    D = cfg["embed_dim"]
    L = cfg["patch_size"]
    C = cfg["in_channel"]
    F = D * cfg["mlp_ratio"]
    H = cfg["num_heads"]
    Dh = D // H
    kit = iter(jax.random.split(key, 128))
    WDT = jnp.bfloat16                               # MXU-operand (weight) storage dtype

    def nrm(shape, std=0.02):
        return std * jax.random.normal(next(kit), shape, dtype=jnp.float32)

    def layer_params():
        in_w = nrm((D, 3 * D))                       # == torch in_proj_weight.T
        out_w = nrm((D, D))                          # == torch out_proj.weight.T

        def split_heads(w):                          # [D, D] -> [H, D, Dh]
            return jnp.transpose(w.reshape(D, H, Dh), (1, 0, 2))

        return {
            "wq": split_heads(in_w[:, 0 * D:1 * D]).astype(WDT),
            "wk": split_heads(in_w[:, 1 * D:2 * D]).astype(WDT),
            "wv": split_heads(in_w[:, 2 * D:3 * D]).astype(WDT),
            "bq": jnp.zeros((H, 1, Dh), jnp.float32),
            "bk": jnp.zeros((H, 1, Dh), jnp.float32),
            "bv": jnp.zeros((H, 1, Dh), jnp.float32),
            "wo": out_w.reshape(H, Dh, D).astype(WDT),
            "bo": jnp.zeros((1, D), jnp.float32),
            "ff1_w": nrm((D, F)).astype(WDT), "ff1_b": jnp.zeros((1, F), jnp.float32),
            "ff2_w": nrm((F, D)).astype(WDT), "ff2_b": jnp.zeros((1, D), jnp.float32),
            "ln1_g": jnp.ones((1, D), jnp.float32), "ln1_b": jnp.zeros((1, D), jnp.float32),
            "ln2_g": jnp.ones((1, D), jnp.float32), "ln2_b": jnp.zeros((1, D), jnp.float32),
        }

    return {
        "pe_w": nrm((C * L, D)).astype(WDT),         # Conv2d(D, C, (L,1)) flattened & transposed
        "pe_b": jnp.zeros((1, D), jnp.float32),
        "pos_emb": jax.random.uniform(next(kit), (1000, D), jnp.float32, -0.02, 0.02),
        "mask_token": nrm((D,)),                     # trunc_normal(std=0.02) approx
        "encoder": [layer_params() for _ in range(cfg["encoder_depth"])],
        "decoder": [layer_params() for _ in range(cfg["decoder_depth"])],
        "enc_norm_g": jnp.ones((1, D), jnp.float32), "enc_norm_b": jnp.zeros((1, D), jnp.float32),
        "dec_norm_g": jnp.ones((1, D), jnp.float32), "dec_norm_b": jnp.zeros((1, D), jnp.float32),
        "e2d_w": nrm((D, D)).astype(WDT), "e2d_b": jnp.zeros((1, D), jnp.float32),
        "out_w": nrm((D, L)).astype(WDT), "out_b": jnp.zeros((1, L), jnp.float32),
    }


# ----------------------------- main -----------------------------

if __name__ == "__main__":
    cfg = dict(patch_size=4, in_channel=1, embed_dim=32, num_heads=2, mlp_ratio=4,
               dropout=0.1, num_token=8, mask_ratio=0.5, encoder_depth=2,
               decoder_depth=1, decoding_knn=0)
    B, N = 2, 4
    T = cfg["patch_size"] * cfg["num_token"]

    key = jax.random.PRNGKey(0)
    k_in, k_par = jax.random.split(key)
    history_data = jax.random.normal(k_in, (B, T, N, 1), dtype=jnp.float32)
    params = init_params(k_par, cfg)

    # MaskGenerator: host-side deterministic shuffle (mask_last_token=False).
    # NOTE: recon uses tokens [Pu:] and labels use `masked_idx` order — both follow the
    # same masked-index order, so the pairing is consistent (sorting is just determinism).
    rng = np.random.RandomState(0)
    perm = rng.permutation(cfg["num_token"])
    mask_len = int(cfg["num_token"] * cfg["mask_ratio"])
    masked_idx = tuple(sorted(perm[:mask_len].tolist()))
    unmasked_idx = tuple(sorted(perm[mask_len:].tolist()))

    fwd = jax.jit(functools.partial(tsformer_forward, cfg=cfg,
                                    unmasked_idx=unmasked_idx, masked_idx=masked_idx))
    rec_masked, label_masked = fwd(history_data, params)
    jax.block_until_ready((rec_masked, label_masked))

    assert rec_masked.shape == (B, mask_len * cfg["patch_size"], N)
    assert label_masked.shape == (B, mask_len * cfg["patch_size"], N)
    assert rec_masked.dtype == jnp.float32 and label_masked.dtype == jnp.float32
    assert bool(jnp.all(jnp.isfinite(rec_masked)))
    print("KERNEL_OK")
</pallas_src>

<mosaic_0001>
module attributes {stable_mosaic.version = 11 : i64} {
  func.func @_transformer_layer_kernel(%arg0: i32, %arg1: memref<32x32xf32, #tpu.memory_space<vmem>>, %arg2: memref<32x32xf32, #tpu.memory_space<vmem>>, %arg3: memref<2x32x16xbf16, #tpu.memory_space<vmem>>, %arg4: memref<2x32x16xbf16, #tpu.memory_space<vmem>>, %arg5: memref<2x32x16xbf16, #tpu.memory_space<vmem>>, %arg6: memref<2x1x16xf32, #tpu.memory_space<vmem>>, %arg7: memref<2x1x16xf32, #tpu.memory_space<vmem>>, %arg8: memref<2x1x16xf32, #tpu.memory_space<vmem>>, %arg9: memref<2x16x32xbf16, #tpu.memory_space<vmem>>, %arg10: memref<1x32xf32, #tpu.memory_space<vmem>>, %arg11: memref<32x128xbf16, #tpu.memory_space<vmem>>, %arg12: memref<1x128xf32, #tpu.memory_space<vmem>>, %arg13: memref<128x32xbf16, #tpu.memory_space<vmem>>, %arg14: memref<1x32xf32, #tpu.memory_space<vmem>>, %arg15: memref<1x32xf32, #tpu.memory_space<vmem>>, %arg16: memref<1x32xf32, #tpu.memory_space<vmem>>, %arg17: memref<1x32xf32, #tpu.memory_space<vmem>>, %arg18: memref<1x32xf32, #tpu.memory_space<vmem>>, %arg19: memref<32x32xf32, #tpu.memory_space<vmem>>) attributes {dimension_semantics = [#tpu.dimension_semantics<parallel>], iteration_bounds = array<i64: 1>, scalar_prefetch = 0 : i64, scratch_operands = 0 : i64, tpu.core_type = #tpu.core_type<tc>, window_params = [{transform_indices = @transform_0, window_bounds = array<i64: 32, 32>}, {pipeline_mode = #tpu.pipeline_mode<synchronous>, transform_indices = @transform_1, window_bounds = array<i64: 32, 32>}, {pipeline_mode = #tpu.pipeline_mode<synchronous>, transform_indices = @transform_2, window_bounds = array<i64: 2, 32, 16>}, {pipeline_mode = #tpu.pipeline_mode<synchronous>, transform_indices = @transform_3, window_bounds = array<i64: 2, 32, 16>}, {pipeline_mode = #tpu.pipeline_mode<synchronous>, transform_indices = @transform_4, window_bounds = array<i64: 2, 32, 16>}, {pipeline_mode = #tpu.pipeline_mode<synchronous>, transform_indices = @transform_5, window_bounds = array<i64: 2, 1, 16>}, {pipeline_mode = #tpu.pipeline_mode<synchronous>, transform_indices = @transform_6, window_bounds = array<i64: 2, 1, 16>}, {pipeline_mode = #tpu.pipeline_mode<synchronous>, transform_indices = @transform_7, window_bounds = array<i64: 2, 1, 16>}, {pipeline_mode = #tpu.pipeline_mode<synchronous>, transform_indices = @transform_8, window_bounds = array<i64: 2, 16, 32>}, {pipeline_mode = #tpu.pipeline_mode<synchronous>, transform_indices = @transform_9, window_bounds = array<i64: 1, 32>}, {pipeline_mode = #tpu.pipeline_mode<synchronous>, transform_indices = @transform_10, window_bounds = array<i64: 32, 128>}, {pipeline_mode = #tpu.pipeline_mode<synchronous>, transform_indices = @transform_11, window_bounds = array<i64: 1, 128>}, {pipeline_mode = #tpu.pipeline_mode<synchronous>, transform_indices = @transform_12, window_bounds = array<i64: 128, 32>}, {pipeline_mode = #tpu.pipeline_mode<synchronous>, transform_indices = @transform_13, window_bounds = array<i64: 1, 32>}, {pipeline_mode = #tpu.pipeline_mode<synchronous>, transform_indices = @transform_14, window_bounds = array<i64: 1, 32>}, {pipeline_mode = #tpu.pipeline_mode<synchronous>, transform_indices = @transform_15, window_bounds = array<i64: 1, 32>}, {pipeline_mode = #tpu.pipeline_mode<synchronous>, transform_indices = @transform_16, window_bounds = array<i64: 1, 32>}, {pipeline_mode = #tpu.pipeline_mode<synchronous>, transform_indices = @transform_17, window_bounds = array<i64: 1, 32>}, {transform_indices = @transform_18, window_bounds = array<i64: 32, 32>}]} {
    %c0 = arith.constant 0 : index
    %c0_0 = arith.constant 0 : index
    %0 = vector.load %arg1[%c0, %c0_0] : memref<32x32xf32, #tpu.memory_space<vmem>>, vector<32x32xf32>
    %cst = arith.constant 5.65685415 : f32
    %1 = vector.broadcast %cst : f32 to vector<32x32xf32>
    %2 = arith.mulf %0, %1 : vector<32x32xf32>
    %3 = arith.truncf %2 : vector<32x32xf32> to vector<32x32xbf16>
    %c0_1 = arith.constant 0 : index
    %c0_2 = arith.constant 0 : index
    %4 = vector.load %arg2[%c0_1, %c0_2] : memref<32x32xf32, #tpu.memory_space<vmem>>, vector<32x32xf32>
    %cst_3 = arith.constant 0.000000e+00 : f32
    %5 = vector.broadcast %cst_3 : f32 to vector<32x32xf32>
    %c0_4 = arith.constant 0 : index
    %c0_5 = arith.constant 0 : index
    %c0_6 = arith.constant 0 : index
    %6 = vector.load %arg3[%c0_4, %c0_5, %c0_6] : memref<2x32x16xbf16, #tpu.memory_space<vmem>>, vector<1x32x16xbf16>
    %7 = vector.shape_cast %6 : vector<1x32x16xbf16> to vector<32x16xbf16>
    %cst_7 = arith.constant dense<0.000000e+00> : vector<32x16xf32>
    %8 = tpu.matmul %3, %7, %cst_7 {dimension_numbers = #tpu.dot_dimension_numbers<[1], [0], [0], [1], [0, 0, 1, 1], [], []>} : vector<32x32xbf16>, vector<32x16xbf16>, vector<32x16xf32> -> vector<32x16xf32>
    %c0_8 = arith.constant 0 : index
    %c0_9 = arith.constant 0 : index
    %c0_10 = arith.constant 0 : index
    %9 = vector.load %arg6[%c0_8, %c0_9, %c0_10] : memref<2x1x16xf32, #tpu.memory_space<vmem>>, vector<1x1x16xf32>
    %10 = vector.shape_cast %9 : vector<1x1x16xf32> to vector<1x16xf32>
    %11 = vector.broadcast %10 : vector<1x16xf32> to vector<32x16xf32>
    %12 = arith.addf %8, %11 : vector<32x16xf32>
    %c0_11 = arith.constant 0 : index
    %c0_12 = arith.constant 0 : index
    %c0_13 = arith.constant 0 : index
    %13 = vector.load %arg4[%c0_11, %c0_12, %c0_13] : memref<2x32x16xbf16, #tpu.memory_space<vmem>>, vector<1x32x16xbf16>
    %14 = vector.shape_cast %13 : vector<1x32x16xbf16> to vector<32x16xbf16>
    %cst_14 = arith.constant dense<0.000000e+00> : vector<32x16xf32>
    %15 = tpu.matmul %3, %14, %cst_14 {dimension_numbers = #tpu.dot_dimension_numbers<[1], [0], [0], [1], [0, 0, 1, 1], [], []>} : vector<32x32xbf16>, vector<32x16xbf16>, vector<32x16xf32> -> vector<32x16xf32>
    %c0_15 = arith.constant 0 : index
    %c0_16 = arith.constant 0 : index
    %c0_17 = arith.constant 0 : index
    %16 = vector.load %arg7[%c0_15, %c0_16, %c0_17] : memref<2x1x16xf32, #tpu.memory_space<vmem>>, vector<1x1x16xf32>
    %17 = vector.shape_cast %16 : vector<1x1x16xf32> to vector<1x16xf32>
    %18 = vector.broadcast %17 : vector<1x16xf32> to vector<32x16xf32>
    %19 = arith.addf %15, %18 : vector<32x16xf32>
    %c0_18 = arith.constant 0 : index
    %c0_19 = arith.constant 0 : index
    %c0_20 = arith.constant 0 : index
    %20 = vector.load %arg5[%c0_18, %c0_19, %c0_20] : memref<2x32x16xbf16, #tpu.memory_space<vmem>>, vector<1x32x16xbf16>
    %21 = vector.shape_cast %20 : vector<1x32x16xbf16> to vector<32x16xbf16>
    %cst_21 = arith.constant dense<0.000000e+00> : vector<32x16xf32>
    %22 = tpu.matmul %3, %21, %cst_21 {dimension_numbers = #tpu.dot_dimension_numbers<[1], [0], [0], [1], [0, 0, 1, 1], [], []>} : vector<32x32xbf16>, vector<32x16xbf16>, vector<32x16xf32> -> vector<32x16xf32>
    %c0_22 = arith.constant 0 : index
    %c0_23 = arith.constant 0 : index
    %c0_24 = arith.constant 0 : index
    %23 = vector.load %arg8[%c0_22, %c0_23, %c0_24] : memref<2x1x16xf32, #tpu.memory_space<vmem>>, vector<1x1x16xf32>
    %24 = vector.shape_cast %23 : vector<1x1x16xf32> to vector<1x16xf32>
    %25 = vector.broadcast %24 : vector<1x16xf32> to vector<32x16xf32>
    %26 = arith.addf %22, %25 : vector<32x16xf32>
    %27 = arith.truncf %12 : vector<32x16xf32> to vector<32x16xbf16>
    %28 = arith.truncf %19 : vector<32x16xf32> to vector<32x16xbf16>
    %cst_25 = arith.constant dense<0.000000e+00> : vector<32x32xf32>
    %29 = tpu.matmul %27, %28, %cst_25 {dimension_numbers = #tpu.dot_dimension_numbers<[1], [1], [0], [0], [0, 0, 1, 0], [], []>} : vector<32x16xbf16>, vector<32x16xbf16>, vector<32x32xf32> -> vector<32x32xf32>
    %cst_26 = arith.constant 2.500000e-01 : f32
    %30 = vector.broadcast %cst_26 : f32 to vector<32x32xf32>
    %31 = arith.mulf %29, %30 : vector<32x32xf32>
    %32 = arith.addf %31, %4 : vector<32x32xf32>
    %cst_27 = arith.constant dense<0xFF800000> : vector<32xf32>
    %33 = vector.multi_reduction <maximumf>, %32, %cst_27 [1] : vector<32x32xf32> to vector<32xf32>
    %34 = vector.shape_cast %33 : vector<32xf32> to vector<32x1xf32>
    %35 = vector.broadcast %34 : vector<32x1xf32> to vector<32x32xf32>
    %36 = arith.subf %32, %35 : vector<32x32xf32>
    %37 = math.exp %36 : vector<32x32xf32>
    %cst_28 = arith.constant dense<0.000000e+00> : vector<32xf32>
    %38 = vector.multi_reduction <add>, %37, %cst_28 [1] : vector<32x32xf32> to vector<32xf32>
    %39 = vector.shape_cast %38 : vector<32xf32> to vector<32x1xf32>
    %40 = tpu.reciprocal %39 {approx = true} : vector<32x1xf32> -> vector<32x1xf32>
    %41 = vector.broadcast %40 : vector<32x1xf32> to vector<32x32xf32>
    %42 = arith.mulf %37, %41 : vector<32x32xf32>
    %43 = arith.truncf %42 : vector<32x32xf32> to vector<32x32xbf16>
    %44 = arith.truncf %26 : vector<32x16xf32> to vector<32x16xbf16>
    %cst_29 = arith.constant dense<0.000000e+00> : vector<32x16xf32>
    %45 = tpu.matmul %43, %44, %cst_29 {dimension_numbers = #tpu.dot_dimension_numbers<[1], [0], [0], [1], [0, 0, 1, 1], [], []>} : vector<32x32xbf16>, vector<32x16xbf16>, vector<32x16xf32> -> vector<32x16xf32>
    %46 = arith.truncf %45 : vector<32x16xf32> to vector<32x16xbf16>
    %c0_30 = arith.constant 0 : index
    %c0_31 = arith.constant 0 : index
    %c0_32 = arith.constant 0 : index
    %47 = vector.load %arg9[%c0_30, %c0_31, %c0_32] : memref<2x16x32xbf16, #tpu.memory_space<vmem>>, vector<1x16x32xbf16>
    %48 = vector.shape_cast %47 : vector<1x16x32xbf16> to vector<16x32xbf16>
    %cst_33 = arith.constant dense<0.000000e+00> : vector<32x32xf32>
    %49 = tpu.matmul %46, %48, %cst_33 {dimension_numbers = #tpu.dot_dimension_numbers<[1], [0], [0], [1], [0, 0, 1, 1], [], []>} : vector<32x16xbf16>, vector<16x32xbf16>, vector<32x32xf32> -> vector<32x32xf32>
    %50 = arith.addf %5, %49 : vector<32x32xf32>
    %c1 = arith.constant 1 : index
    %c0_34 = arith.constant 0 : index
    %c0_35 = arith.constant 0 : index
    %51 = vector.load %arg3[%c1, %c0_34, %c0_35] : memref<2x32x16xbf16, #tpu.memory_space<vmem>>, vector<1x32x16xbf16>
    %52 = vector.shape_cast %51 : vector<1x32x16xbf16> to vector<32x16xbf16>
    %cst_36 = arith.constant dense<0.000000e+00> : vector<32x16xf32>
    %53 = tpu.matmul %3, %52, %cst_36 {dimension_numbers = #tpu.dot_dimension_numbers<[1], [0], [0], [1], [0, 0, 1, 1], [], []>} : vector<32x32xbf16>, vector<32x16xbf16>, vector<32x16xf32> -> vector<32x16xf32>
    %c1_37 = arith.constant 1 : index
    %c0_38 = arith.constant 0 : index
    %c0_39 = arith.constant 0 : index
    %54 = vector.load %arg6[%c1_37, %c0_38, %c0_39] : memref<2x1x16xf32, #tpu.memory_space<vmem>>, vector<1x1x16xf32>
    %55 = vector.shape_cast %54 : vector<1x1x16xf32> to vector<1x16xf32>
    %56 = vector.broadcast %55 : vector<1x16xf32> to vector<32x16xf32>
    %57 = arith.addf %53, %56 : vector<32x16xf32>
    %c1_40 = arith.constant 1 : index
    %c0_41 = arith.constant 0 : index
    %c0_42 = arith.constant 0 : index
    %58 = vector.load %arg4[%c1_40, %c0_41, %c0_42] : memref<2x32x16xbf16, #tpu.memory_space<vmem>>, vector<1x32x16xbf16>
    %59 = vector.shape_cast %58 : vector<1x32x16xbf16> to vector<32x16xbf16>
    %cst_43 = arith.constant dense<0.000000e+00> : vector<32x16xf32>
    %60 = tpu.matmul %3, %59, %cst_43 {dimension_numbers = #tpu.dot_dimension_numbers<[1], [0], [0], [1], [0, 0, 1, 1], [], []>} : vector<32x32xbf16>, vector<32x16xbf16>, vector<32x16xf32> -> vector<32x16xf32>
    %c1_44 = arith.constant 1 : index
    %c0_45 = arith.constant 0 : index
    %c0_46 = arith.constant 0 : index
    %61 = vector.load %arg7[%c1_44, %c0_45, %c0_46] : memref<2x1x16xf32, #tpu.memory_space<vmem>>, vector<1x1x16xf32>
    %62 = vector.shape_cast %61 : vector<1x1x16xf32> to vector<1x16xf32>
    %63 = vector.broadcast %62 : vector<1x16xf32> to vector<32x16xf32>
    %64 = arith.addf %60, %63 : vector<32x16xf32>
    %c1_47 = arith.constant 1 : index
    %c0_48 = arith.constant 0 : index
    %c0_49 = arith.constant 0 : index
    %65 = vector.load %arg5[%c1_47, %c0_48, %c0_49] : memref<2x32x16xbf16, #tpu.memory_space<vmem>>, vector<1x32x16xbf16>
    %66 = vector.shape_cast %65 : vector<1x32x16xbf16> to vector<32x16xbf16>
    %cst_50 = arith.constant dense<0.000000e+00> : vector<32x16xf32>
    %67 = tpu.matmul %3, %66, %cst_50 {dimension_numbers = #tpu.dot_dimension_numbers<[1], [0], [0], [1], [0, 0, 1, 1], [], []>} : vector<32x32xbf16>, vector<32x16xbf16>, vector<32x16xf32> -> vector<32x16xf32>
    %c1_51 = arith.constant 1 : index
    %c0_52 = arith.constant 0 : index
    %c0_53 = arith.constant 0 : index
    %68 = vector.load %arg8[%c1_51, %c0_52, %c0_53] : memref<2x1x16xf32, #tpu.memory_space<vmem>>, vector<1x1x16xf32>
    %69 = vector.shape_cast %68 : vector<1x1x16xf32> to vector<1x16xf32>
    %70 = vector.broadcast %69 : vector<1x16xf32> to vector<32x16xf32>
    %71 = arith.addf %67, %70 : vector<32x16xf32>
    %72 = arith.truncf %57 : vector<32x16xf32> to vector<32x16xbf16>
    %73 = arith.truncf %64 : vector<32x16xf32> to vector<32x16xbf16>
    %cst_54 = arith.constant dense<0.000000e+00> : vector<32x32xf32>
    %74 = tpu.matmul %72, %73, %cst_54 {dimension_numbers = #tpu.dot_dimension_numbers<[1], [1], [0], [0], [0, 0, 1, 0], [], []>} : vector<32x16xbf16>, vector<32x16xbf16>, vector<32x32xf32> -> vector<32x32xf32>
    %cst_55 = arith.constant 2.500000e-01 : f32
    %75 = vector.broadcast %cst_55 : f32 to vector<32x32xf32>
    %76 = arith.mulf %74, %75 : vector<32x32xf32>
    %77 = arith.addf %76, %4 : vector<32x32xf32>
    %cst_56 = arith.constant dense<0xFF800000> : vector<32xf32>
    %78 = vector.multi_reduction <maximumf>, %77, %cst_56 [1] : vector<32x32xf32> to vector<32xf32>
    %79 = vector.shape_cast %78 : vector<32xf32> to vector<32x1xf32>
    %80 = vector.broadcast %79 : vector<32x1xf32> to vector<32x32xf32>
    %81 = arith.subf %77, %80 : vector<32x32xf32>
    %82 = math.exp %81 : vector<32x32xf32>
    %cst_57 = arith.constant dense<0.000000e+00> : vector<32xf32>
    %83 = vector.multi_reduction <add>, %82, %cst_57 [1] : vector<32x32xf32> to vector<32xf32>
    %84 = vector.shape_cast %83 : vector<32xf32> to vector<32x1xf32>
    %85 = tpu.reciprocal %84 {approx = true} : vector<32x1xf32> -> vector<32x1xf32>
    %86 = vector.broadcast %85 : vector<32x1xf32> to vector<32x32xf32>
    %87 = arith.mulf %82, %86 : vector<32x32xf32>
    %88 = arith.truncf %87 : vector<32x32xf32> to vector<32x32xbf16>
    %89 = arith.truncf %71 : vector<32x16xf32> to vector<32x16xbf16>
    %cst_58 = arith.constant dense<0.000000e+00> : vector<32x16xf32>
    %90 = tpu.matmul %88, %89, %cst_58 {dimension_numbers = #tpu.dot_dimension_numbers<[1], [0], [0], [1], [0, 0, 1, 1], [], []>} : vector<32x32xbf16>, vector<32x16xbf16>, vector<32x16xf32> -> vector<32x16xf32>
    %91 = arith.truncf %90 : vector<32x16xf32> to vector<32x16xbf16>
    %c1_59 = arith.constant 1 : index
    %c0_60 = arith.constant 0 : index
    %c0_61 = arith.constant 0 : index
    %92 = vector.load %arg9[%c1_59, %c0_60, %c0_61] : memref<2x16x32xbf16, #tpu.memory_space<vmem>>, vector<1x16x32xbf16>
    %93 = vector.shape_cast %92 : vector<1x16x32xbf16> to vector<16x32xbf16>
    %cst_62 = arith.constant dense<0.000000e+00> : vector<32x32xf32>
    %94 = tpu.matmul %91, %93, %cst_62 {dimension_numbers = #tpu.dot_dimension_numbers<[1], [0], [0], [1], [0, 0, 1, 1], [], []>} : vector<32x16xbf16>, vector<16x32xbf16>, vector<32x32xf32> -> vector<32x32xf32>
    %95 = arith.addf %50, %94 : vector<32x32xf32>
    %c0_63 = arith.constant 0 : index
    %c0_64 = arith.constant 0 : index
    %96 = vector.load %arg10[%c0_63, %c0_64] : memref<1x32xf32, #tpu.memory_space<vmem>>, vector<1x32xf32>
    %97 = vector.broadcast %96 : vector<1x32xf32> to vector<32x32xf32>
    %98 = arith.addf %95, %97 : vector<32x32xf32>
    %99 = arith.addf %2, %98 : vector<32x32xf32>
    %c0_65 = arith.constant 0 : index
    %c0_66 = arith.constant 0 : index
    %100 = vector.load %arg15[%c0_65, %c0_66] : memref<1x32xf32, #tpu.memory_space<vmem>>, vector<1x32xf32>
    %c0_67 = arith.constant 0 : index
    %c0_68 = arith.constant 0 : index
    %101 = vector.load %arg16[%c0_67, %c0_68] : memref<1x32xf32, #tpu.memory_space<vmem>>, vector<1x32xf32>
    %cst_69 = arith.constant dense<0.000000e+00> : vector<32xf32>
    %102 = vector.multi_reduction <add>, %99, %cst_69 [1] : vector<32x32xf32> to vector<32xf32>
    %103 = vector.shape_cast %102 : vector<32xf32> to vector<32x1xf32>
    %cst_70 = arith.constant 3.200000e+01 : f32
    %104 = vector.broadcast %cst_70 : f32 to vector<32x1xf32>
    %105 = arith.divf %103, %104 : vector<32x1xf32>
    %106 = vector.broadcast %105 : vector<32x1xf32> to vector<32x32xf32>
    %107 = arith.subf %99, %106 : vector<32x32xf32>
    %108 = arith.mulf %107, %107 : vector<32x32xf32>
    %cst_71 = arith.constant dense<0.000000e+00> : vector<32xf32>
    %109 = vector.multi_reduction <add>, %108, %cst_71 [1] : vector<32x32xf32> to vector<32xf32>
    %110 = vector.shape_cast %109 : vector<32xf32> to vector<32x1xf32>
    %cst_72 = arith.constant 3.200000e+01 : f32
    %111 = vector.broadcast %cst_72 : f32 to vector<32x1xf32>
    %112 = arith.divf %110, %111 : vector<32x1xf32>
    %113 = vector.broadcast %105 : vector<32x1xf32> to vector<32x32xf32>
    %114 = arith.subf %99, %113 : vector<32x32xf32>
    %cst_73 = arith.constant 9.99999974E-6 : f32
    %115 = vector.broadcast %cst_73 : f32 to vector<32x1xf32>
    %116 = arith.addf %112, %115 : vector<32x1xf32>
    %117 = math.rsqrt %116 : vector<32x1xf32>
    %118 = vector.broadcast %117 : vector<32x1xf32> to vector<32x32xf32>
    %119 = arith.mulf %114, %118 : vector<32x32xf32>
    %120 = vector.broadcast %100 : vector<1x32xf32> to vector<32x32xf32>
    %121 = arith.mulf %119, %120 : vector<32x32xf32>
    %122 = vector.broadcast %101 : vector<1x32xf32> to vector<32x32xf32>
    %123 = arith.addf %121, %122 : vector<32x32xf32>
    %124 = arith.truncf %123 : vector<32x32xf32> to vector<32x32xbf16>
    %c0_74 = arith.constant 0 : index
    %c0_75 = arith.constant 0 : index
    %125 = vector.load %arg11[%c0_74, %c0_75] : memref<32x128xbf16, #tpu.memory_space<vmem>>, vector<32x128xbf16>
    %cst_76 = arith.constant dense<0.000000e+00> : vector<32x128xf32>
    %126 = tpu.matmul %124, %125, %cst_76 {dimension_numbers = #tpu.dot_dimension_numbers<[1], [0], [0], [1], [0, 0, 1, 1], [], []>} : vector<32x32xbf16>, vector<32x128xbf16>, vector<32x128xf32> -> vector<32x128xf32>
    %c0_77 = arith.constant 0 : index
    %c0_78 = arith.constant 0 : index
    %127 = vector.load %arg12[%c0_77, %c0_78] : memref<1x128xf32, #tpu.memory_space<vmem>>, vector<1x128xf32>
    %128 = vector.broadcast %127 : vector<1x128xf32> to vector<32x128xf32>
    %129 = arith.addf %126, %128 : vector<32x128xf32>
    %cst_79 = arith.constant 0.000000e+00 : f32
    %130 = vector.broadcast %cst_79 : f32 to vector<32x128xf32>
    %131 = arith.maximumf %129, %130 : vector<32x128xf32>
    %132 = arith.truncf %131 : vector<32x128xf32> to vector<32x128xbf16>
    %c0_80 = arith.constant 0 : index
    %c0_81 = arith.constant 0 : index
    %133 = vector.load %arg13[%c0_80, %c0_81] : memref<128x32xbf16, #tpu.memory_space<vmem>>, vector<128x32xbf16>
    %cst_82 = arith.constant dense<0.000000e+00> : vector<32x32xf32>
    %134 = tpu.matmul %132, %133, %cst_82 {dimension_numbers = #tpu.dot_dimension_numbers<[1], [0], [0], [1], [0, 0, 1, 1], [], []>} : vector<32x128xbf16>, vector<128x32xbf16>, vector<32x32xf32> -> vector<32x32xf32>
    %c0_83 = arith.constant 0 : index
    %c0_84 = arith.constant 0 : index
    %135 = vector.load %arg14[%c0_83, %c0_84] : memref<1x32xf32, #tpu.memory_space<vmem>>, vector<1x32xf32>
    %136 = vector.broadcast %135 : vector<1x32xf32> to vector<32x32xf32>
    %137 = arith.addf %134, %136 : vector<32x32xf32>
    %138 = arith.addf %123, %137 : vector<32x32xf32>
    %c0_85 = arith.constant 0 : index
    %c0_86 = arith.constant 0 : index
    %139 = vector.load %arg17[%c0_85, %c0_86] : memref<1x32xf32, #tpu.memory_space<vmem>>, vector<1x32xf32>
    %c0_87 = arith.constant 0 : index
    %c0_88 = arith.constant 0 : index
    %140 = vector.load %arg18[%c0_87, %c0_88] : memref<1x32xf32, #tpu.memory_space<vmem>>, vector<1x32xf32>
    %cst_89 = arith.constant dense<0.000000e+00> : vector<32xf32>
    %141 = vector.multi_reduction <add>, %138, %cst_89 [1] : vector<32x32xf32> to vector<32xf32>
    %142 = vector.shape_cast %141 : vector<32xf32> to vector<32x1xf32>
    %cst_90 = arith.constant 3.200000e+01 : f32
    %143 = vector.broadcast %cst_90 : f32 to vector<32x1xf32>
    %144 = arith.divf %142, %143 : vector<32x1xf32>
    %145 = vector.broadcast %144 : vector<32x1xf32> to vector<32x32xf32>
    %146 = arith.subf %138, %145 : vector<32x32xf32>
    %147 = arith.mulf %146, %146 : vector<32x32xf32>
    %cst_91 = arith.constant dense<0.000000e+00> : vector<32xf32>
    %148 = vector.multi_reduction <add>, %147, %cst_91 [1] : vector<32x32xf32> to vector<32xf32>
    %149 = vector.shape_cast %148 : vector<32xf32> to vector<32x1xf32>
    %cst_92 = arith.constant 3.200000e+01 : f32
    %150 = vector.broadcast %cst_92 : f32 to vector<32x1xf32>
    %151 = arith.divf %149, %150 : vector<32x1xf32>
    %152 = vector.broadcast %144 : vector<32x1xf32> to vector<32x32xf32>
    %153 = arith.subf %138, %152 : vector<32x32xf32>
    %cst_93 = arith.constant 9.99999974E-6 : f32
    %154 = vector.broadcast %cst_93 : f32 to vector<32x1xf32>
    %155 = arith.addf %151, %154 : vector<32x1xf32>
    %156 = math.rsqrt %155 : vector<32x1xf32>
    %157 = vector.broadcast %156 : vector<32x1xf32> to vector<32x32xf32>
    %158 = arith.mulf %153, %157 : vector<32x32xf32>
    %159 = vector.broadcast %139 : vector<1x32xf32> to vector<32x32xf32>
    %160 = arith.mulf %158, %159 : vector<32x32xf32>
    %161 = vector.broadcast %140 : vector<1x32xf32> to vector<32x32xf32>
    %162 = arith.addf %160, %161 : vector<32x32xf32>
    %c0_94 = arith.constant 0 : index
    %c0_95 = arith.constant 0 : index
    %163 = vector.load %arg19[%c0_94, %c0_95] : memref<32x32xf32, #tpu.memory_space<vmem>>, vector<32x32xf32>
    tpu.vector_store %arg19[%c0_94, %c0_95], %162 {strides = array<i32>} : memref<32x32xf32, #tpu.memory_space<vmem>>, vector<32x32xf32>,
    return
  }
  func.func @transform_0(%arg0: i32) -> (i32, i32) {
    %c0_i32 = arith.constant 0 : i32
    %c0_i32_0 = arith.constant 0 : i32
    return %arg0, %c0_i32 : i32, i32
  }
  func.func @transform_1(%arg0: i32) -> (i32, i32) {
    %c0_i32 = arith.constant 0 : i32
    %c0_i32_0 = arith.constant 0 : i32
    %c0_i32_1 = arith.constant 0 : i32
    return %c0_i32, %c0_i32_0 : i32, i32
  }
  func.func @transform_2(%arg0: i32) -> (i32, i32, i32) {
    %c0_i32 = arith.constant 0 : i32
    %c0_i32_0 = arith.constant 0 : i32
    %c0_i32_1 = arith.constant 0 : i32
    %c0_i32_2 = arith.constant 0 : i32
    return %c0_i32, %c0_i32_0, %c0_i32_1 : i32, i32, i32
  }
  func.func @transform_3(%arg0: i32) -> (i32, i32, i32) {
    %c0_i32 = arith.constant 0 : i32
    %c0_i32_0 = arith.constant 0 : i32
    %c0_i32_1 = arith.constant 0 : i32
    %c0_i32_2 = arith.constant 0 : i32
    return %c0_i32, %c0_i32_0, %c0_i32_1 : i32, i32, i32
  }
  func.func @transform_4(%arg0: i32) -> (i32, i32, i32) {
    %c0_i32 = arith.constant 0 : i32
    %c0_i32_0 = arith.constant 0 : i32
    %c0_i32_1 = arith.constant 0 : i32
    %c0_i32_2 = arith.constant 0 : i32
    return %c0_i32, %c0_i32_0, %c0_i32_1 : i32, i32, i32
  }
  func.func @transform_5(%arg0: i32) -> (i32, i32, i32) {
    %c0_i32 = arith.constant 0 : i32
    %c0_i32_0 = arith.constant 0 : i32
    %c0_i32_1 = arith.constant 0 : i32
    %c0_i32_2 = arith.constant 0 : i32
    return %c0_i32, %c0_i32_0, %c0_i32_1 : i32, i32, i32
  }
  func.func @transform_6(%arg0: i32) -> (i32, i32, i32) {
    %c0_i32 = arith.constant 0 : i32
    %c0_i32_0 = arith.constant 0 : i32
    %c0_i32_1 = arith.constant 0 : i32
    %c0_i32_2 = arith.constant 0 : i32
    return %c0_i32, %c0_i32_0, %c0_i32_1 : i32, i32, i32
  }
  func.func @transform_7(%arg0: i32) -> (i32, i32, i32) {
    %c0_i32 = arith.constant 0 : i32
    %c0_i32_0 = arith.constant 0 : i32
    %c0_i32_1 = arith.constant 0 : i32
    %c0_i32_2 = arith.constant 0 : i32
    return %c0_i32, %c0_i32_0, %c0_i32_1 : i32, i32, i32
  }
  func.func @transform_8(%arg0: i32) -> (i32, i32, i32) {
    %c0_i32 = arith.constant 0 : i32
    %c0_i32_0 = arith.constant 0 : i32
    %c0_i32_1 = arith.constant 0 : i32
    %c0_i32_2 = arith.constant 0 : i32
    return %c0_i32, %c0_i32_0, %c0_i32_1 : i32, i32, i32
  }
  func.func @transform_9(%arg0: i32) -> (i32, i32) {
    %c0_i32 = arith.constant 0 : i32
    %c0_i32_0 = arith.constant 0 : i32
    %c0_i32_1 = arith.constant 0 : i32
    return %c0_i32, %c0_i32_0 : i32, i32
  }
  func.func @transform_10(%arg0: i32) -> (i32, i32) {
    %c0_i32 = arith.constant 0 : i32
    %c0_i32_0 = arith.constant 0 : i32
    %c0_i32_1 = arith.constant 0 : i32
    return %c0_i32, %c0_i32_0 : i32, i32
  }
  func.func @transform_11(%arg0: i32) -> (i32, i32) {
    %c0_i32 = arith.constant 0 : i32
    %c0_i32_0 = arith.constant 0 : i32
    %c0_i32_1 = arith.constant 0 : i32
    return %c0_i32, %c0_i32_0 : i32, i32
  }
  func.func @transform_12(%arg0: i32) -> (i32, i32) {
    %c0_i32 = arith.constant 0 : i32
    %c0_i32_0 = arith.constant 0 : i32
    %c0_i32_1 = arith.constant 0 : i32
    return %c0_i32, %c0_i32_0 : i32, i32
  }
  func.func @transform_13(%arg0: i32) -> (i32, i32) {
    %c0_i32 = arith.constant 0 : i32
    %c0_i32_0 = arith.constant 0 : i32
    %c0_i32_1 = arith.constant 0 : i32
    return %c0_i32, %c0_i32_0 : i32, i32
  }
  func.func @transform_14(%arg0: i32) -> (i32, i32) {
    %c0_i32 = arith.constant 0 : i32
    %c0_i32_0 = arith.constant 0 : i32
    %c0_i32_1 = arith.constant 0 : i32
    return %c0_i32, %c0_i32_0 : i32, i32
  }
  func.func @transform_15(%arg0: i32) -> (i32, i32) {
    %c0_i32 = arith.constant 0 : i32
    %c0_i32_0 = arith.constant 0 : i32
    %c0_i32_1 = arith.constant 0 : i32
    return %c0_i32, %c0_i32_0 : i32, i32
  }
  func.func @transform_16(%arg0: i32) -> (i32, i32) {
    %c0_i32 = arith.constant 0 : i32
    %c0_i32_0 = arith.constant 0 : i32
    %c0_i32_1 = arith.constant 0 : i32
    return %c0_i32, %c0_i32_0 : i32, i32
  }
  func.func @transform_17(%arg0: i32) -> (i32, i32) {
    %c0_i32 = arith.constant 0 : i32
    %c0_i32_0 = arith.constant 0 : i32
    %c0_i32_1 = arith.constant 0 : i32
    return %c0_i32, %c0_i32_0 : i32, i32
  }
  func.func @transform_18(%arg0: i32) -> (i32, i32) {
    %c0_i32 = arith.constant 0 : i32
    %c0_i32_0 = arith.constant 0 : i32
    return %arg0, %c0_i32 : i32, i32
  }
}

module attributes {stable_mosaic.version = 11 : i64} {
  func.func @_ln_linear_kernel(%arg0: i32, %arg1: memref<32x32xf32, #tpu.memory_space<vmem>>, %arg2: memref<1x32xf32, #tpu.memory_space<vmem>>, %arg3: memref<1x32xf32, #tpu.memory_space<vmem>>, %arg4: memref<32x32xbf16, #tpu.memory_space<vmem>>, %arg5: memref<1x32xf32, #tpu.memory_space<vmem>>, %arg6: memref<32x32xf32, #tpu.memory_space<vmem>>) attributes {dimension_semantics = [#tpu.dimension_semantics<parallel>], iteration_bounds = array<i64: 1>, scalar_prefetch = 0 : i64, scratch_operands = 0 : i64, tpu.core_type = #tpu.core_type<tc>, window_params = [{transform_indices = @transform_0, window_bounds = array<i64: 32, 32>}, {pipeline_mode = #tpu.pipeline_mode<synchronous>, transform_indices = @transform_1, window_bounds = array<i64: 1, 32>}, {pipeline_mode = #tpu.pipeline_mode<synchronous>, transform_indices = @transform_2, window_bounds = array<i64: 1, 32>}, {pipeline_mode = #tpu.pipeline_mode<synchronous>, transform_indices = @transform_3, window_bounds = array<i64: 32, 32>}, {pipeline_mode = #tpu.pipeline_mode<synchronous>, transform_indices = @transform_4, window_bounds = array<i64: 1, 32>}, {transform_indices = @transform_5, window_bounds = array<i64: 32, 32>}]} {
    %c0 = arith.constant 0 : index
    %c0_0 = arith.constant 0 : index
    %0 = vector.load %arg1[%c0, %c0_0] : memref<32x32xf32, #tpu.memory_space<vmem>>, vector<32x32xf32>
    %c0_1 = arith.constant 0 : index
    %c0_2 = arith.constant 0 : index
    %1 = vector.load %arg2[%c0_1, %c0_2] : memref<1x32xf32, #tpu.memory_space<vmem>>, vector<1x32xf32>
    %c0_3 = arith.constant 0 : index
    %c0_4 = arith.constant 0 : index
    %2 = vector.load %arg3[%c0_3, %c0_4] : memref<1x32xf32, #tpu.memory_space<vmem>>, vector<1x32xf32>
    %cst = arith.constant dense<0.000000e+00> : vector<32xf32>
    %3 = vector.multi_reduction <add>, %0, %cst [1] : vector<32x32xf32> to vector<32xf32>
    %4 = vector.shape_cast %3 : vector<32xf32> to vector<32x1xf32>
    %cst_5 = arith.constant 3.200000e+01 : f32
    %5 = vector.broadcast %cst_5 : f32 to vector<32x1xf32>
    %6 = arith.divf %4, %5 : vector<32x1xf32>
    %7 = vector.broadcast %6 : vector<32x1xf32> to vector<32x32xf32>
    %8 = arith.subf %0, %7 : vector<32x32xf32>
    %9 = arith.mulf %8, %8 : vector<32x32xf32>
    %cst_6 = arith.constant dense<0.000000e+00> : vector<32xf32>
    %10 = vector.multi_reduction <add>, %9, %cst_6 [1] : vector<32x32xf32> to vector<32xf32>
    %11 = vector.shape_cast %10 : vector<32xf32> to vector<32x1xf32>
    %cst_7 = arith.constant 3.200000e+01 : f32
    %12 = vector.broadcast %cst_7 : f32 to vector<32x1xf32>
    %13 = arith.divf %11, %12 : vector<32x1xf32>
    %14 = vector.broadcast %6 : vector<32x1xf32> to vector<32x32xf32>
    %15 = arith.subf %0, %14 : vector<32x32xf32>
    %cst_8 = arith.constant 9.99999974E-6 : f32
    %16 = vector.broadcast %cst_8 : f32 to vector<32x1xf32>
    %17 = arith.addf %13, %16 : vector<32x1xf32>
    %18 = math.rsqrt %17 : vector<32x1xf32>
    %19 = vector.broadcast %18 : vector<32x1xf32> to vector<32x32xf32>
    %20 = arith.mulf %15, %19 : vector<32x32xf32>
    %21 = vector.broadcast %1 : vector<1x32xf32> to vector<32x32xf32>
    %22 = arith.mulf %20, %21 : vector<32x32xf32>
    %23 = vector.broadcast %2 : vector<1x32xf32> to vector<32x32xf32>
    %24 = arith.addf %22, %23 : vector<32x32xf32>
    %25 = arith.truncf %24 : vector<32x32xf32> to vector<32x32xbf16>
    %c0_9 = arith.constant 0 : index
    %c0_10 = arith.constant 0 : index
    %26 = vector.load %arg4[%c0_9, %c0_10] : memref<32x32xbf16, #tpu.memory_space<vmem>>, vector<32x32xbf16>
    %cst_11 = arith.constant dense<0.000000e+00> : vector<32x32xf32>
    %27 = tpu.matmul %25, %26, %cst_11 {dimension_numbers = #tpu.dot_dimension_numbers<[1], [0], [0], [1], [0, 0, 1, 1], [], []>} : vector<32x32xbf16>, vector<32x32xbf16>, vector<32x32xf32> -> vector<32x32xf32>
    %c0_12 = arith.constant 0 : index
    %c0_13 = arith.constant 0 : index
    %28 = vector.load %arg5[%c0_12, %c0_13] : memref<1x32xf32, #tpu.memory_space<vmem>>, vector<1x32xf32>
    %29 = vector.broadcast %28 : vector<1x32xf32> to vector<32x32xf32>
    %30 = arith.addf %27, %29 : vector<32x32xf32>
    %c0_14 = arith.constant 0 : index
    %c0_15 = arith.constant 0 : index
    %31 = vector.load %arg6[%c0_14, %c0_15] : memref<32x32xf32, #tpu.memory_space<vmem>>, vector<32x32xf32>
    tpu.vector_store %arg6[%c0_14, %c0_15], %30 {strides = array<i32>} : memref<32x32xf32, #tpu.memory_space<vmem>>, vector<32x32xf32>,
    return
  }
  func.func @transform_0(%arg0: i32) -> (i32, i32) {
    %c0_i32 = arith.constant 0 : i32
    %c0_i32_0 = arith.constant 0 : i32
    return %arg0, %c0_i32 : i32, i32
  }
  func.func @transform_1(%arg0: i32) -> (i32, i32) {
    %c0_i32 = arith.constant 0 : i32
    %c0_i32_0 = arith.constant 0 : i32
    %c0_i32_1 = arith.constant 0 : i32
    return %c0_i32, %c0_i32_0 : i32, i32
  }
  func.func @transform_2(%arg0: i32) -> (i32, i32) {
    %c0_i32 = arith.constant 0 : i32
    %c0_i32_0 = arith.constant 0 : i32
    %c0_i32_1 = arith.constant 0 : i32
    return %c0_i32, %c0_i32_0 : i32, i32
  }
  func.func @transform_3(%arg0: i32) -> (i32, i32) {
    %c0_i32 = arith.constant 0 : i32
    %c0_i32_0 = arith.constant 0 : i32
    %c0_i32_1 = arith.constant 0 : i32
    return %c0_i32, %c0_i32_0 : i32, i32
  }
  func.func @transform_4(%arg0: i32) -> (i32, i32) {
    %c0_i32 = arith.constant 0 : i32
    %c0_i32_0 = arith.constant 0 : i32
    %c0_i32_1 = arith.constant 0 : i32
    return %c0_i32, %c0_i32_0 : i32, i32
  }
  func.func @transform_5(%arg0: i32) -> (i32, i32) {
    %c0_i32 = arith.constant 0 : i32
    %c0_i32_0 = arith.constant 0 : i32
    return %arg0, %c0_i32 : i32, i32
  }
}

module attributes {stable_mosaic.version = 11 : i64} {
  func.func @_patch_embed_kernel(%arg0: i32, %arg1: memref<64x4xf32, #tpu.memory_space<vmem>>, %arg2: memref<4x32xbf16, #tpu.memory_space<vmem>>, %arg3: memref<1x32xf32, #tpu.memory_space<vmem>>, %arg4: memref<64x32xf32, #tpu.memory_space<vmem>>, %arg5: memref<64x32xf32, #tpu.memory_space<vmem>>) attributes {dimension_semantics = [#tpu.dimension_semantics<parallel>], iteration_bounds = array<i64: 1>, scalar_prefetch = 0 : i64, scratch_operands = 0 : i64, tpu.core_type = #tpu.core_type<tc>, window_params = [{transform_indices = @transform_0, window_bounds = array<i64: 64, 4>}, {pipeline_mode = #tpu.pipeline_mode<synchronous>, transform_indices = @transform_1, window_bounds = array<i64: 4, 32>}, {pipeline_mode = #tpu.pipeline_mode<synchronous>, transform_indices = @transform_2, window_bounds = array<i64: 1, 32>}, {pipeline_mode = #tpu.pipeline_mode<synchronous>, transform_indices = @transform_3, window_bounds = array<i64: 64, 32>}, {transform_indices = @transform_4, window_bounds = array<i64: 64, 32>}]} {
    %c0 = arith.constant 0 : index
    %c0_0 = arith.constant 0 : index
    %0 = vector.load %arg1[%c0, %c0_0] : memref<64x4xf32, #tpu.memory_space<vmem>>, vector<64x4xf32>
    %1 = arith.truncf %0 : vector<64x4xf32> to vector<64x4xbf16>
    %c0_1 = arith.constant 0 : index
    %c0_2 = arith.constant 0 : index
    %2 = vector.load %arg2[%c0_1, %c0_2] : memref<4x32xbf16, #tpu.memory_space<vmem>>, vector<4x32xbf16>
    %cst = arith.constant dense<0.000000e+00> : vector<64x32xf32>
    %3 = tpu.matmul %1, %2, %cst {dimension_numbers = #tpu.dot_dimension_numbers<[1], [0], [0], [1], [0, 0, 1, 1], [], []>} : vector<64x4xbf16>, vector<4x32xbf16>, vector<64x32xf32> -> vector<64x32xf32>
    %c0_3 = arith.constant 0 : index
    %c0_4 = arith.constant 0 : index
    %4 = vector.load %arg3[%c0_3, %c0_4] : memref<1x32xf32, #tpu.memory_space<vmem>>, vector<1x32xf32>
    %5 = vector.broadcast %4 : vector<1x32xf32> to vector<64x32xf32>
    %6 = arith.addf %3, %5 : vector<64x32xf32>
    %c0_5 = arith.constant 0 : index
    %c0_6 = arith.constant 0 : index
    %7 = vector.load %arg4[%c0_5, %c0_6] : memref<64x32xf32, #tpu.memory_space<vmem>>, vector<64x32xf32>
    %8 = arith.addf %6, %7 : vector<64x32xf32>
    %c0_7 = arith.constant 0 : index
    %c0_8 = arith.constant 0 : index
    %9 = vector.load %arg5[%c0_7, %c0_8] : memref<64x32xf32, #tpu.memory_space<vmem>>, vector<64x32xf32>
    tpu.vector_store %arg5[%c0_7, %c0_8], %8 {strides = array<i32>} : memref<64x32xf32, #tpu.memory_space<vmem>>, vector<64x32xf32>,
    return
  }
  func.func @transform_0(%arg0: i32) -> (i32, i32) {
    %c0_i32 = arith.constant 0 : i32
    %c0_i32_0 = arith.constant 0 : i32
    return %arg0, %c0_i32 : i32, i32
  }
  func.func @transform_1(%arg0: i32) -> (i32, i32) {
    %c0_i32 = arith.constant 0 : i32
    %c0_i32_0 = arith.constant 0 : i32
    %c0_i32_1 = arith.constant 0 : i32
    return %c0_i32, %c0_i32_0 : i32, i32
  }
  func.func @transform_2(%arg0: i32) -> (i32, i32) {
    %c0_i32 = arith.constant 0 : i32
    %c0_i32_0 = arith.constant 0 : i32
    %c0_i32_1 = arith.constant 0 : i32
    return %c0_i32, %c0_i32_0 : i32, i32
  }
  func.func @transform_3(%arg0: i32) -> (i32, i32) {
    %c0_i32 = arith.constant 0 : i32
    %c0_i32_0 = arith.constant 0 : i32
    %c0_i32_1 = arith.constant 0 : i32
    return %c0_i32, %c0_i32_0 : i32, i32
  }
  func.func @transform_4(%arg0: i32) -> (i32, i32) {
    %c0_i32 = arith.constant 0 : i32
    %c0_i32_0 = arith.constant 0 : i32
    return %arg0, %c0_i32 : i32, i32
  }
}

module attributes {stable_mosaic.version = 11 : i64} {
  func.func @_transformer_layer_kernel(%arg0: i32, %arg1: memref<32x32xf32, #tpu.memory_space<vmem>>, %arg2: memref<32x32xf32, #tpu.memory_space<vmem>>, %arg3: memref<2x32x16xbf16, #tpu.memory_space<vmem>>, %arg4: memref<2x32x16xbf16, #tpu.memory_space<vmem>>, %arg5: memref<2x32x16xbf16, #tpu.memory_space<vmem>>, %arg6: memref<2x1x16xf32, #tpu.memory_space<vmem>>, %arg7: memref<2x1x16xf32, #tpu.memory_space<vmem>>, %arg8: memref<2x1x16xf32, #tpu.memory_space<vmem>>, %arg9: memref<2x16x32xbf16, #tpu.memory_space<vmem>>, %arg10: memref<1x32xf32, #tpu.memory_space<vmem>>, %arg11: memref<32x128xbf16, #tpu.memory_space<vmem>>, %arg12: memref<1x128xf32, #tpu.memory_space<vmem>>, %arg13: memref<128x32xbf16, #tpu.memory_space<vmem>>, %arg14: memref<1x32xf32, #tpu.memory_space<vmem>>, %arg15: memref<1x32xf32, #tpu.memory_space<vmem>>, %arg16: memref<1x32xf32, #tpu.memory_space<vmem>>, %arg17: memref<1x32xf32, #tpu.memory_space<vmem>>, %arg18: memref<1x32xf32, #tpu.memory_space<vmem>>, %arg19: memref<32x32xf32, #tpu.memory_space<vmem>>) attributes {dimension_semantics = [#tpu.dimension_semantics<parallel>], iteration_bounds = array<i64: 1>, scalar_prefetch = 0 : i64, scratch_operands = 0 : i64, tpu.core_type = #tpu.core_type<tc>, window_params = [{transform_indices = @transform_0, window_bounds = array<i64: 32, 32>}, {pipeline_mode = #tpu.pipeline_mode<synchronous>, transform_indices = @transform_1, window_bounds = array<i64: 32, 32>}, {pipeline_mode = #tpu.pipeline_mode<synchronous>, transform_indices = @transform_2, window_bounds = array<i64: 2, 32, 16>}, {pipeline_mode = #tpu.pipeline_mode<synchronous>, transform_indices = @transform_3, window_bounds = array<i64: 2, 32, 16>}, {pipeline_mode = #tpu.pipeline_mode<synchronous>, transform_indices = @transform_4, window_bounds = array<i64: 2, 32, 16>}, {pipeline_mode = #tpu.pipeline_mode<synchronous>, transform_indices = @transform_5, window_bounds = array<i64: 2, 1, 16>}, {pipeline_mode = #tpu.pipeline_mode<synchronous>, transform_indices = @transform_6, window_bounds = array<i64: 2, 1, 16>}, {pipeline_mode = #tpu.pipeline_mode<synchronous>, transform_indices = @transform_7, window_bounds = array<i64: 2, 1, 16>}, {pipeline_mode = #tpu.pipeline_mode<synchronous>, transform_indices = @transform_8, window_bounds = array<i64: 2, 16, 32>}, {pipeline_mode = #tpu.pipeline_mode<synchronous>, transform_indices = @transform_9, window_bounds = array<i64: 1, 32>}, {pipeline_mode = #tpu.pipeline_mode<synchronous>, transform_indices = @transform_10, window_bounds = array<i64: 32, 128>}, {pipeline_mode = #tpu.pipeline_mode<synchronous>, transform_indices = @transform_11, window_bounds = array<i64: 1, 128>}, {pipeline_mode = #tpu.pipeline_mode<synchronous>, transform_indices = @transform_12, window_bounds = array<i64: 128, 32>}, {pipeline_mode = #tpu.pipeline_mode<synchronous>, transform_indices = @transform_13, window_bounds = array<i64: 1, 32>}, {pipeline_mode = #tpu.pipeline_mode<synchronous>, transform_indices = @transform_14, window_bounds = array<i64: 1, 32>}, {pipeline_mode = #tpu.pipeline_mode<synchronous>, transform_indices = @transform_15, window_bounds = array<i64: 1, 32>}, {pipeline_mode = #tpu.pipeline_mode<synchronous>, transform_indices = @transform_16, window_bounds = array<i64: 1, 32>}, {pipeline_mode = #tpu.pipeline_mode<synchronous>, transform_indices = @transform_17, window_bounds = array<i64: 1, 32>}, {transform_indices = @transform_18, window_bounds = array<i64: 32, 32>}]} {
    %c0 = arith.constant 0 : index
    %c0_0 = arith.constant 0 : index
    %0 = vector.load %arg1[%c0, %c0_0] : memref<32x32xf32, #tpu.memory_space<vmem>>, vector<32x32xf32>
    %1 = arith.truncf %0 : vector<32x32xf32> to vector<32x32xbf16>
    %c0_1 = arith.constant 0 : index
    %c0_2 = arith.constant 0 : index
    %2 = vector.load %arg2[%c0_1, %c0_2] : memref<32x32xf32, #tpu.memory_space<vmem>>, vector<32x32xf32>
    %cst = arith.constant 0.000000e+00 : f32
    %3 = vector.broadcast %cst : f32 to vector<32x32xf32>
    %c0_3 = arith.constant 0 : index
    %c0_4 = arith.constant 0 : index
    %c0_5 = arith.constant 0 : index
    %4 = vector.load %arg3[%c0_3, %c0_4, %c0_5] : memref<2x32x16xbf16, #tpu.memory_space<vmem>>, vector<1x32x16xbf16>
    %5 = vector.shape_cast %4 : vector<1x32x16xbf16> to vector<32x16xbf16>
    %cst_6 = arith.constant dense<0.000000e+00> : vector<32x16xf32>
    %6 = tpu.matmul %1, %5, %cst_6 {dimension_numbers = #tpu.dot_dimension_numbers<[1], [0], [0], [1], [0, 0, 1, 1], [], []>} : vector<32x32xbf16>, vector<32x16xbf16>, vector<32x16xf32> -> vector<32x16xf32>
    %c0_7 = arith.constant 0 : index
    %c0_8 = arith.constant 0 : index
    %c0_9 = arith.constant 0 : index
    %7 = vector.load %arg6[%c0_7, %c0_8, %c0_9] : memref<2x1x16xf32, #tpu.memory_space<vmem>>, vector<1x1x16xf32>
    %8 = vector.shape_cast %7 : vector<1x1x16xf32> to vector<1x16xf32>
    %9 = vector.broadcast %8 : vector<1x16xf32> to vector<32x16xf32>
    %10 = arith.addf %6, %9 : vector<32x16xf32>
    %c0_10 = arith.constant 0 : index
    %c0_11 = arith.constant 0 : index
    %c0_12 = arith.constant 0 : index
    %11 = vector.load %arg4[%c0_10, %c0_11, %c0_12] : memref<2x32x16xbf16, #tpu.memory_space<vmem>>, vector<1x32x16xbf16>
    %12 = vector.shape_cast %11 : vector<1x32x16xbf16> to vector<32x16xbf16>
    %cst_13 = arith.constant dense<0.000000e+00> : vector<32x16xf32>
    %13 = tpu.matmul %1, %12, %cst_13 {dimension_numbers = #tpu.dot_dimension_numbers<[1], [0], [0], [1], [0, 0, 1, 1], [], []>} : vector<32x32xbf16>, vector<32x16xbf16>, vector<32x16xf32> -> vector<32x16xf32>
    %c0_14 = arith.constant 0 : index
    %c0_15 = arith.constant 0 : index
    %c0_16 = arith.constant 0 : index
    %14 = vector.load %arg7[%c0_14, %c0_15, %c0_16] : memref<2x1x16xf32, #tpu.memory_space<vmem>>, vector<1x1x16xf32>
    %15 = vector.shape_cast %14 : vector<1x1x16xf32> to vector<1x16xf32>
    %16 = vector.broadcast %15 : vector<1x16xf32> to vector<32x16xf32>
    %17 = arith.addf %13, %16 : vector<32x16xf32>
    %c0_17 = arith.constant 0 : index
    %c0_18 = arith.constant 0 : index
    %c0_19 = arith.constant 0 : index
    %18 = vector.load %arg5[%c0_17, %c0_18, %c0_19] : memref<2x32x16xbf16, #tpu.memory_space<vmem>>, vector<1x32x16xbf16>
    %19 = vector.shape_cast %18 : vector<1x32x16xbf16> to vector<32x16xbf16>
    %cst_20 = arith.constant dense<0.000000e+00> : vector<32x16xf32>
    %20 = tpu.matmul %1, %19, %cst_20 {dimension_numbers = #tpu.dot_dimension_numbers<[1], [0], [0], [1], [0, 0, 1, 1], [], []>} : vector<32x32xbf16>, vector<32x16xbf16>, vector<32x16xf32> -> vector<32x16xf32>
    %c0_21 = arith.constant 0 : index
    %c0_22 = arith.constant 0 : index
    %c0_23 = arith.constant 0 : index
    %21 = vector.load %arg8[%c0_21, %c0_22, %c0_23] : memref<2x1x16xf32, #tpu.memory_space<vmem>>, vector<1x1x16xf32>
    %22 = vector.shape_cast %21 : vector<1x1x16xf32> to vector<1x16xf32>
    %23 = vector.broadcast %22 : vector<1x16xf32> to vector<32x16xf32>
    %24 = arith.addf %20, %23 : vector<32x16xf32>
    %25 = arith.truncf %10 : vector<32x16xf32> to vector<32x16xbf16>
    %26 = arith.truncf %17 : vector<32x16xf32> to vector<32x16xbf16>
    %cst_24 = arith.constant dense<0.000000e+00> : vector<32x32xf32>
    %27 = tpu.matmul %25, %26, %cst_24 {dimension_numbers = #tpu.dot_dimension_numbers<[1], [1], [0], [0], [0, 0, 1, 0], [], []>} : vector<32x16xbf16>, vector<32x16xbf16>, vector<32x32xf32> -> vector<32x32xf32>
    %cst_25 = arith.constant 2.500000e-01 : f32
    %28 = vector.broadcast %cst_25 : f32 to vector<32x32xf32>
    %29 = arith.mulf %27, %28 : vector<32x32xf32>
    %30 = arith.addf %29, %2 : vector<32x32xf32>
    %cst_26 = arith.constant dense<0xFF800000> : vector<32xf32>
    %31 = vector.multi_reduction <maximumf>, %30, %cst_26 [1] : vector<32x32xf32> to vector<32xf32>
    %32 = vector.shape_cast %31 : vector<32xf32> to vector<32x1xf32>
    %33 = vector.broadcast %32 : vector<32x1xf32> to vector<32x32xf32>
    %34 = arith.subf %30, %33 : vector<32x32xf32>
    %35 = math.exp %34 : vector<32x32xf32>
    %cst_27 = arith.constant dense<0.000000e+00> : vector<32xf32>
    %36 = vector.multi_reduction <add>, %35, %cst_27 [1] : vector<32x32xf32> to vector<32xf32>
    %37 = vector.shape_cast %36 : vector<32xf32> to vector<32x1xf32>
    %38 = tpu.reciprocal %37 {approx = true} : vector<32x1xf32> -> vector<32x1xf32>
    %39 = vector.broadcast %38 : vector<32x1xf32> to vector<32x32xf32>
    %40 = arith.mulf %35, %39 : vector<32x32xf32>
    %41 = arith.truncf %40 : vector<32x32xf32> to vector<32x32xbf16>
    %42 = arith.truncf %24 : vector<32x16xf32> to vector<32x16xbf16>
    %cst_28 = arith.constant dense<0.000000e+00> : vector<32x16xf32>
    %43 = tpu.matmul %41, %42, %cst_28 {dimension_numbers = #tpu.dot_dimension_numbers<[1], [0], [0], [1], [0, 0, 1, 1], [], []>} : vector<32x32xbf16>, vector<32x16xbf16>, vector<32x16xf32> -> vector<32x16xf32>
    %44 = arith.truncf %43 : vector<32x16xf32> to vector<32x16xbf16>
    %c0_29 = arith.constant 0 : index
    %c0_30 = arith.constant 0 : index
    %c0_31 = arith.constant 0 : index
    %45 = vector.load %arg9[%c0_29, %c0_30, %c0_31] : memref<2x16x32xbf16, #tpu.memory_space<vmem>>, vector<1x16x32xbf16>
    %46 = vector.shape_cast %45 : vector<1x16x32xbf16> to vector<16x32xbf16>
    %cst_32 = arith.constant dense<0.000000e+00> : vector<32x32xf32>
    %47 = tpu.matmul %44, %46, %cst_32 {dimension_numbers = #tpu.dot_dimension_numbers<[1], [0], [0], [1], [0, 0, 1, 1], [], []>} : vector<32x16xbf16>, vector<16x32xbf16>, vector<32x32xf32> -> vector<32x32xf32>
    %48 = arith.addf %3, %47 : vector<32x32xf32>
    %c1 = arith.constant 1 : index
    %c0_33 = arith.constant 0 : index
    %c0_34 = arith.constant 0 : index
    %49 = vector.load %arg3[%c1, %c0_33, %c0_34] : memref<2x32x16xbf16, #tpu.memory_space<vmem>>, vector<1x32x16xbf16>
    %50 = vector.shape_cast %49 : vector<1x32x16xbf16> to vector<32x16xbf16>
    %cst_35 = arith.constant dense<0.000000e+00> : vector<32x16xf32>
    %51 = tpu.matmul %1, %50, %cst_35 {dimension_numbers = #tpu.dot_dimension_numbers<[1], [0], [0], [1], [0, 0, 1, 1], [], []>} : vector<32x32xbf16>, vector<32x16xbf16>, vector<32x16xf32> -> vector<32x16xf32>
    %c1_36 = arith.constant 1 : index
    %c0_37 = arith.constant 0 : index
    %c0_38 = arith.constant 0 : index
    %52 = vector.load %arg6[%c1_36, %c0_37, %c0_38] : memref<2x1x16xf32, #tpu.memory_space<vmem>>, vector<1x1x16xf32>
    %53 = vector.shape_cast %52 : vector<1x1x16xf32> to vector<1x16xf32>
    %54 = vector.broadcast %53 : vector<1x16xf32> to vector<32x16xf32>
    %55 = arith.addf %51, %54 : vector<32x16xf32>
    %c1_39 = arith.constant 1 : index
    %c0_40 = arith.constant 0 : index
    %c0_41 = arith.constant 0 : index
    %56 = vector.load %arg4[%c1_39, %c0_40, %c0_41] : memref<2x32x16xbf16, #tpu.memory_space<vmem>>, vector<1x32x16xbf16>
    %57 = vector.shape_cast %56 : vector<1x32x16xbf16> to vector<32x16xbf16>
    %cst_42 = arith.constant dense<0.000000e+00> : vector<32x16xf32>
    %58 = tpu.matmul %1, %57, %cst_42 {dimension_numbers = #tpu.dot_dimension_numbers<[1], [0], [0], [1], [0, 0, 1, 1], [], []>} : vector<32x32xbf16>, vector<32x16xbf16>, vector<32x16xf32> -> vector<32x16xf32>
    %c1_43 = arith.constant 1 : index
    %c0_44 = arith.constant 0 : index
    %c0_45 = arith.constant 0 : index
    %59 = vector.load %arg7[%c1_43, %c0_44, %c0_45] : memref<2x1x16xf32, #tpu.memory_space<vmem>>, vector<1x1x16xf32>
    %60 = vector.shape_cast %59 : vector<1x1x16xf32> to vector<1x16xf32>
    %61 = vector.broadcast %60 : vector<1x16xf32> to vector<32x16xf32>
    %62 = arith.addf %58, %61 : vector<32x16xf32>
    %c1_46 = arith.constant 1 : index
    %c0_47 = arith.constant 0 : index
    %c0_48 = arith.constant 0 : index
    %63 = vector.load %arg5[%c1_46, %c0_47, %c0_48] : memref<2x32x16xbf16, #tpu.memory_space<vmem>>, vector<1x32x16xbf16>
    %64 = vector.shape_cast %63 : vector<1x32x16xbf16> to vector<32x16xbf16>
    %cst_49 = arith.constant dense<0.000000e+00> : vector<32x16xf32>
    %65 = tpu.matmul %1, %64, %cst_49 {dimension_numbers = #tpu.dot_dimension_numbers<[1], [0], [0], [1], [0, 0, 1, 1], [], []>} : vector<32x32xbf16>, vector<32x16xbf16>, vector<32x16xf32> -> vector<32x16xf32>
    %c1_50 = arith.constant 1 : index
    %c0_51 = arith.constant 0 : index
    %c0_52 = arith.constant 0 : index
    %66 = vector.load %arg8[%c1_50, %c0_51, %c0_52] : memref<2x1x16xf32, #tpu.memory_space<vmem>>, vector<1x1x16xf32>
    %67 = vector.shape_cast %66 : vector<1x1x16xf32> to vector<1x16xf32>
    %68 = vector.broadcast %67 : vector<1x16xf32> to vector<32x16xf32>
    %69 = arith.addf %65, %68 : vector<32x16xf32>
    %70 = arith.truncf %55 : vector<32x16xf32> to vector<32x16xbf16>
    %71 = arith.truncf %62 : vector<32x16xf32> to vector<32x16xbf16>
    %cst_53 = arith.constant dense<0.000000e+00> : vector<32x32xf32>
    %72 = tpu.matmul %70, %71, %cst_53 {dimension_numbers = #tpu.dot_dimension_numbers<[1], [1], [0], [0], [0, 0, 1, 0], [], []>} : vector<32x16xbf16>, vector<32x16xbf16>, vector<32x32xf32> -> vector<32x32xf32>
    %cst_54 = arith.constant 2.500000e-01 : f32
    %73 = vector.broadcast %cst_54 : f32 to vector<32x32xf32>
    %74 = arith.mulf %72, %73 : vector<32x32xf32>
    %75 = arith.addf %74, %2 : vector<32x32xf32>
    %cst_55 = arith.constant dense<0xFF800000> : vector<32xf32>
    %76 = vector.multi_reduction <maximumf>, %75, %cst_55 [1] : vector<32x32xf32> to vector<32xf32>
    %77 = vector.shape_cast %76 : vector<32xf32> to vector<32x1xf32>
    %78 = vector.broadcast %77 : vector<32x1xf32> to vector<32x32xf32>
    %79 = arith.subf %75, %78 : vector<32x32xf32>
    %80 = math.exp %79 : vector<32x32xf32>
    %cst_56 = arith.constant dense<0.000000e+00> : vector<32xf32>
    %81 = vector.multi_reduction <add>, %80, %cst_56 [1] : vector<32x32xf32> to vector<32xf32>
    %82 = vector.shape_cast %81 : vector<32xf32> to vector<32x1xf32>
    %83 = tpu.reciprocal %82 {approx = true} : vector<32x1xf32> -> vector<32x1xf32>
    %84 = vector.broadcast %83 : vector<32x1xf32> to vector<32x32xf32>
    %85 = arith.mulf %80, %84 : vector<32x32xf32>
    %86 = arith.truncf %85 : vector<32x32xf32> to vector<32x32xbf16>
    %87 = arith.truncf %69 : vector<32x16xf32> to vector<32x16xbf16>
    %cst_57 = arith.constant dense<0.000000e+00> : vector<32x16xf32>
    %88 = tpu.matmul %86, %87, %cst_57 {dimension_numbers = #tpu.dot_dimension_numbers<[1], [0], [0], [1], [0, 0, 1, 1], [], []>} : vector<32x32xbf16>, vector<32x16xbf16>, vector<32x16xf32> -> vector<32x16xf32>
    %89 = arith.truncf %88 : vector<32x16xf32> to vector<32x16xbf16>
    %c1_58 = arith.constant 1 : index
    %c0_59 = arith.constant 0 : index
    %c0_60 = arith.constant 0 : index
    %90 = vector.load %arg9[%c1_58, %c0_59, %c0_60] : memref<2x16x32xbf16, #tpu.memory_space<vmem>>, vector<1x16x32xbf16>
    %91 = vector.shape_cast %90 : vector<1x16x32xbf16> to vector<16x32xbf16>
    %cst_61 = arith.constant dense<0.000000e+00> : vector<32x32xf32>
    %92 = tpu.matmul %89, %91, %cst_61 {dimension_numbers = #tpu.dot_dimension_numbers<[1], [0], [0], [1], [0, 0, 1, 1], [], []>} : vector<32x16xbf16>, vector<16x32xbf16>, vector<32x32xf32> -> vector<32x32xf32>
    %93 = arith.addf %48, %92 : vector<32x32xf32>
    %c0_62 = arith.constant 0 : index
    %c0_63 = arith.constant 0 : index
    %94 = vector.load %arg10[%c0_62, %c0_63] : memref<1x32xf32, #tpu.memory_space<vmem>>, vector<1x32xf32>
    %95 = vector.broadcast %94 : vector<1x32xf32> to vector<32x32xf32>
    %96 = arith.addf %93, %95 : vector<32x32xf32>
    %97 = arith.addf %0, %96 : vector<32x32xf32>
    %c0_64 = arith.constant 0 : index
    %c0_65 = arith.constant 0 : index
    %98 = vector.load %arg15[%c0_64, %c0_65] : memref<1x32xf32, #tpu.memory_space<vmem>>, vector<1x32xf32>
    %c0_66 = arith.constant 0 : index
    %c0_67 = arith.constant 0 : index
    %99 = vector.load %arg16[%c0_66, %c0_67] : memref<1x32xf32, #tpu.memory_space<vmem>>, vector<1x32xf32>
    %cst_68 = arith.constant dense<0.000000e+00> : vector<32xf32>
    %100 = vector.multi_reduction <add>, %97, %cst_68 [1] : vector<32x32xf32> to vector<32xf32>
    %101 = vector.shape_cast %100 : vector<32xf32> to vector<32x1xf32>
    %cst_69 = arith.constant 3.200000e+01 : f32
    %102 = vector.broadcast %cst_69 : f32 to vector<32x1xf32>
    %103 = arith.divf %101, %102 : vector<32x1xf32>
    %104 = vector.broadcast %103 : vector<32x1xf32> to vector<32x32xf32>
    %105 = arith.subf %97, %104 : vector<32x32xf32>
    %106 = arith.mulf %105, %105 : vector<32x32xf32>
    %cst_70 = arith.constant dense<0.000000e+00> : vector<32xf32>
    %107 = vector.multi_reduction <add>, %106, %cst_70 [1] : vector<32x32xf32> to vector<32xf32>
    %108 = vector.shape_cast %107 : vector<32xf32> to vector<32x1xf32>
    %cst_71 = arith.constant 3.200000e+01 : f32
    %109 = vector.broadcast %cst_71 : f32 to vector<32x1xf32>
    %110 = arith.divf %108, %109 : vector<32x1xf32>
    %111 = vector.broadcast %103 : vector<32x1xf32> to vector<32x32xf32>
    %112 = arith.subf %97, %111 : vector<32x32xf32>
    %cst_72 = arith.constant 9.99999974E-6 : f32
    %113 = vector.broadcast %cst_72 : f32 to vector<32x1xf32>
    %114 = arith.addf %110, %113 : vector<32x1xf32>
    %115 = math.rsqrt %114 : vector<32x1xf32>
    %116 = vector.broadcast %115 : vector<32x1xf32> to vector<32x32xf32>
    %117 = arith.mulf %112, %116 : vector<32x32xf32>
    %118 = vector.broadcast %98 : vector<1x32xf32> to vector<32x32xf32>
    %119 = arith.mulf %117, %118 : vector<32x32xf32>
    %120 = vector.broadcast %99 : vector<1x32xf32> to vector<32x32xf32>
    %121 = arith.addf %119, %120 : vector<32x32xf32>
    %122 = arith.truncf %121 : vector<32x32xf32> to vector<32x32xbf16>
    %c0_73 = arith.constant 0 : index
    %c0_74 = arith.constant 0 : index
    %123 = vector.load %arg11[%c0_73, %c0_74] : memref<32x128xbf16, #tpu.memory_space<vmem>>, vector<32x128xbf16>
    %cst_75 = arith.constant dense<0.000000e+00> : vector<32x128xf32>
    %124 = tpu.matmul %122, %123, %cst_75 {dimension_numbers = #tpu.dot_dimension_numbers<[1], [0], [0], [1], [0, 0, 1, 1], [], []>} : vector<32x32xbf16>, vector<32x128xbf16>, vector<32x128xf32> -> vector<32x128xf32>
    %c0_76 = arith.constant 0 : index
    %c0_77 = arith.constant 0 : index
    %125 = vector.load %arg12[%c0_76, %c0_77] : memref<1x128xf32, #tpu.memory_space<vmem>>, vector<1x128xf32>
    %126 = vector.broadcast %125 : vector<1x128xf32> to vector<32x128xf32>
    %127 = arith.addf %124, %126 : vector<32x128xf32>
    %cst_78 = arith.constant 0.000000e+00 : f32
    %128 = vector.broadcast %cst_78 : f32 to vector<32x128xf32>
    %129 = arith.maximumf %127, %128 : vector<32x128xf32>
    %130 = arith.truncf %129 : vector<32x128xf32> to vector<32x128xbf16>
    %c0_79 = arith.constant 0 : index
    %c0_80 = arith.constant 0 : index
    %131 = vector.load %arg13[%c0_79, %c0_80] : memref<128x32xbf16, #tpu.memory_space<vmem>>, vector<128x32xbf16>
    %cst_81 = arith.constant dense<0.000000e+00> : vector<32x32xf32>
    %132 = tpu.matmul %130, %131, %cst_81 {dimension_numbers = #tpu.dot_dimension_numbers<[1], [0], [0], [1], [0, 0, 1, 1], [], []>} : vector<32x128xbf16>, vector<128x32xbf16>, vector<32x32xf32> -> vector<32x32xf32>
    %c0_82 = arith.constant 0 : index
    %c0_83 = arith.constant 0 : index
    %133 = vector.load %arg14[%c0_82, %c0_83] : memref<1x32xf32, #tpu.memory_space<vmem>>, vector<1x32xf32>
    %134 = vector.broadcast %133 : vector<1x32xf32> to vector<32x32xf32>
    %135 = arith.addf %132, %134 : vector<32x32xf32>
    %136 = arith.addf %121, %135 : vector<32x32xf32>
    %c0_84 = arith.constant 0 : index
    %c0_85 = arith.constant 0 : index
    %137 = vector.load %arg17[%c0_84, %c0_85] : memref<1x32xf32, #tpu.memory_space<vmem>>, vector<1x32xf32>
    %c0_86 = arith.constant 0 : index
    %c0_87 = arith.constant 0 : index
    %138 = vector.load %arg18[%c0_86, %c0_87] : memref<1x32xf32, #tpu.memory_space<vmem>>, vector<1x32xf32>
    %cst_88 = arith.constant dense<0.000000e+00> : vector<32xf32>
    %139 = vector.multi_reduction <add>, %136, %cst_88 [1] : vector<32x32xf32> to vector<32xf32>
    %140 = vector.shape_cast %139 : vector<32xf32> to vector<32x1xf32>
    %cst_89 = arith.constant 3.200000e+01 : f32
    %141 = vector.broadcast %cst_89 : f32 to vector<32x1xf32>
    %142 = arith.divf %140, %141 : vector<32x1xf32>
    %143 = vector.broadcast %142 : vector<32x1xf32> to vector<32x32xf32>
    %144 = arith.subf %136, %143 : vector<32x32xf32>
    %145 = arith.mulf %144, %144 : vector<32x32xf32>
    %cst_90 = arith.constant dense<0.000000e+00> : vector<32xf32>
    %146 = vector.multi_reduction <add>, %145, %cst_90 [1] : vector<32x32xf32> to vector<32xf32>
    %147 = vector.shape_cast %146 : vector<32xf32> to vector<32x1xf32>
    %cst_91 = arith.constant 3.200000e+01 : f32
    %148 = vector.broadcast %cst_91 : f32 to vector<32x1xf32>
    %149 = arith.divf %147, %148 : vector<32x1xf32>
    %150 = vector.broadcast %142 : vector<32x1xf32> to vector<32x32xf32>
    %151 = arith.subf %136, %150 : vector<32x32xf32>
    %cst_92 = arith.constant 9.99999974E-6 : f32
    %152 = vector.broadcast %cst_92 : f32 to vector<32x1xf32>
    %153 = arith.addf %149, %152 : vector<32x1xf32>
    %154 = math.rsqrt %153 : vector<32x1xf32>
    %155 = vector.broadcast %154 : vector<32x1xf32> to vector<32x32xf32>
    %156 = arith.mulf %151, %155 : vector<32x32xf32>
    %157 = vector.broadcast %137 : vector<1x32xf32> to vector<32x32xf32>
    %158 = arith.mulf %156, %157 : vector<32x32xf32>
    %159 = vector.broadcast %138 : vector<1x32xf32> to vector<32x32xf32>
    %160 = arith.addf %158, %159 : vector<32x32xf32>
    %c0_93 = arith.constant 0 : index
    %c0_94 = arith.constant 0 : index
    %161 = vector.load %arg19[%c0_93, %c0_94] : memref<32x32xf32, #tpu.memory_space<vmem>>, vector<32x32xf32>
    tpu.vector_store %arg19[%c0_93, %c0_94], %160 {strides = array<i32>} : memref<32x32xf32, #tpu.memory_space<vmem>>, vector<32x32xf32>,
    return
  }
  func.func @transform_0(%arg0: i32) -> (i32, i32) {
    %c0_i32 = arith.constant 0 : i32
    %c0_i32_0 = arith.constant 0 : i32
    return %arg0, %c0_i32 : i32, i32
  }
  func.func @transform_1(%arg0: i32) -> (i32, i32) {
    %c0_i32 = arith.constant 0 : i32
    %c0_i32_0 = arith.constant 0 : i32
    %c0_i32_1 = arith.constant 0 : i32
    return %c0_i32, %c0_i32_0 : i32, i32
  }
  func.func @transform_2(%arg0: i32) -> (i32, i32, i32) {
    %c0_i32 = arith.constant 0 : i32
    %c0_i32_0 = arith.constant 0 : i32
    %c0_i32_1 = arith.constant 0 : i32
    %c0_i32_2 = arith.constant 0 : i32
    return %c0_i32, %c0_i32_0, %c0_i32_1 : i32, i32, i32
  }
  func.func @transform_3(%arg0: i32) -> (i32, i32, i32) {
    %c0_i32 = arith.constant 0 : i32
    %c0_i32_0 = arith.constant 0 : i32
    %c0_i32_1 = arith.constant 0 : i32
    %c0_i32_2 = arith.constant 0 : i32
    return %c0_i32, %c0_i32_0, %c0_i32_1 : i32, i32, i32
  }
  func.func @transform_4(%arg0: i32) -> (i32, i32, i32) {
    %c0_i32 = arith.constant 0 : i32
    %c0_i32_0 = arith.constant 0 : i32
    %c0_i32_1 = arith.constant 0 : i32
    %c0_i32_2 = arith.constant 0 : i32
    return %c0_i32, %c0_i32_0, %c0_i32_1 : i32, i32, i32
  }
  func.func @transform_5(%arg0: i32) -> (i32, i32, i32) {
    %c0_i32 = arith.constant 0 : i32
    %c0_i32_0 = arith.constant 0 : i32
    %c0_i32_1 = arith.constant 0 : i32
    %c0_i32_2 = arith.constant 0 : i32
    return %c0_i32, %c0_i32_0, %c0_i32_1 : i32, i32, i32
  }
  func.func @transform_6(%arg0: i32) -> (i32, i32, i32) {
    %c0_i32 = arith.constant 0 : i32
    %c0_i32_0 = arith.constant 0 : i32
    %c0_i32_1 = arith.constant 0 : i32
    %c0_i32_2 = arith.constant 0 : i32
    return %c0_i32, %c0_i32_0, %c0_i32_1 : i32, i32, i32
  }
  func.func @transform_7(%arg0: i32) -> (i32, i32, i32) {
    %c0_i32 = arith.constant 0 : i32
    %c0_i32_0 = arith.constant 0 : i32
    %c0_i32_1 = arith.constant 0 : i32
    %c0_i32_2 = arith.constant 0 : i32
    return %c0_i32, %c0_i32_0, %c0_i32_1 : i32, i32, i32
  }
  func.func @transform_8(%arg0: i32) -> (i32, i32, i32) {
    %c0_i32 = arith.constant 0 : i32
    %c0_i32_0 = arith.constant 0 : i32
    %c0_i32_1 = arith.constant 0 : i32
    %c0_i32_2 = arith.constant 0 : i32
    return %c0_i32, %c0_i32_0, %c0_i32_1 : i32, i32, i32
  }
  func.func @transform_9(%arg0: i32) -> (i32, i32) {
    %c0_i32 = arith.constant 0 : i32
    %c0_i32_0 = arith.constant 0 : i32
    %c0_i32_1 = arith.constant 0 : i32
    return %c0_i32, %c0_i32_0 : i32, i32
  }
  func.func @transform_10(%arg0: i32) -> (i32, i32) {
    %c0_i32 = arith.constant 0 : i32
    %c0_i32_0 = arith.constant 0 : i32
    %c0_i32_1 = arith.constant 0 : i32
    return %c0_i32, %c0_i32_0 : i32, i32
  }
  func.func @transform_11(%arg0: i32) -> (i32, i32) {
    %c0_i32 = arith.constant 0 : i32
    %c0_i32_0 = arith.constant 0 : i32
    %c0_i32_1 = arith.constant 0 : i32
    return %c0_i32, %c0_i32_0 : i32, i32
  }
  func.func @transform_12(%arg0: i32) -> (i32, i32) {
    %c0_i32 = arith.constant 0 : i32
    %c0_i32_0 = arith.constant 0 : i32
    %c0_i32_1 = arith.constant 0 : i32
    return %c0_i32, %c0_i32_0 : i32, i32
  }
  func.func @transform_13(%arg0: i32) -> (i32, i32) {
    %c0_i32 = arith.constant 0 : i32
    %c0_i32_0 = arith.constant 0 : i32
    %c0_i32_1 = arith.constant 0 : i32
    return %c0_i32, %c0_i32_0 : i32, i32
  }
  func.func @transform_14(%arg0: i32) -> (i32, i32) {
    %c0_i32 = arith.constant 0 : i32
    %c0_i32_0 = arith.constant 0 : i32
    %c0_i32_1 = arith.constant 0 : i32
    return %c0_i32, %c0_i32_0 : i32, i32
  }
  func.func @transform_15(%arg0: i32) -> (i32, i32) {
    %c0_i32 = arith.constant 0 : i32
    %c0_i32_0 = arith.constant 0 : i32
    %c0_i32_1 = arith.constant 0 : i32
    return %c0_i32, %c0_i32_0 : i32, i32
  }
  func.func @transform_16(%arg0: i32) -> (i32, i32) {
    %c0_i32 = arith.constant 0 : i32
    %c0_i32_0 = arith.constant 0 : i32
    %c0_i32_1 = arith.constant 0 : i32
    return %c0_i32, %c0_i32_0 : i32, i32
  }
  func.func @transform_17(%arg0: i32) -> (i32, i32) {
    %c0_i32 = arith.constant 0 : i32
    %c0_i32_0 = arith.constant 0 : i32
    %c0_i32_1 = arith.constant 0 : i32
    return %c0_i32, %c0_i32_0 : i32, i32
  }
  func.func @transform_18(%arg0: i32) -> (i32, i32) {
    %c0_i32 = arith.constant 0 : i32
    %c0_i32_0 = arith.constant 0 : i32
    return %arg0, %c0_i32 : i32, i32
  }
}

module attributes {stable_mosaic.version = 11 : i64} {
  func.func @_ln_linear_kernel(%arg0: i32, %arg1: memref<64x32xf32, #tpu.memory_space<vmem>>, %arg2: memref<1x32xf32, #tpu.memory_space<vmem>>, %arg3: memref<1x32xf32, #tpu.memory_space<vmem>>, %arg4: memref<32x4xbf16, #tpu.memory_space<vmem>>, %arg5: memref<1x4xf32, #tpu.memory_space<vmem>>, %arg6: memref<64x4xf32, #tpu.memory_space<vmem>>) attributes {dimension_semantics = [#tpu.dimension_semantics<parallel>], iteration_bounds = array<i64: 1>, scalar_prefetch = 0 : i64, scratch_operands = 0 : i64, tpu.core_type = #tpu.core_type<tc>, window_params = [{transform_indices = @transform_0, window_bounds = array<i64: 64, 32>}, {pipeline_mode = #tpu.pipeline_mode<synchronous>, transform_indices = @transform_1, window_bounds = array<i64: 1, 32>}, {pipeline_mode = #tpu.pipeline_mode<synchronous>, transform_indices = @transform_2, window_bounds = array<i64: 1, 32>}, {pipeline_mode = #tpu.pipeline_mode<synchronous>, transform_indices = @transform_3, window_bounds = array<i64: 32, 4>}, {pipeline_mode = #tpu.pipeline_mode<synchronous>, transform_indices = @transform_4, window_bounds = array<i64: 1, 4>}, {transform_indices = @transform_5, window_bounds = array<i64: 64, 4>}]} {
    %c0 = arith.constant 0 : index
    %c0_0 = arith.constant 0 : index
    %0 = vector.load %arg1[%c0, %c0_0] : memref<64x32xf32, #tpu.memory_space<vmem>>, vector<64x32xf32>
    %c0_1 = arith.constant 0 : index
    %c0_2 = arith.constant 0 : index
    %1 = vector.load %arg2[%c0_1, %c0_2] : memref<1x32xf32, #tpu.memory_space<vmem>>, vector<1x32xf32>
    %c0_3 = arith.constant 0 : index
    %c0_4 = arith.constant 0 : index
    %2 = vector.load %arg3[%c0_3, %c0_4] : memref<1x32xf32, #tpu.memory_space<vmem>>, vector<1x32xf32>
    %cst = arith.constant dense<0.000000e+00> : vector<64xf32>
    %3 = vector.multi_reduction <add>, %0, %cst [1] : vector<64x32xf32> to vector<64xf32>
    %4 = vector.shape_cast %3 : vector<64xf32> to vector<64x1xf32>
    %cst_5 = arith.constant 3.200000e+01 : f32
    %5 = vector.broadcast %cst_5 : f32 to vector<64x1xf32>
    %6 = arith.divf %4, %5 : vector<64x1xf32>
    %7 = vector.broadcast %6 : vector<64x1xf32> to vector<64x32xf32>
    %8 = arith.subf %0, %7 : vector<64x32xf32>
    %9 = arith.mulf %8, %8 : vector<64x32xf32>
    %cst_6 = arith.constant dense<0.000000e+00> : vector<64xf32>
    %10 = vector.multi_reduction <add>, %9, %cst_6 [1] : vector<64x32xf32> to vector<64xf32>
    %11 = vector.shape_cast %10 : vector<64xf32> to vector<64x1xf32>
    %cst_7 = arith.constant 3.200000e+01 : f32
    %12 = vector.broadcast %cst_7 : f32 to vector<64x1xf32>
    %13 = arith.divf %11, %12 : vector<64x1xf32>
    %14 = vector.broadcast %6 : vector<64x1xf32> to vector<64x32xf32>
    %15 = arith.subf %0, %14 : vector<64x32xf32>
    %cst_8 = arith.constant 9.99999974E-6 : f32
    %16 = vector.broadcast %cst_8 : f32 to vector<64x1xf32>
    %17 = arith.addf %13, %16 : vector<64x1xf32>
    %18 = math.rsqrt %17 : vector<64x1xf32>
    %19 = vector.broadcast %18 : vector<64x1xf32> to vector<64x32xf32>
    %20 = arith.mulf %15, %19 : vector<64x32xf32>
    %21 = vector.broadcast %1 : vector<1x32xf32> to vector<64x32xf32>
    %22 = arith.mulf %20, %21 : vector<64x32xf32>
    %23 = vector.broadcast %2 : vector<1x32xf32> to vector<64x32xf32>
    %24 = arith.addf %22, %23 : vector<64x32xf32>
    %25 = arith.truncf %24 : vector<64x32xf32> to vector<64x32xbf16>
    %c0_9 = arith.constant 0 : index
    %c0_10 = arith.constant 0 : index
    %26 = vector.load %arg4[%c0_9, %c0_10] : memref<32x4xbf16, #tpu.memory_space<vmem>>, vector<32x4xbf16>
    %cst_11 = arith.constant dense<0.000000e+00> : vector<64x4xf32>
    %27 = tpu.matmul %25, %26, %cst_11 {dimension_numbers = #tpu.dot_dimension_numbers<[1], [0], [0], [1], [0, 0, 1, 1], [], []>} : vector<64x32xbf16>, vector<32x4xbf16>, vector<64x4xf32> -> vector<64x4xf32>
    %c0_12 = arith.constant 0 : index
    %c0_13 = arith.constant 0 : index
    %28 = vector.load %arg5[%c0_12, %c0_13] : memref<1x4xf32, #tpu.memory_space<vmem>>, vector<1x4xf32>
    %29 = vector.broadcast %28 : vector<1x4xf32> to vector<64x4xf32>
    %30 = arith.addf %27, %29 : vector<64x4xf32>
    %c0_14 = arith.constant 0 : index
    %c0_15 = arith.constant 0 : index
    %31 = vector.load %arg6[%c0_14, %c0_15] : memref<64x4xf32, #tpu.memory_space<vmem>>, vector<64x4xf32>
    tpu.vector_store %arg6[%c0_14, %c0_15], %30 {strides = array<i32>} : memref<64x4xf32, #tpu.memory_space<vmem>>, vector<64x4xf32>,
    return
  }
  func.func @transform_0(%arg0: i32) -> (i32, i32) {
    %c0_i32 = arith.constant 0 : i32
    %c0_i32_0 = arith.constant 0 : i32
    return %arg0, %c0_i32 : i32, i32
  }
  func.func @transform_1(%arg0: i32) -> (i32, i32) {
    %c0_i32 = arith.constant 0 : i32
    %c0_i32_0 = arith.constant 0 : i32
    %c0_i32_1 = arith.constant 0 : i32
    return %c0_i32, %c0_i32_0 : i32, i32
  }
  func.func @transform_2(%arg0: i32) -> (i32, i32) {
    %c0_i32 = arith.constant 0 : i32
    %c0_i32_0 = arith.constant 0 : i32
    %c0_i32_1 = arith.constant 0 : i32
    return %c0_i32, %c0_i32_0 : i32, i32
  }
  func.func @transform_3(%arg0: i32) -> (i32, i32) {
    %c0_i32 = arith.constant 0 : i32
    %c0_i32_0 = arith.constant 0 : i32
    %c0_i32_1 = arith.constant 0 : i32
    return %c0_i32, %c0_i32_0 : i32, i32
  }
  func.func @transform_4(%arg0: i32) -> (i32, i32) {
    %c0_i32 = arith.constant 0 : i32
    %c0_i32_0 = arith.constant 0 : i32
    %c0_i32_1 = arith.constant 0 : i32
    return %c0_i32, %c0_i32_0 : i32, i32
  }
  func.func @transform_5(%arg0: i32) -> (i32, i32) {
    %c0_i32 = arith.constant 0 : i32
    %c0_i32_0 = arith.constant 0 : i32
    return %arg0, %c0_i32 : i32, i32
  }
}

module attributes {stable_mosaic.version = 11 : i64} {
  func.func @_transformer_layer_kernel(%arg0: i32, %arg1: memref<64x32xf32, #tpu.memory_space<vmem>>, %arg2: memref<64x64xf32, #tpu.memory_space<vmem>>, %arg3: memref<2x32x16xbf16, #tpu.memory_space<vmem>>, %arg4: memref<2x32x16xbf16, #tpu.memory_space<vmem>>, %arg5: memref<2x32x16xbf16, #tpu.memory_space<vmem>>, %arg6: memref<2x1x16xf32, #tpu.memory_space<vmem>>, %arg7: memref<2x1x16xf32, #tpu.memory_space<vmem>>, %arg8: memref<2x1x16xf32, #tpu.memory_space<vmem>>, %arg9: memref<2x16x32xbf16, #tpu.memory_space<vmem>>, %arg10: memref<1x32xf32, #tpu.memory_space<vmem>>, %arg11: memref<32x128xbf16, #tpu.memory_space<vmem>>, %arg12: memref<1x128xf32, #tpu.memory_space<vmem>>, %arg13: memref<128x32xbf16, #tpu.memory_space<vmem>>, %arg14: memref<1x32xf32, #tpu.memory_space<vmem>>, %arg15: memref<1x32xf32, #tpu.memory_space<vmem>>, %arg16: memref<1x32xf32, #tpu.memory_space<vmem>>, %arg17: memref<1x32xf32, #tpu.memory_space<vmem>>, %arg18: memref<1x32xf32, #tpu.memory_space<vmem>>, %arg19: memref<64x32xf32, #tpu.memory_space<vmem>>) attributes {dimension_semantics = [#tpu.dimension_semantics<parallel>], iteration_bounds = array<i64: 1>, scalar_prefetch = 0 : i64, scratch_operands = 0 : i64, tpu.core_type = #tpu.core_type<tc>, window_params = [{transform_indices = @transform_0, window_bounds = array<i64: 64, 32>}, {pipeline_mode = #tpu.pipeline_mode<synchronous>, transform_indices = @transform_1, window_bounds = array<i64: 64, 64>}, {pipeline_mode = #tpu.pipeline_mode<synchronous>, transform_indices = @transform_2, window_bounds = array<i64: 2, 32, 16>}, {pipeline_mode = #tpu.pipeline_mode<synchronous>, transform_indices = @transform_3, window_bounds = array<i64: 2, 32, 16>}, {pipeline_mode = #tpu.pipeline_mode<synchronous>, transform_indices = @transform_4, window_bounds = array<i64: 2, 32, 16>}, {pipeline_mode = #tpu.pipeline_mode<synchronous>, transform_indices = @transform_5, window_bounds = array<i64: 2, 1, 16>}, {pipeline_mode = #tpu.pipeline_mode<synchronous>, transform_indices = @transform_6, window_bounds = array<i64: 2, 1, 16>}, {pipeline_mode = #tpu.pipeline_mode<synchronous>, transform_indices = @transform_7, window_bounds = array<i64: 2, 1, 16>}, {pipeline_mode = #tpu.pipeline_mode<synchronous>, transform_indices = @transform_8, window_bounds = array<i64: 2, 16, 32>}, {pipeline_mode = #tpu.pipeline_mode<synchronous>, transform_indices = @transform_9, window_bounds = array<i64: 1, 32>}, {pipeline_mode = #tpu.pipeline_mode<synchronous>, transform_indices = @transform_10, window_bounds = array<i64: 32, 128>}, {pipeline_mode = #tpu.pipeline_mode<synchronous>, transform_indices = @transform_11, window_bounds = array<i64: 1, 128>}, {pipeline_mode = #tpu.pipeline_mode<synchronous>, transform_indices = @transform_12, window_bounds = array<i64: 128, 32>}, {pipeline_mode = #tpu.pipeline_mode<synchronous>, transform_indices = @transform_13, window_bounds = array<i64: 1, 32>}, {pipeline_mode = #tpu.pipeline_mode<synchronous>, transform_indices = @transform_14, window_bounds = array<i64: 1, 32>}, {pipeline_mode = #tpu.pipeline_mode<synchronous>, transform_indices = @transform_15, window_bounds = array<i64: 1, 32>}, {pipeline_mode = #tpu.pipeline_mode<synchronous>, transform_indices = @transform_16, window_bounds = array<i64: 1, 32>}, {pipeline_mode = #tpu.pipeline_mode<synchronous>, transform_indices = @transform_17, window_bounds = array<i64: 1, 32>}, {transform_indices = @transform_18, window_bounds = array<i64: 64, 32>}]} {
    %c0 = arith.constant 0 : index
    %c0_0 = arith.constant 0 : index
    %0 = vector.load %arg1[%c0, %c0_0] : memref<64x32xf32, #tpu.memory_space<vmem>>, vector<64x32xf32>
    %cst = arith.constant 5.65685415 : f32
    %1 = vector.broadcast %cst : f32 to vector<64x32xf32>
    %2 = arith.mulf %0, %1 : vector<64x32xf32>
    %3 = arith.truncf %2 : vector<64x32xf32> to vector<64x32xbf16>
    %c0_1 = arith.constant 0 : index
    %c0_2 = arith.constant 0 : index
    %4 = vector.load %arg2[%c0_1, %c0_2] : memref<64x64xf32, #tpu.memory_space<vmem>>, vector<64x64xf32>
    %cst_3 = arith.constant 0.000000e+00 : f32
    %5 = vector.broadcast %cst_3 : f32 to vector<64x32xf32>
    %c0_4 = arith.constant 0 : index
    %c0_5 = arith.constant 0 : index
    %c0_6 = arith.constant 0 : index
    %6 = vector.load %arg3[%c0_4, %c0_5, %c0_6] : memref<2x32x16xbf16, #tpu.memory_space<vmem>>, vector<1x32x16xbf16>
    %7 = vector.shape_cast %6 : vector<1x32x16xbf16> to vector<32x16xbf16>
    %cst_7 = arith.constant dense<0.000000e+00> : vector<64x16xf32>
    %8 = tpu.matmul %3, %7, %cst_7 {dimension_numbers = #tpu.dot_dimension_numbers<[1], [0], [0], [1], [0, 0, 1, 1], [], []>} : vector<64x32xbf16>, vector<32x16xbf16>, vector<64x16xf32> -> vector<64x16xf32>
    %c0_8 = arith.constant 0 : index
    %c0_9 = arith.constant 0 : index
    %c0_10 = arith.constant 0 : index
    %9 = vector.load %arg6[%c0_8, %c0_9, %c0_10] : memref<2x1x16xf32, #tpu.memory_space<vmem>>, vector<1x1x16xf32>
    %10 = vector.shape_cast %9 : vector<1x1x16xf32> to vector<1x16xf32>
    %11 = vector.broadcast %10 : vector<1x16xf32> to vector<64x16xf32>
    %12 = arith.addf %8, %11 : vector<64x16xf32>
    %c0_11 = arith.constant 0 : index
    %c0_12 = arith.constant 0 : index
    %c0_13 = arith.constant 0 : index
    %13 = vector.load %arg4[%c0_11, %c0_12, %c0_13] : memref<2x32x16xbf16, #tpu.memory_space<vmem>>, vector<1x32x16xbf16>
    %14 = vector.shape_cast %13 : vector<1x32x16xbf16> to vector<32x16xbf16>
    %cst_14 = arith.constant dense<0.000000e+00> : vector<64x16xf32>
    %15 = tpu.matmul %3, %14, %cst_14 {dimension_numbers = #tpu.dot_dimension_numbers<[1], [0], [0], [1], [0, 0, 1, 1], [], []>} : vector<64x32xbf16>, vector<32x16xbf16>, vector<64x16xf32> -> vector<64x16xf32>
    %c0_15 = arith.constant 0 : index
    %c0_16 = arith.constant 0 : index
    %c0_17 = arith.constant 0 : index
    %16 = vector.load %arg7[%c0_15, %c0_16, %c0_17] : memref<2x1x16xf32, #tpu.memory_space<vmem>>, vector<1x1x16xf32>
    %17 = vector.shape_cast %16 : vector<1x1x16xf32> to vector<1x16xf32>
    %18 = vector.broadcast %17 : vector<1x16xf32> to vector<64x16xf32>
    %19 = arith.addf %15, %18 : vector<64x16xf32>
    %c0_18 = arith.constant 0 : index
    %c0_19 = arith.constant 0 : index
    %c0_20 = arith.constant 0 : index
    %20 = vector.load %arg5[%c0_18, %c0_19, %c0_20] : memref<2x32x16xbf16, #tpu.memory_space<vmem>>, vector<1x32x16xbf16>
    %21 = vector.shape_cast %20 : vector<1x32x16xbf16> to vector<32x16xbf16>
    %cst_21 = arith.constant dense<0.000000e+00> : vector<64x16xf32>
    %22 = tpu.matmul %3, %21, %cst_21 {dimension_numbers = #tpu.dot_dimension_numbers<[1], [0], [0], [1], [0, 0, 1, 1], [], []>} : vector<64x32xbf16>, vector<32x16xbf16>, vector<64x16xf32> -> vector<64x16xf32>
    %c0_22 = arith.constant 0 : index
    %c0_23 = arith.constant 0 : index
    %c0_24 = arith.constant 0 : index
    %23 = vector.load %arg8[%c0_22, %c0_23, %c0_24] : memref<2x1x16xf32, #tpu.memory_space<vmem>>, vector<1x1x16xf32>
    %24 = vector.shape_cast %23 : vector<1x1x16xf32> to vector<1x16xf32>
    %25 = vector.broadcast %24 : vector<1x16xf32> to vector<64x16xf32>
    %26 = arith.addf %22, %25 : vector<64x16xf32>
    %27 = arith.truncf %12 : vector<64x16xf32> to vector<64x16xbf16>
    %28 = arith.truncf %19 : vector<64x16xf32> to vector<64x16xbf16>
    %cst_25 = arith.constant dense<0.000000e+00> : vector<64x64xf32>
    %29 = tpu.matmul %27, %28, %cst_25 {dimension_numbers = #tpu.dot_dimension_numbers<[1], [1], [0], [0], [0, 0, 1, 0], [], []>} : vector<64x16xbf16>, vector<64x16xbf16>, vector<64x64xf32> -> vector<64x64xf32>
    %cst_26 = arith.constant 2.500000e-01 : f32
    %30 = vector.broadcast %cst_26 : f32 to vector<64x64xf32>
    %31 = arith.mulf %29, %30 : vector<64x64xf32>
    %32 = arith.addf %31, %4 : vector<64x64xf32>
    %cst_27 = arith.constant dense<0xFF800000> : vector<64xf32>
    %33 = vector.multi_reduction <maximumf>, %32, %cst_27 [1] : vector<64x64xf32> to vector<64xf32>
    %34 = vector.shape_cast %33 : vector<64xf32> to vector<64x1xf32>
    %35 = vector.broadcast %34 : vector<64x1xf32> to vector<64x64xf32>
    %36 = arith.subf %32, %35 : vector<64x64xf32>
    %37 = math.exp %36 : vector<64x64xf32>
    %cst_28 = arith.constant dense<0.000000e+00> : vector<64xf32>
    %38 = vector.multi_reduction <add>, %37, %cst_28 [1] : vector<64x64xf32> to vector<64xf32>
    %39 = vector.shape_cast %38 : vector<64xf32> to vector<64x1xf32>
    %40 = tpu.reciprocal %39 {approx = true} : vector<64x1xf32> -> vector<64x1xf32>
    %41 = vector.broadcast %40 : vector<64x1xf32> to vector<64x64xf32>
    %42 = arith.mulf %37, %41 : vector<64x64xf32>
    %43 = arith.truncf %42 : vector<64x64xf32> to vector<64x64xbf16>
    %44 = arith.truncf %26 : vector<64x16xf32> to vector<64x16xbf16>
    %cst_29 = arith.constant dense<0.000000e+00> : vector<64x16xf32>
    %45 = tpu.matmul %43, %44, %cst_29 {dimension_numbers = #tpu.dot_dimension_numbers<[1], [0], [0], [1], [0, 0, 1, 1], [], []>} : vector<64x64xbf16>, vector<64x16xbf16>, vector<64x16xf32> -> vector<64x16xf32>
    %46 = arith.truncf %45 : vector<64x16xf32> to vector<64x16xbf16>
    %c0_30 = arith.constant 0 : index
    %c0_31 = arith.constant 0 : index
    %c0_32 = arith.constant 0 : index
    %47 = vector.load %arg9[%c0_30, %c0_31, %c0_32] : memref<2x16x32xbf16, #tpu.memory_space<vmem>>, vector<1x16x32xbf16>
    %48 = vector.shape_cast %47 : vector<1x16x32xbf16> to vector<16x32xbf16>
    %cst_33 = arith.constant dense<0.000000e+00> : vector<64x32xf32>
    %49 = tpu.matmul %46, %48, %cst_33 {dimension_numbers = #tpu.dot_dimension_numbers<[1], [0], [0], [1], [0, 0, 1, 1], [], []>} : vector<64x16xbf16>, vector<16x32xbf16>, vector<64x32xf32> -> vector<64x32xf32>
    %50 = arith.addf %5, %49 : vector<64x32xf32>
    %c1 = arith.constant 1 : index
    %c0_34 = arith.constant 0 : index
    %c0_35 = arith.constant 0 : index
    %51 = vector.load %arg3[%c1, %c0_34, %c0_35] : memref<2x32x16xbf16, #tpu.memory_space<vmem>>, vector<1x32x16xbf16>
    %52 = vector.shape_cast %51 : vector<1x32x16xbf16> to vector<32x16xbf16>
    %cst_36 = arith.constant dense<0.000000e+00> : vector<64x16xf32>
    %53 = tpu.matmul %3, %52, %cst_36 {dimension_numbers = #tpu.dot_dimension_numbers<[1], [0], [0], [1], [0, 0, 1, 1], [], []>} : vector<64x32xbf16>, vector<32x16xbf16>, vector<64x16xf32> -> vector<64x16xf32>
    %c1_37 = arith.constant 1 : index
    %c0_38 = arith.constant 0 : index
    %c0_39 = arith.constant 0 : index
    %54 = vector.load %arg6[%c1_37, %c0_38, %c0_39] : memref<2x1x16xf32, #tpu.memory_space<vmem>>, vector<1x1x16xf32>
    %55 = vector.shape_cast %54 : vector<1x1x16xf32> to vector<1x16xf32>
    %56 = vector.broadcast %55 : vector<1x16xf32> to vector<64x16xf32>
    %57 = arith.addf %53, %56 : vector<64x16xf32>
    %c1_40 = arith.constant 1 : index
    %c0_41 = arith.constant 0 : index
    %c0_42 = arith.constant 0 : index
    %58 = vector.load %arg4[%c1_40, %c0_41, %c0_42] : memref<2x32x16xbf16, #tpu.memory_space<vmem>>, vector<1x32x16xbf16>
    %59 = vector.shape_cast %58 : vector<1x32x16xbf16> to vector<32x16xbf16>
    %cst_43 = arith.constant dense<0.000000e+00> : vector<64x16xf32>
    %60 = tpu.matmul %3, %59, %cst_43 {dimension_numbers = #tpu.dot_dimension_numbers<[1], [0], [0], [1], [0, 0, 1, 1], [], []>} : vector<64x32xbf16>, vector<32x16xbf16>, vector<64x16xf32> -> vector<64x16xf32>
    %c1_44 = arith.constant 1 : index
    %c0_45 = arith.constant 0 : index
    %c0_46 = arith.constant 0 : index
    %61 = vector.load %arg7[%c1_44, %c0_45, %c0_46] : memref<2x1x16xf32, #tpu.memory_space<vmem>>, vector<1x1x16xf32>
    %62 = vector.shape_cast %61 : vector<1x1x16xf32> to vector<1x16xf32>
    %63 = vector.broadcast %62 : vector<1x16xf32> to vector<64x16xf32>
    %64 = arith.addf %60, %63 : vector<64x16xf32>
    %c1_47 = arith.constant 1 : index
    %c0_48 = arith.constant 0 : index
    %c0_49 = arith.constant 0 : index
    %65 = vector.load %arg5[%c1_47, %c0_48, %c0_49] : memref<2x32x16xbf16, #tpu.memory_space<vmem>>, vector<1x32x16xbf16>
    %66 = vector.shape_cast %65 : vector<1x32x16xbf16> to vector<32x16xbf16>
    %cst_50 = arith.constant dense<0.000000e+00> : vector<64x16xf32>
    %67 = tpu.matmul %3, %66, %cst_50 {dimension_numbers = #tpu.dot_dimension_numbers<[1], [0], [0], [1], [0, 0, 1, 1], [], []>} : vector<64x32xbf16>, vector<32x16xbf16>, vector<64x16xf32> -> vector<64x16xf32>
    %c1_51 = arith.constant 1 : index
    %c0_52 = arith.constant 0 : index
    %c0_53 = arith.constant 0 : index
    %68 = vector.load %arg8[%c1_51, %c0_52, %c0_53] : memref<2x1x16xf32, #tpu.memory_space<vmem>>, vector<1x1x16xf32>
    %69 = vector.shape_cast %68 : vector<1x1x16xf32> to vector<1x16xf32>
    %70 = vector.broadcast %69 : vector<1x16xf32> to vector<64x16xf32>
    %71 = arith.addf %67, %70 : vector<64x16xf32>
    %72 = arith.truncf %57 : vector<64x16xf32> to vector<64x16xbf16>
    %73 = arith.truncf %64 : vector<64x16xf32> to vector<64x16xbf16>
    %cst_54 = arith.constant dense<0.000000e+00> : vector<64x64xf32>
    %74 = tpu.matmul %72, %73, %cst_54 {dimension_numbers = #tpu.dot_dimension_numbers<[1], [1], [0], [0], [0, 0, 1, 0], [], []>} : vector<64x16xbf16>, vector<64x16xbf16>, vector<64x64xf32> -> vector<64x64xf32>
    %cst_55 = arith.constant 2.500000e-01 : f32
    %75 = vector.broadcast %cst_55 : f32 to vector<64x64xf32>
    %76 = arith.mulf %74, %75 : vector<64x64xf32>
    %77 = arith.addf %76, %4 : vector<64x64xf32>
    %cst_56 = arith.constant dense<0xFF800000> : vector<64xf32>
    %78 = vector.multi_reduction <maximumf>, %77, %cst_56 [1] : vector<64x64xf32> to vector<64xf32>
    %79 = vector.shape_cast %78 : vector<64xf32> to vector<64x1xf32>
    %80 = vector.broadcast %79 : vector<64x1xf32> to vector<64x64xf32>
    %81 = arith.subf %77, %80 : vector<64x64xf32>
    %82 = math.exp %81 : vector<64x64xf32>
    %cst_57 = arith.constant dense<0.000000e+00> : vector<64xf32>
    %83 = vector.multi_reduction <add>, %82, %cst_57 [1] : vector<64x64xf32> to vector<64xf32>
    %84 = vector.shape_cast %83 : vector<64xf32> to vector<64x1xf32>
    %85 = tpu.reciprocal %84 {approx = true} : vector<64x1xf32> -> vector<64x1xf32>
    %86 = vector.broadcast %85 : vector<64x1xf32> to vector<64x64xf32>
    %87 = arith.mulf %82, %86 : vector<64x64xf32>
    %88 = arith.truncf %87 : vector<64x64xf32> to vector<64x64xbf16>
    %89 = arith.truncf %71 : vector<64x16xf32> to vector<64x16xbf16>
    %cst_58 = arith.constant dense<0.000000e+00> : vector<64x16xf32>
    %90 = tpu.matmul %88, %89, %cst_58 {dimension_numbers = #tpu.dot_dimension_numbers<[1], [0], [0], [1], [0, 0, 1, 1], [], []>} : vector<64x64xbf16>, vector<64x16xbf16>, vector<64x16xf32> -> vector<64x16xf32>
    %91 = arith.truncf %90 : vector<64x16xf32> to vector<64x16xbf16>
    %c1_59 = arith.constant 1 : index
    %c0_60 = arith.constant 0 : index
    %c0_61 = arith.constant 0 : index
    %92 = vector.load %arg9[%c1_59, %c0_60, %c0_61] : memref<2x16x32xbf16, #tpu.memory_space<vmem>>, vector<1x16x32xbf16>
    %93 = vector.shape_cast %92 : vector<1x16x32xbf16> to vector<16x32xbf16>
    %cst_62 = arith.constant dense<0.000000e+00> : vector<64x32xf32>
    %94 = tpu.matmul %91, %93, %cst_62 {dimension_numbers = #tpu.dot_dimension_numbers<[1], [0], [0], [1], [0, 0, 1, 1], [], []>} : vector<64x16xbf16>, vector<16x32xbf16>, vector<64x32xf32> -> vector<64x32xf32>
    %95 = arith.addf %50, %94 : vector<64x32xf32>
    %c0_63 = arith.constant 0 : index
    %c0_64 = arith.constant 0 : index
    %96 = vector.load %arg10[%c0_63, %c0_64] : memref<1x32xf32, #tpu.memory_space<vmem>>, vector<1x32xf32>
    %97 = vector.broadcast %96 : vector<1x32xf32> to vector<64x32xf32>
    %98 = arith.addf %95, %97 : vector<64x32xf32>
    %99 = arith.addf %2, %98 : vector<64x32xf32>
    %c0_65 = arith.constant 0 : index
    %c0_66 = arith.constant 0 : index
    %100 = vector.load %arg15[%c0_65, %c0_66] : memref<1x32xf32, #tpu.memory_space<vmem>>, vector<1x32xf32>
    %c0_67 = arith.constant 0 : index
    %c0_68 = arith.constant 0 : index
    %101 = vector.load %arg16[%c0_67, %c0_68] : memref<1x32xf32, #tpu.memory_space<vmem>>, vector<1x32xf32>
    %cst_69 = arith.constant dense<0.000000e+00> : vector<64xf32>
    %102 = vector.multi_reduction <add>, %99, %cst_69 [1] : vector<64x32xf32> to vector<64xf32>
    %103 = vector.shape_cast %102 : vector<64xf32> to vector<64x1xf32>
    %cst_70 = arith.constant 3.200000e+01 : f32
    %104 = vector.broadcast %cst_70 : f32 to vector<64x1xf32>
    %105 = arith.divf %103, %104 : vector<64x1xf32>
    %106 = vector.broadcast %105 : vector<64x1xf32> to vector<64x32xf32>
    %107 = arith.subf %99, %106 : vector<64x32xf32>
    %108 = arith.mulf %107, %107 : vector<64x32xf32>
    %cst_71 = arith.constant dense<0.000000e+00> : vector<64xf32>
    %109 = vector.multi_reduction <add>, %108, %cst_71 [1] : vector<64x32xf32> to vector<64xf32>
    %110 = vector.shape_cast %109 : vector<64xf32> to vector<64x1xf32>
    %cst_72 = arith.constant 3.200000e+01 : f32
    %111 = vector.broadcast %cst_72 : f32 to vector<64x1xf32>
    %112 = arith.divf %110, %111 : vector<64x1xf32>
    %113 = vector.broadcast %105 : vector<64x1xf32> to vector<64x32xf32>
    %114 = arith.subf %99, %113 : vector<64x32xf32>
    %cst_73 = arith.constant 9.99999974E-6 : f32
    %115 = vector.broadcast %cst_73 : f32 to vector<64x1xf32>
    %116 = arith.addf %112, %115 : vector<64x1xf32>
    %117 = math.rsqrt %116 : vector<64x1xf32>
    %118 = vector.broadcast %117 : vector<64x1xf32> to vector<64x32xf32>
    %119 = arith.mulf %114, %118 : vector<64x32xf32>
    %120 = vector.broadcast %100 : vector<1x32xf32> to vector<64x32xf32>
    %121 = arith.mulf %119, %120 : vector<64x32xf32>
    %122 = vector.broadcast %101 : vector<1x32xf32> to vector<64x32xf32>
    %123 = arith.addf %121, %122 : vector<64x32xf32>
    %124 = arith.truncf %123 : vector<64x32xf32> to vector<64x32xbf16>
    %c0_74 = arith.constant 0 : index
    %c0_75 = arith.constant 0 : index
    %125 = vector.load %arg11[%c0_74, %c0_75] : memref<32x128xbf16, #tpu.memory_space<vmem>>, vector<32x128xbf16>
    %cst_76 = arith.constant dense<0.000000e+00> : vector<64x128xf32>
    %126 = tpu.matmul %124, %125, %cst_76 {dimension_numbers = #tpu.dot_dimension_numbers<[1], [0], [0], [1], [0, 0, 1, 1], [], []>} : vector<64x32xbf16>, vector<32x128xbf16>, vector<64x128xf32> -> vector<64x128xf32>
    %c0_77 = arith.constant 0 : index
    %c0_78 = arith.constant 0 : index
    %127 = vector.load %arg12[%c0_77, %c0_78] : memref<1x128xf32, #tpu.memory_space<vmem>>, vector<1x128xf32>
    %128 = vector.broadcast %127 : vector<1x128xf32> to vector<64x128xf32>
    %129 = arith.addf %126, %128 : vector<64x128xf32>
    %cst_79 = arith.constant 0.000000e+00 : f32
    %130 = vector.broadcast %cst_79 : f32 to vector<64x128xf32>
    %131 = arith.maximumf %129, %130 : vector<64x128xf32>
    %132 = arith.truncf %131 : vector<64x128xf32> to vector<64x128xbf16>
    %c0_80 = arith.constant 0 : index
    %c0_81 = arith.constant 0 : index
    %133 = vector.load %arg13[%c0_80, %c0_81] : memref<128x32xbf16, #tpu.memory_space<vmem>>, vector<128x32xbf16>
    %cst_82 = arith.constant dense<0.000000e+00> : vector<64x32xf32>
    %134 = tpu.matmul %132, %133, %cst_82 {dimension_numbers = #tpu.dot_dimension_numbers<[1], [0], [0], [1], [0, 0, 1, 1], [], []>} : vector<64x128xbf16>, vector<128x32xbf16>, vector<64x32xf32> -> vector<64x32xf32>
    %c0_83 = arith.constant 0 : index
    %c0_84 = arith.constant 0 : index
    %135 = vector.load %arg14[%c0_83, %c0_84] : memref<1x32xf32, #tpu.memory_space<vmem>>, vector<1x32xf32>
    %136 = vector.broadcast %135 : vector<1x32xf32> to vector<64x32xf32>
    %137 = arith.addf %134, %136 : vector<64x32xf32>
    %138 = arith.addf %123, %137 : vector<64x32xf32>
    %c0_85 = arith.constant 0 : index
    %c0_86 = arith.constant 0 : index
    %139 = vector.load %arg17[%c0_85, %c0_86] : memref<1x32xf32, #tpu.memory_space<vmem>>, vector<1x32xf32>
    %c0_87 = arith.constant 0 : index
    %c0_88 = arith.constant 0 : index
    %140 = vector.load %arg18[%c0_87, %c0_88] : memref<1x32xf32, #tpu.memory_space<vmem>>, vector<1x32xf32>
    %cst_89 = arith.constant dense<0.000000e+00> : vector<64xf32>
    %141 = vector.multi_reduction <add>, %138, %cst_89 [1] : vector<64x32xf32> to vector<64xf32>
    %142 = vector.shape_cast %141 : vector<64xf32> to vector<64x1xf32>
    %cst_90 = arith.constant 3.200000e+01 : f32
    %143 = vector.broadcast %cst_90 : f32 to vector<64x1xf32>
    %144 = arith.divf %142, %143 : vector<64x1xf32>
    %145 = vector.broadcast %144 : vector<64x1xf32> to vector<64x32xf32>
    %146 = arith.subf %138, %145 : vector<64x32xf32>
    %147 = arith.mulf %146, %146 : vector<64x32xf32>
    %cst_91 = arith.constant dense<0.000000e+00> : vector<64xf32>
    %148 = vector.multi_reduction <add>, %147, %cst_91 [1] : vector<64x32xf32> to vector<64xf32>
    %149 = vector.shape_cast %148 : vector<64xf32> to vector<64x1xf32>
    %cst_92 = arith.constant 3.200000e+01 : f32
    %150 = vector.broadcast %cst_92 : f32 to vector<64x1xf32>
    %151 = arith.divf %149, %150 : vector<64x1xf32>
    %152 = vector.broadcast %144 : vector<64x1xf32> to vector<64x32xf32>
    %153 = arith.subf %138, %152 : vector<64x32xf32>
    %cst_93 = arith.constant 9.99999974E-6 : f32
    %154 = vector.broadcast %cst_93 : f32 to vector<64x1xf32>
    %155 = arith.addf %151, %154 : vector<64x1xf32>
    %156 = math.rsqrt %155 : vector<64x1xf32>
    %157 = vector.broadcast %156 : vector<64x1xf32> to vector<64x32xf32>
    %158 = arith.mulf %153, %157 : vector<64x32xf32>
    %159 = vector.broadcast %139 : vector<1x32xf32> to vector<64x32xf32>
    %160 = arith.mulf %158, %159 : vector<64x32xf32>
    %161 = vector.broadcast %140 : vector<1x32xf32> to vector<64x32xf32>
    %162 = arith.addf %160, %161 : vector<64x32xf32>
    %c0_94 = arith.constant 0 : index
    %c0_95 = arith.constant 0 : index
    %163 = vector.load %arg19[%c0_94, %c0_95] : memref<64x32xf32, #tpu.memory_space<vmem>>, vector<64x32xf32>
    tpu.vector_store %arg19[%c0_94, %c0_95], %162 {strides = array<i32>} : memref<64x32xf32, #tpu.memory_space<vmem>>, vector<64x32xf32>,
    return
  }
  func.func @transform_0(%arg0: i32) -> (i32, i32) {
    %c0_i32 = arith.constant 0 : i32
    %c0_i32_0 = arith.constant 0 : i32
    return %arg0, %c0_i32 : i32, i32
  }
  func.func @transform_1(%arg0: i32) -> (i32, i32) {
    %c0_i32 = arith.constant 0 : i32
    %c0_i32_0 = arith.constant 0 : i32
    %c0_i32_1 = arith.constant 0 : i32
    return %c0_i32, %c0_i32_0 : i32, i32
  }
  func.func @transform_2(%arg0: i32) -> (i32, i32, i32) {
    %c0_i32 = arith.constant 0 : i32
    %c0_i32_0 = arith.constant 0 : i32
    %c0_i32_1 = arith.constant 0 : i32
    %c0_i32_2 = arith.constant 0 : i32
    return %c0_i32, %c0_i32_0, %c0_i32_1 : i32, i32, i32
  }
  func.func @transform_3(%arg0: i32) -> (i32, i32, i32) {
    %c0_i32 = arith.constant 0 : i32
    %c0_i32_0 = arith.constant 0 : i32
    %c0_i32_1 = arith.constant 0 : i32
    %c0_i32_2 = arith.constant 0 : i32
    return %c0_i32, %c0_i32_0, %c0_i32_1 : i32, i32, i32
  }
  func.func @transform_4(%arg0: i32) -> (i32, i32, i32) {
    %c0_i32 = arith.constant 0 : i32
    %c0_i32_0 = arith.constant 0 : i32
    %c0_i32_1 = arith.constant 0 : i32
    %c0_i32_2 = arith.constant 0 : i32
    return %c0_i32, %c0_i32_0, %c0_i32_1 : i32, i32, i32
  }
  func.func @transform_5(%arg0: i32) -> (i32, i32, i32) {
    %c0_i32 = arith.constant 0 : i32
    %c0_i32_0 = arith.constant 0 : i32
    %c0_i32_1 = arith.constant 0 : i32
    %c0_i32_2 = arith.constant 0 : i32
    return %c0_i32, %c0_i32_0, %c0_i32_1 : i32, i32, i32
  }
  func.func @transform_6(%arg0: i32) -> (i32, i32, i32) {
    %c0_i32 = arith.constant 0 : i32
    %c0_i32_0 = arith.constant 0 : i32
    %c0_i32_1 = arith.constant 0 : i32
    %c0_i32_2 = arith.constant 0 : i32
    return %c0_i32, %c0_i32_0, %c0_i32_1 : i32, i32, i32
  }
  func.func @transform_7(%arg0: i32) -> (i32, i32, i32) {
    %c0_i32 = arith.constant 0 : i32
    %c0_i32_0 = arith.constant 0 : i32
    %c0_i32_1 = arith.constant 0 : i32
    %c0_i32_2 = arith.constant 0 : i32
    return %c0_i32, %c0_i32_0, %c0_i32_1 : i32, i32, i32
  }
  func.func @transform_8(%arg0: i32) -> (i32, i32, i32) {
    %c0_i32 = arith.constant 0 : i32
    %c0_i32_0 = arith.constant 0 : i32
    %c0_i32_1 = arith.constant 0 : i32
    %c0_i32_2 = arith.constant 0 : i32
    return %c0_i32, %c0_i32_0, %c0_i32_1 : i32, i32, i32
  }
  func.func @transform_9(%arg0: i32) -> (i32, i32) {
    %c0_i32 = arith.constant 0 : i32
    %c0_i32_0 = arith.constant 0 : i32
    %c0_i32_1 = arith.constant 0 : i32
    return %c0_i32, %c0_i32_0 : i32, i32
  }
  func.func @transform_10(%arg0: i32) -> (i32, i32) {
    %c0_i32 = arith.constant 0 : i32
    %c0_i32_0 = arith.constant 0 : i32
    %c0_i32_1 = arith.constant 0 : i32
    return %c0_i32, %c0_i32_0 : i32, i32
  }
  func.func @transform_11(%arg0: i32) -> (i32, i32) {
    %c0_i32 = arith.constant 0 : i32
    %c0_i32_0 = arith.constant 0 : i32
    %c0_i32_1 = arith.constant 0 : i32
    return %c0_i32, %c0_i32_0 : i32, i32
  }
  func.func @transform_12(%arg0: i32) -> (i32, i32) {
    %c0_i32 = arith.constant 0 : i32
    %c0_i32_0 = arith.constant 0 : i32
    %c0_i32_1 = arith.constant 0 : i32
    return %c0_i32, %c0_i32_0 : i32, i32
  }
  func.func @transform_13(%arg0: i32) -> (i32, i32) {
    %c0_i32 = arith.constant 0 : i32
    %c0_i32_0 = arith.constant 0 : i32
    %c0_i32_1 = arith.constant 0 : i32
    return %c0_i32, %c0_i32_0 : i32, i32
  }
  func.func @transform_14(%arg0: i32) -> (i32, i32) {
    %c0_i32 = arith.constant 0 : i32
    %c0_i32_0 = arith.constant 0 : i32
    %c0_i32_1 = arith.constant 0 : i32
    return %c0_i32, %c0_i32_0 : i32, i32
  }
  func.func @transform_15(%arg0: i32) -> (i32, i32) {
    %c0_i32 = arith.constant 0 : i32
    %c0_i32_0 = arith.constant 0 : i32
    %c0_i32_1 = arith.constant 0 : i32
    return %c0_i32, %c0_i32_0 : i32, i32
  }
  func.func @transform_16(%arg0: i32) -> (i32, i32) {
    %c0_i32 = arith.constant 0 : i32
    %c0_i32_0 = arith.constant 0 : i32
    %c0_i32_1 = arith.constant 0 : i32
    return %c0_i32, %c0_i32_0 : i32, i32
  }
  func.func @transform_17(%arg0: i32) -> (i32, i32) {
    %c0_i32 = arith.constant 0 : i32
    %c0_i32_0 = arith.constant 0 : i32
    %c0_i32_1 = arith.constant 0 : i32
    return %c0_i32, %c0_i32_0 : i32, i32
  }
  func.func @transform_18(%arg0: i32) -> (i32, i32) {
    %c0_i32 = arith.constant 0 : i32
    %c0_i32_0 = arith.constant 0 : i32
    return %arg0, %c0_i32 : i32, i32
  }
}

</mosaic_0001>

<bundles_post_ra>
// kernel: tsformer_forward.9
= control target key start
LH: loop header
LB: loop body
LE: loop exit
PB: predicated region body
PF: predicated region fallthrough
CT: control target
= control target key end

     0   :  { %vm27_vm0 = vcmask 261120   ;;  %s301_s0 = inlined_call_operand.vmem [shape: f32[32,32], index: 0, kind: input, shape index: {}]   ;;  %s302_s3 = inlined_call_operand.vmem [shape: bf16[32,32], index: 3, kind: input, shape index: {}]   ;;  %s303_s1 = inlined_call_operand.vmem [shape: f32[1,32], index: 1, kind: input, shape index: {}]   ;;  %s304_s2 = inlined_call_operand.vmem [shape: f32[1,32], index: 2, kind: input, shape index: {}]   ;;  %s305_s4 = inlined_call_operand.vmem [shape: f32[1,32], index: 4, kind: input, shape index: {}]   ;;  %s306_s5 = inlined_call_operand.vmem [shape: f32[32,32], index: 5, kind: output, shape index: {}]  }
   0x1   :  { %v21_v0 = vld [vmem:[%s301_s0] sm:$0xff]  ;;  %v23_v1 = vld [vmem:[%s301_s0 + $0x10] sm:$0xff]  ;;  %v22_v2 = vld [vmem:[%s301_s0 + $0x8] sm:$0xff] }
   0x2   :  { %v28_v3 = vsel %vm27_vm0, %v21_v0, 0.0  ;;  %v34_v4 = vsel %vm27_vm0, %v23_v1, 0.0  ;;  %v24_v5 = vld [vmem:[%s301_s0 + $0x18] sm:$0xff]  ;;  %v31_v6 = vsel %vm27_vm0, %v22_v2, 0.0  ;;  %v208_v28 = vld [vmem:[%s302_s3] sm:$0xff]   ;;  %v209_v29 = vld [vmem:[%s302_s3 + $0x8] sm:$0xff]  }
   0x3   :  { %29 = vadd.xlane.f32.xlu0 %v28_v3  ;;  %35 = vadd.xlane.f32.xlu1 %v34_v4  ;;  %v37_v7 = vsel %vm27_vm0, %v24_v5, 0.0  ;;  %v189_v44 = vld [vmem:[%s303_s1] ss:$0 sm:$0xff] }
   0x4   :  { %200 = vmatprep.subr.bf16.mxu0 %v208_v28  ;;  %v190_v50 = vld [vmem:[%s304_s2] ss:$0 sm:$0xff] }
   0x5   :  { %201 = vmatpush3.bf16.msra.mxu0 %v208_v28  ;;  %v191_v62 = vld [vmem:[%s305_s4] ss:$0 sm:$0xff] }
   0x6   :  { %202 = vmatprep.subr.bf16.mxu0 %v209_v29 }
   0x7   :  { %32 = vadd.xlane.f32.xlu0 %v31_v6  ;;  %38 = vadd.xlane.f32.xlu1 %v37_v7 }
   0x9   :  { %203 = vmatpush3.bf16.msra.mxu0 %v209_v29 }
  0x90   :  { %v30_v8 = vpop.xlane.xlu0 %29  ;;  %v36_v9 = vpop.xlane.xlu1 %35 }
  0x91   :  { %v41_v10 = vmul.f32 0.03125, %v30_v8  ;;  %v43_v11 = vmul.f32 0.03125, %v36_v9 }
  0x93   :  { %v45_v12 = vsub.f32 %v21_v0, %v41_v10  ;;  %v47_v13 = vsub.f32 %v23_v1, %v43_v11 }
  0x94   :  { %v33_v14 = vpop.xlane.xlu0 %32  ;;  %v39_v15 = vpop.xlane.xlu1 %38 }
  0x95   :  { %v42_v16 = vmul.f32 0.03125, %v33_v14  ;;  %v44_v17 = vmul.f32 0.03125, %v39_v15  ;;  %v49_v18 = vmul.f32 %v45_v12, %v45_v12  ;;  %v51_v19 = vmul.f32 %v47_v13, %v47_v13 }
  0x97   :  { %v46_v20 = vsub.f32 %v22_v2, %v42_v16  ;;  %v48_v21 = vsub.f32 %v24_v5, %v44_v17  ;;  %v53_v22 = vsel %vm27_vm0, %v49_v18, 0.0  ;;  %v59_v23 = vsel %vm27_vm0, %v51_v19, 0.0 }
  0x98   :  { %54 = vadd.xlane.f32.xlu0 %v53_v22 }
  0x99   :  { %v50_v24 = vmul.f32 %v46_v20, %v46_v20  ;;  %v52_v25 = vmul.f32 %v48_v21, %v48_v21 }
  0x9b   :  { %v56_v26 = vsel %vm27_vm0, %v50_v24, 0.0  ;;  %v62_v27 = vsel %vm27_vm0, %v52_v25, 0.0 }
  0x9c   :  { %60 = vadd.xlane.f32.xlu0 %v59_v23  ;;  %57 = vadd.xlane.f32.xlu1 %v56_v26 }
  0xa0   :  { %63 = vadd.xlane.f32.xlu1 %v62_v27 }
 0x125   :  { %v55_v30 = vpop.xlane.xlu0 %54 }
 0x126   :  { %v65_v31 = vmul.f32 0.03125, %v55_v30 }
 0x128   :  { %v69_v32 = vadd.f32 1e-05, %v65_v31 }
 0x129   :  { %v58_v33 = vpop.xlane.xlu1 %57  ;;  %v61_v34 = vpop.xlane.xlu0 %60 }
 0x12a   :  { %210 = vrsqrt.f32 %v69_v32  ;;  %v66_v35 = vmul.f32 0.03125, %v58_v33  ;;  %v67_v36 = vmul.f32 0.03125, %v61_v34 }
 0x12c   :  { %v70_v37 = vadd.f32 1e-05, %v66_v35  ;;  %v71_v38 = vadd.f32 1e-05, %v67_v36 }
 0x12d   :  { %v64_v39 = vpop.xlane.xlu1 %63 }
 0x12e   :  { %212 = vrsqrt.f32 %v70_v37  ;;  %v68_v40 = vmul.f32 0.03125, %v64_v39 }
 0x12f   :  { %214 = vrsqrt.f32 %v71_v38 }
 0x130   :  { %v72_v41 = vadd.f32 1e-05, %v68_v40 }
 0x132   :  { %216 = vrsqrt.f32 %v72_v41 }
 0x134   :  { %v211_v42 = vpop.eup %210 }
 0x135   :  { %v77_v43 = vmul.f32 %v211_v42, %v45_v12 }
 0x137   :  { %v87_v48 = vmul.f32 %v189_v44, %v77_v43 }
 0x138   :  { %v213_v45 = vpop.eup %212 }
 0x139   :  { %v215_v46 = vpop.eup %214  ;;  %v78_v47 = vmul.f32 %v213_v45, %v46_v20  ;;  %v97_v54 = vadd.f32 %v190_v50, %v87_v48 }
 0x13a   :  { %v79_v49 = vmul.f32 %v215_v46, %v47_v13 }
 0x13b   :  { %v88_v51 = vmul.f32 %v189_v44, %v78_v47 }
 0x13c   :  { %v217_v52 = vpop.eup %216  ;;  %v89_v56 = vmul.f32 %v189_v44, %v79_v49 }
 0x13d   :  { %v80_v53 = vmul.f32 %v217_v52, %v48_v21  ;;  %v98_v55 = vadd.f32 %v190_v50, %v88_v51 }
 0x13e   :  { %v99_v59 = vadd.f32 %v190_v50, %v89_v56 }
 0x13f   :  { %v101_v57 = vpack.c.bf16 %v98_v55, %v97_v54  ;;  %v90_v58 = vmul.f32 %v189_v44, %v80_v53 }
 0x141   :  { %204 = vmatprep.mubr.msk.bf16.mxu0 %vm27_vm0, %v101_v57  ;;  %v100_v60 = vadd.f32 %v190_v50, %v90_v58 }
 0x143   :  { %v102_v61 = vpack.c.bf16 %v100_v60, %v99_v59 }
 0x145   :  { %205 = vmatmul.mubr.msk.bf16.vlgmr.msra.gmra.mrb[0].mxu0 %vm27_vm0, %v102_v61 }
 0x218   :  { %v206_v63 = vpop.f32.mrb[0].mxu0 }
 0x219   :  { %v175_v0 = vadd.f32 %v206_v63, %v191_v62  ;;  %v166_v1 = vpop.f32.mrb[1].mxu0 }
 0x21a   :  { %v167_v2 = vadd.f32 %v191_v62, %v166_v1  ;;  %v207_v3 = vpop.f32.mrb[2].mxu0 }
 0x21b   :  { %183 = vst.msk [vmem:[%s306_s5 + $0x10] sm:$0xff] %vm27_vm0, %v175_v0  ;;  %v178_v4 = vadd.f32 %v207_v3, %v191_v62  ;;  %v169_v5 = vpop.f32.mrb[3].mxu0 }
 0x21c   :  { %181 = vst.msk [vmem:[%s306_s5] sm:$0xff] %vm27_vm0, %v167_v2  ;;  %v170_v6 = vadd.f32 %v191_v62, %v169_v5 }
 0x21d   :  { %184 = vst.msk [vmem:[%s306_s5 + $0x18] sm:$0xff] %vm27_vm0, %v178_v4 }
 0x21e   :  { %182 = vst.msk [vmem:[%s306_s5 + $0x8] sm:$0xff] %vm27_vm0, %v170_v6 }

// kernel: tsformer_forward.6
= control target key start
LH: loop header
LB: loop body
LE: loop exit
PB: predicated region body
PF: predicated region fallthrough
CT: control target
= control target key end

     0   :  { %vm51_vm0 = vcmask 1041408   ;;  %vm38_vm1 = vcmask 31744   ;;  %vm136_vm2 = vcmask 261120   ;;  %s288_s1 = inlined_call_operand.vmem [shape: bf16[4,32], index: 1, kind: input, shape index: {}]   ;;  %s289_s0 = inlined_call_operand.vmem [shape: f32[64,4], index: 0, kind: input, shape index: {}]   ;;  %s290_s2 = inlined_call_operand.vmem [shape: f32[1,32], index: 2, kind: input, shape index: {}]   ;;  %s291_s3 = inlined_call_operand.vmem [shape: f32[64,32], index: 3, kind: input, shape index: {}]   ;;  %s292_s4 = inlined_call_operand.vmem [shape: f32[64,32], index: 4, kind: output, shape index: {}]  }
   0x1   :  { %v30_v0 = vld [vmem:[%s288_s1] sm:$0x3]  ;;  %v19_v2 = vld [vmem:[%s289_s0 + $0x8] sm:$0xff]  ;;  %v20_v7 = vld [vmem:[%s289_s0 + $0x10] sm:$0xff] }
   0x2   :  { %v18_v1 = vld [vmem:[%s289_s0] sm:$0xff]  ;;  %171 = vmatprep.subr.msk.bf16.mxu0 %vm51_vm0, %v30_v0  ;;  %172 = vmatprep.subr.msk.bf16.mxu1 %vm51_vm0, %v30_v0  ;;  %v53_v3 = vsel %vm51_vm0, %v30_v0, 0  ;;  %v23_v6 = vld [vmem:[%s289_s0 + $0x28] sm:$0xff]  ;;  %v21_v9 = vld [vmem:[%s289_s0 + $0x18] sm:$0xff] }
   0x3   :  { %v26_v4 = vpack.c.bf16 %v19_v2, %v18_v1  ;;  %v22_v5 = vld [vmem:[%s289_s0 + $0x20] sm:$0xff]  ;;  %160 = vmatpush3.bf16.msra.mxu0 %v53_v3  ;;  %170 = vmatpush3.bf16.msra.mxu1 %v53_v3  ;;  %v24_v10 = vld [vmem:[%s289_s0 + $0x30] sm:$0xff]  ;;  %v25_v11 = vld [vmem:[%s289_s0 + $0x38] sm:$0xff]  ;;  %v27_v12 = vpack.c.bf16 %v21_v9, %v20_v7 }
   0x4   :  { %v28_v8 = vpack.c.bf16 %v23_v6, %v22_v5  ;;  %v29_v13 = vpack.c.bf16 %v25_v11, %v24_v10  ;;  %v149_v14 = vld [vmem:[%s290_s2] ss:$0 sm:$0xff]  ;;  %v122_v16 = vld [vmem:[%s291_s3 + $0x10] sm:$0xff]  ;;  %v123_v28 = vld [vmem:[%s291_s3 + $0x18] sm:$0xff] }
   0x5   :  { %161 = vmatprep.mubr.msk.bf16.mxu0 %vm38_vm1, %v26_v4  ;;  %v126_v18 = vld [vmem:[%s291_s3 + $0x30] sm:$0xff]  ;;  %v120_v22 = vld [vmem:[%s291_s3] sm:$0xff]  ;;  %v127_v30 = vld [vmem:[%s291_s3 + $0x38] sm:$0xff] }
   0x6   :  { %165 = vmatprep.mubr.msk.bf16.mxu1 %vm38_vm1, %v28_v8  ;;  %162 = vmatmul.mubr.msk.bf16.vlgmr.msra.gmra.mrb[0].mxu0 %vm38_vm1, %v27_v12  ;;  %v124_v24 = vld [vmem:[%s291_s3 + $0x20] sm:$0xff]  ;;  %v121_v36 = vld [vmem:[%s291_s3 + $0x8] sm:$0xff] }
   0x7   :  { %166 = vmatmul.mubr.msk.bf16.vlgmr.msra.gmra.mrb[0].mxu1 %vm38_vm1, %v29_v13  ;;  %v125_v38 = vld [vmem:[%s291_s3 + $0x28] sm:$0xff] }
  0xd9   :  { %v163_v15 = vpop.f32.mrb[0].mxu0 }
  0xda   :  { %v167_v17 = vpop.f32.mrb[0].mxu1  ;;  %v98_v19 = vadd.f32 %v163_v15, %v149_v14  ;;  %v89_v21 = vpop.f32.mrb[1].mxu0 }
  0xdb   :  { %v114_v20 = vadd.f32 %v167_v17, %v149_v14  ;;  %v105_v23 = vpop.f32.mrb[1].mxu1  ;;  %v90_v25 = vadd.f32 %v149_v14, %v89_v21  ;;  %v164_v27 = vpop.f32.mrb[2].mxu0 }
  0xdc   :  { %v106_v26 = vadd.f32 %v149_v14, %v105_v23  ;;  %v168_v29 = vpop.f32.mrb[2].mxu1  ;;  %v130_v31 = vadd.f32 %v122_v16, %v98_v19  ;;  %v101_v33 = vadd.f32 %v164_v27, %v149_v14  ;;  %v92_v35 = vpop.f32.mrb[3].mxu0 }
  0xdd   :  { %v134_v32 = vadd.f32 %v126_v18, %v114_v20  ;;  %v117_v34 = vadd.f32 %v168_v29, %v149_v14  ;;  %v108_v37 = vpop.f32.mrb[3].mxu1  ;;  %v128_v39 = vadd.f32 %v120_v22, %v90_v25  ;;  %v93_v41 = vadd.f32 %v149_v14, %v92_v35 }
  0xde   :  { %v132_v40 = vadd.f32 %v124_v24, %v106_v26  ;;  %v109_v42 = vadd.f32 %v149_v14, %v108_v37  ;;  %139 = vst.msk [vmem:[%s292_s4 + $0x10] sm:$0xff] %vm136_vm2, %v130_v31  ;;  %v131_v43 = vadd.f32 %v123_v28, %v101_v33 }
  0xdf   :  { %143 = vst.msk [vmem:[%s292_s4 + $0x30] sm:$0xff] %vm136_vm2, %v134_v32  ;;  %v135_v44 = vadd.f32 %v127_v30, %v117_v34  ;;  %137 = vst.msk [vmem:[%s292_s4] sm:$0xff] %vm136_vm2, %v128_v39  ;;  %v129_v45 = vadd.f32 %v121_v36, %v93_v41 }
  0xe0   :  { %141 = vst.msk [vmem:[%s292_s4 + $0x20] sm:$0xff] %vm136_vm2, %v132_v40  ;;  %v133_v46 = vadd.f32 %v125_v38, %v109_v42  ;;  %140 = vst.msk [vmem:[%s292_s4 + $0x18] sm:$0xff] %vm136_vm2, %v131_v43 }
  0xe1   :  { %144 = vst.msk [vmem:[%s292_s4 + $0x38] sm:$0xff] %vm136_vm2, %v135_v44  ;;  %138 = vst.msk [vmem:[%s292_s4 + $0x8] sm:$0xff] %vm136_vm2, %v129_v45 }
  0xe2   :  { %142 = vst.msk [vmem:[%s292_s4 + $0x28] sm:$0xff] %vm136_vm2, %v133_v46 }

// kernel: tsformer_forward.7
= control target key start
LH: loop header
LB: loop body
LE: loop exit
PB: predicated region body
PF: predicated region fallthrough
CT: control target
= control target key end

     0   :  { %vm97_vm0 = vcmask 261120   ;;  %vm301_vm1 = vcmask 130048   ;;  %s2103_s2 = inlined_call_operand.vmem [shape: bf16[2,32,16], index: 2, kind: input, shape index: {}]   ;;  %s2104_s0 = inlined_call_operand.vmem [shape: f32[32,32], index: 0, kind: input, shape index: {}]   ;;  %s2105_s3 = inlined_call_operand.vmem [shape: bf16[2,32,16], index: 3, kind: input, shape index: {}]   ;;  %s2106_s5 = inlined_call_operand.vmem [shape: f32[2,1,16], index: 5, kind: input, shape index: {}]   ;;  %s2107_s6 = inlined_call_operand.vmem [shape: f32[2,1,16], index: 6, kind: input, shape index: {}]   ;;  %s2108_s4 = inlined_call_operand.vmem [shape: bf16[2,32,16], index: 4, kind: input, shape index: {}]   ;;  %s2109_s1 = inlined_call_operand.vmem [shape: f32[32,32], index: 1, kind: input, shape index: {}]   ;;  %s2110_s7 = inlined_call_operand.vmem [shape: f32[2,1,16], index: 7, kind: input, shape index: {}]   ;;  %s2111_s8 = inlined_call_operand.vmem [shape: bf16[2,16,32], index: 8, kind: input, shape index: {}]   ;;  %s2112_s9 = inlined_call_operand.vmem [shape: f32[1,32], index: 9, kind: input, shape index: {}]   ;;  %s2113_s10 = inlined_call_operand.vmem [shape: bf16[32,128], index: 10, kind: input, shape index: {}]   ;;  %s2114_s12 = inlined_call_operand.vmem [shape: bf16[128,32], index: 12, kind: input, shape index: {}]   ;;  %s2115_s14 = inlined_call_operand.vmem [shape: f32[1,32], index: 14, kind: input, shape index: {}]   ;;  %s2116_s15 = inlined_call_operand.vmem [shape: f32[1,32], index: 15, kind: input, shape index: {}]   ;;  %s2117_s11 = inlined_call_operand.vmem [shape: f32[1,128], index: 11, kind: input, shape index: {}]   ;;  %s2118_s13 = inlined_call_operand.vmem [shape: f32[1,32], index: 13, kind: input, shape index: {}]   ;;  %s2119_s16 = inlined_call_operand.vmem [shape: f32[1,32], index: 16, kind: input, shape index: {}]   ;;  %s2120_s17 = inlined_call_operand.vmem [shape: f32[1,32], index: 17, kind: input, shape index: {}]   ;;  %s2121_s18 = inlined_call_operand.vmem [shape: f32[32,32], index: 18, kind: output, shape index: {}]  }
   0x1   :  { %2125 = sst [smem:[#allocation2_spill]] %s2103_s2  ;;  %v1385_v15 = vld [vmem:[%s2106_s5] ss:$0 sm:$0xff]  ;;  %v1658_v39 = vld [vmem:[%s2108_s4 + $0x8] sm:$0xff]   ;;  %v1895_v41 = vld [vmem:[%s2109_s1 + $0x10] sm:$0xff] }
   0x2   :  { %2126 = sst [smem:[#allocation3_spill]] %s2104_s0  ;;  %s2128_s29 = sld [smem:[#allocation2_spill]]  ;;  %v1390_v26 = vld [vmem:[%s2107_s6] ss:$0 sm:$0xff]  ;;  %v1905_v47 = vld [vmem:[%s2109_s1 + $0x18] sm:$0xff]  ;;  %v1911_v51 = vld [vmem:[%s2109_s1 + $0x8] sm:$0xff] }
   0x3   :  { %2127 = sst [smem:[#allocation4_spill]] %s2105_s3  ;;  %s2129_s20 = sld [smem:[#allocation3_spill]]  ;;  %v1657_v38 = vld [vmem:[%s2108_s4] sm:$0xff]  }
   0x4   :  { %s2130_s28 = sld [smem:[#allocation4_spill]]  ;;  %v1900_v44 = vld [vmem:[%s2109_s1] sm:$0xff] }
   0x8   :  { %v1653_v0 = vld [vmem:[%s2128_s29] sm:$0xff]   ;;  %v1654_v1 = vld [vmem:[%s2128_s29 + $0x8] sm:$0xff]  }
   0x9   :  { %1525 = vmatprep.subr.bf16.mxu0 %v1653_v0  ;;  %v60_v2 = vld [vmem:[%s2129_s20] sm:$0xff]  ;;  %v61_v3 = vld [vmem:[%s2129_s20 + $0x8] sm:$0xff]  ;;  %v62_v4 = vld [vmem:[%s2129_s20 + $0x10] sm:$0xff] }
   0xa   :  { %1526 = vmatpush3.bf16.msra.mxu0 %v1653_v0  ;;  %v1835_v5 = vmul.f32 5.656854, %v60_v2  ;;  %v1837_v6 = vmul.f32 5.656854, %v61_v3  ;;  %v63_v7 = vld [vmem:[%s2129_s20 + $0x18] sm:$0xff]  ;;  %v1655_v8 = vld [vmem:[%s2130_s28] sm:$0xff]  }
   0xb   :  { %1527 = vmatprep.subr.bf16.mxu0 %v1654_v1  ;;  %v1845_v9 = vmul.f32 5.656854, %v62_v4  ;;  %v1847_v10 = vmul.f32 5.656854, %v63_v7  ;;  %v1656_v13 = vld [vmem:[%s2130_s28 + $0x8] sm:$0xff]   ;;  %v1659_v60 = vld [vmem:[%s2130_s28 + $0x10] sm:$0xff]  }
   0xc   :  { %v1851_v11 = vpack.c.bf16 %v1837_v6, %v1835_v5 }
   0xd   :  { %v1855_v12 = vpack.c.bf16 %v1847_v10, %v1845_v9 }
   0xe   :  { %1528 = vmatpush3.bf16.msra.mxu0 %v1654_v1  ;;  %1529 = vmatprep.mubr.msk.bf16.mxu0 %vm97_vm0, %v1851_v11 }
   0xf   :  { %1533 = vmatprep.subr.bf16.mxu0 %v1655_v8 }
  0x11   :  { %1530 = vmatmul.mubr.msk.bf16.vlgmr.msra.gmra.mrb[0].mxu0 %vm97_vm0, %v1855_v12 }
  0x12   :  { %1534 = vmatpush3.bf16.msra.mxu0 %v1655_v8  ;;  %1537 = vmatprep.mubr.msk.bf16.mxu0 %vm97_vm0, %v1851_v11 }
  0x13   :  { %1535 = vmatprep.subr.bf16.mxu0 %v1656_v13 }
  0x16   :  { %1536 = vmatpush3.bf16.msra.mxu0 %v1656_v13 }
  0x17   :  { %1541 = vmatprep.subr.bf16.mxu0 %v1657_v38 }
  0x19   :  { %1538 = vmatmul.mubr.msk.bf16.vlgmr.msra.gmra.mrb[4].mxu0 %vm97_vm0, %v1855_v12 }
  0x1a   :  { %1545 = vmatprep.mubr.msk.bf16.mxu0 %vm97_vm0, %v1851_v11  ;;  %1542 = vmatpush3.bf16.msra.mxu0 %v1657_v38 }
  0x1b   :  { %1543 = vmatprep.subr.bf16.mxu0 %v1658_v39 }
  0x1e   :  { %1544 = vmatpush3.bf16.msra.mxu0 %v1658_v39 }
  0x21   :  { %1546 = vmatmul.mubr.msk.bf16.vlgmr.msra.gmra.mrb[8].mxu0 %vm97_vm0, %v1855_v12 }
  0xe4   :  { %v1531_v14 = vpop.f32.mrb[0].mxu0 }
  0xe5   :  { %v138_v16 = vpop.f32.mrb[1].mxu0  ;;  %v147_v18 = vadd.f32 %v1531_v14, %v1385_v15 }
  0xe6   :  { %v1532_v17 = vpop.f32.mrb[2].mxu0  ;;  %v139_v21 = vadd.f32 %v1385_v15, %v138_v16 }
  0xe7   :  { %v150_v19 = vadd.f32 %v1532_v17, %v1385_v15  ;;  %v141_v20 = vpop.f32.mrb[3].mxu0 }
  0xe8   :  { %v142_v22 = vadd.f32 %v1385_v15, %v141_v20 }
  0xe9   :  { %v298_v23 = vpack.c.bf16 %v150_v19, %v147_v18 }
  0xea   :  { %v297_v24 = vpack.c.bf16 %v142_v22, %v139_v21 }
  0xec   :  { %v1539_v25 = vpop.f32.mrb[4].mxu0  ;;  %1553 = vmatprep.mubr.msk.bf16.mxu1 %vm301_vm1, %v297_v24  ;;  %v1395_v24 = vld [vmem:[%s2110_s7] ss:$0 sm:$0xff] }
  0xed   :  { %v210_v27 = vpop.f32.mrb[5].mxu0  ;;  %v219_v29 = vadd.f32 %v1539_v25, %v1390_v26  ;;  %v1660_v25 = vld [vmem:[%s2130_s28 + $0x18] sm:$0xff]  }
  0xee   :  { %v1540_v28 = vpop.f32.mrb[6].mxu0  ;;  %v211_v32 = vadd.f32 %v1390_v26, %v210_v27 }
  0xef   :  { %v222_v30 = vadd.f32 %v1540_v28, %v1390_v26  ;;  %v213_v31 = vpop.f32.mrb[7].mxu0 }
  0xf0   :  { %v214_v33 = vadd.f32 %v1390_v26, %v213_v31 }
  0xf1   :  { %v300_v34 = vpack.c.bf16 %v222_v30, %v219_v29 }
  0xf2   :  { %v299_v35 = vpack.c.bf16 %v214_v33, %v211_v32 }
  0xf3   :  { %v312_v37 = vsel %vm301_vm1, %v300_v34, 0 }
  0xf4   :  { %1649 = vmatprep.subr.msk.bf16.mxu1 %vm301_vm1, %v299_v35  ;;  %v309_v36 = vsel %vm301_vm1, %v299_v35, 0  ;;  %v1547_v61 = vpop.f32.mrb[8].mxu0  ;;  %v1661_v35 = vld [vmem:[%s2128_s29 + $0x10] sm:$0xff]  }
  0xf5   :  { %1550 = vmatpush3.bf16.xpose.msra.mxu1 %v309_v36  ;;  %v291_v26 = vadd.f32 %v1547_v61, %v1395_v24  ;;  %v282_v27 = vpop.f32.mrb[9].mxu0 }
  0xf6   :  { %1650 = vmatprep.subr.msk.bf16.mxu1 %vm301_vm1, %v300_v34  ;;  %v283_v28 = vadd.f32 %v1395_v24, %v282_v27  ;;  %v1548_v29 = vpop.f32.mrb[10].mxu0  ;;  %v1664_v27 = vld [vmem:[%s2108_s4 + $0x18] sm:$0xff]  }
  0xf7   :  { %v294_v30 = vadd.f32 %v1548_v29, %v1395_v24  ;;  %v285_v31 = vpop.f32.mrb[11].mxu0 }
  0xf8   :  { %v286_v32 = vadd.f32 %v1395_v24, %v285_v31 }
  0xf9   :  { %v418_v33 = vpack.c.bf16 %v294_v30, %v291_v26  ;;  %v1663_v26 = vld [vmem:[%s2108_s4 + $0x10] sm:$0xff]  }
  0xfa   :  { %v417_v34 = vpack.c.bf16 %v286_v32, %v283_v28 }
  0xfc   :  { %1557 = vmatprep.subr.bf16.mxu0 %v417_v34 }
  0xfd   :  { %1552 = vmatpush3.bf16.xpose.msra.mxu1 %v312_v37  ;;  %1558 = vmatpush3.bf16.msra.mxu0 %v417_v34 }
  0xfe   :  { %1573 = vmatprep.subr.bf16.mxu1 %v1659_v60  ;;  %1559 = vmatprep.subr.bf16.mxu0 %v418_v33 }
 0x101   :  { %1560 = vmatpush3.bf16.msra.mxu0 %v418_v33 }
 0x102   :  { %1565 = vmatprep.subr.bf16.mxu0 %v1661_v35 }
 0x104   :  { %1554 = vmatmul.mubr.msk.bf16.vlgmr.msra.gmra.mrb[0].mxu1 %vm301_vm1, %v298_v23 }
 0x105   :  { %1577 = vmatprep.mubr.msk.bf16.mxu1 %vm97_vm0, %v1851_v11  ;;  %1574 = vmatpush3.bf16.msra.mxu1 %v1659_v60 }
 0x106   :  { %1575 = vmatprep.subr.bf16.mxu1 %v1660_v25 }
 0x109   :  { %1576 = vmatpush3.bf16.msra.mxu1 %v1660_v25 }
 0x10c   :  { %1578 = vmatmul.mubr.msk.bf16.vlgmr.msra.gmra.mrb[4].mxu1 %vm97_vm0, %v1855_v12 }
 0x1d7   :  { %v1555_v40 = vpop.f32.mrb[0].mxu1 }
 0x1d8   :  { %v365_v42 = vmul.f32 0.25, %v1555_v40  ;;  %v348_v43 = vpop.f32.mrb[1].mxu1 }
 0x1d9   :  { %v363_v45 = vmul.f32 0.25, %v348_v43  ;;  %v1556_v46 = vpop.f32.mrb[2].mxu1 }
 0x1da   :  { %v366_v48 = vmul.f32 0.25, %v1556_v46  ;;  %v351_v49 = vpop.f32.mrb[3].mxu1  ;;  %v369_v50 = vadd.f32 %v365_v42, %v1895_v41 }
 0x1db   :  { %v364_v52 = vmul.f32 0.25, %v351_v49  ;;  %v367_v53 = vadd.f32 %v363_v45, %v1900_v44 }
 0x1dc   :  { %v377_v54 = vsel %vm97_vm0, %v369_v50, -inf  ;;  %v370_v55 = vadd.f32 %v366_v48, %v1905_v47 }
 0x1dd   :  { %378 = vmax.xlane.f32.xlu1 %v377_v54  ;;  %v371_v56 = vsel %vm97_vm0, %v367_v53, -inf  ;;  %v368_v57 = vadd.f32 %v364_v52, %v1911_v51  ;;  %v1662_v54 = vld [vmem:[%s2128_s29 + $0x18] sm:$0xff]  }
 0x1de   :  { %372 = vmax.xlane.f32.xlu0 %v371_v56  ;;  %v380_v58 = vsel %vm97_vm0, %v370_v55, -inf }
 0x1df   :  { %v374_v59 = vsel %vm97_vm0, %v368_v57, -inf  ;;  %v1579_v56 = vpop.f32.mrb[4].mxu1 }
 0x1e1   :  { %381 = vmax.xlane.f32.xlu1 %v380_v58  ;;  %v611_v58 = vpop.f32.mrb[5].mxu1 }
 0x1e2   :  { %375 = vmax.xlane.f32.xlu0 %v374_v59  ;;  %v1580_v60 = vpop.f32.mrb[6].mxu1 }
 0x26a   :  { %v379_v62 = vpop.xlane.xlu1 %378 }
 0x26b   :  { %v385_v63 = vsub.f32 %v369_v50, %v379_v62  ;;  %v373_v0 = vpop.xlane.xlu0 %372  ;;  %v614_v62 = vpop.f32.mrb[7].mxu1 }
 0x26c   :  { %v383_v1 = vsub.f32 %v367_v53, %v373_v0 }
 0x26d   :  { %v391_v2 = vmul.f32 1.442695, %v385_v63 }
 0x26e   :  { %v387_v3 = vmul.f32 1.442695, %v383_v1  ;;  %v382_v4 = vpop.xlane.xlu1 %381 }
 0x26f   :  { %v386_v7 = vsub.f32 %v370_v55, %v382_v4  ;;  %v376_v8 = vpop.xlane.xlu0 %375  ;;  %v1419_v55 = vld [vmem:[%s2107_s6 + $0x1] ss:$0 sm:$0xff] }
 0x270   :  { %1677 = vpow2.f32 %v387_v3  ;;  %v384_v13 = vsub.f32 %v368_v57, %v376_v8  ;;  %v620_v57 = vadd.f32 %v1579_v56, %v1419_v55  ;;  %v612_v59 = vadd.f32 %v1419_v55, %v611_v58 }
 0x271   :  { %1679 = vpow2.f32 %v391_v2  ;;  %v393_v14 = vmul.f32 1.442695, %v386_v7  ;;  %v623_v61 = vadd.f32 %v1580_v60, %v1419_v55  ;;  %v615_v63 = vadd.f32 %v1419_v55, %v614_v62 }
 0x272   :  { %v389_v15 = vmul.f32 1.442695, %v384_v13 }
 0x273   :  { %v703_v0 = vpack.c.bf16 %v623_v61, %v620_v57  ;;  %v702_v1 = vpack.c.bf16 %v615_v63, %v612_v59 }
 0x274   :  { %1681 = vpow2.f32 %v389_v15 }
 0x275   :  { %1683 = vpow2.f32 %v393_v14  ;;  %1651 = vmatprep.subr.msk.bf16.mxu1 %vm301_vm1, %v702_v1  ;;  %v711_v2 = vsel %vm301_vm1, %v702_v1, 0 }
 0x276   :  { %1590 = vmatpush3.bf16.xpose.msra.mxu1 %v711_v2 }
 0x277   :  { %1652 = vmatprep.subr.msk.bf16.mxu1 %vm301_vm1, %v703_v0 }
 0x27a   :  { %v1678_v16 = vpop.eup %1677 }
 0x27b   :  { %v395_v17 = vsel %vm97_vm0, %v1678_v16, 0.0  ;;  %v1680_v18 = vpop.eup %1679 }
 0x27c   :  { %396 = vadd.xlane.f32.xlu0 %v395_v17  ;;  %v401_v20 = vsel %vm97_vm0, %v1680_v18, 0.0 }
 0x27e   :  { %v1682_v19 = vpop.eup %1681 }
 0x27f   :  { %v398_v21 = vsel %vm97_vm0, %v1682_v19, 0.0  ;;  %v1684_v22 = vpop.eup %1683 }
 0x280   :  { %402 = vadd.xlane.f32.xlu0 %v401_v20  ;;  %399 = vadd.xlane.f32.xlu1 %v398_v21  ;;  %v404_v23 = vsel %vm97_vm0, %v1684_v22, 0.0 }
 0x284   :  { %405 = vadd.xlane.f32.xlu1 %v404_v23 }
 0x309   :  { %v397_v36 = vpop.xlane.xlu0 %396 }
 0x30a   :  { %1685 = vrcp.f32 %v397_v36 }
 0x30d   :  { %v400_v37 = vpop.xlane.xlu1 %399  ;;  %v403_v38 = vpop.xlane.xlu0 %402 }
 0x30e   :  { %1687 = vrcp.f32 %v400_v37 }
 0x30f   :  { %1689 = vrcp.f32 %v403_v38 }
 0x311   :  { %v406_v39 = vpop.xlane.xlu1 %405 }
 0x312   :  { %1691 = vrcp.f32 %v406_v39 }
 0x314   :  { %v1686_v40 = vpop.eup %1685 }
 0x315   :  { %v411_v43 = vmul.f32 %v1686_v40, %v1678_v16  ;;  %v1409_v16 = vld [vmem:[%s2106_s5 + $0x1] ss:$0 sm:$0xff] }
 0x318   :  { %v1688_v42 = vpop.eup %1687 }
 0x319   :  { %v412_v45 = vmul.f32 %v1688_v42, %v1682_v19  ;;  %v1690_v46 = vpop.eup %1689 }
 0x31a   :  { %v413_v50 = vmul.f32 %v1690_v46, %v1680_v18 }
 0x31b   :  { %v415_v48 = vpack.c.bf16 %v412_v45, %v411_v43 }
 0x31c   :  { %v1692_v49 = vpop.eup %1691 }
 0x31d   :  { %v414_v52 = vmul.f32 %v1692_v49, %v1684_v22  ;;  %1561 = vmatprep.mubr.msk.bf16.mxu0 %vm97_vm0, %v415_v48 }
 0x31f   :  { %v416_v53 = vpack.c.bf16 %v414_v52, %v413_v50 }
 0x321   :  { %1562 = vmatmul.mubr.msk.bf16.vlgmr.msra.gmra.mrb[12].mxu0 %vm97_vm0, %v416_v53 }
 0x322   :  { %1566 = vmatpush3.bf16.msra.mxu0 %v1661_v35  ;;  %1569 = vmatprep.mubr.msk.bf16.mxu0 %vm97_vm0, %v1851_v11 }
 0x323   :  { %1567 = vmatprep.subr.bf16.mxu0 %v1662_v54 }
 0x326   :  { %1568 = vmatpush3.bf16.msra.mxu0 %v1662_v54 }
 0x327   :  { %1581 = vmatprep.subr.bf16.mxu0 %v1663_v26 }
 0x329   :  { %1570 = vmatmul.mubr.msk.bf16.vlgmr.msra.gmra.mrb[16].mxu0 %vm97_vm0, %v1855_v12 }
 0x32a   :  { %1585 = vmatprep.mubr.msk.bf16.mxu0 %vm97_vm0, %v1851_v11  ;;  %v714_v11 = vsel %vm301_vm1, %v703_v0, 0  ;;  %1582 = vmatpush3.bf16.msra.mxu0 %v1663_v26 }
 0x32b   :  { %1592 = vmatpush3.bf16.xpose.msra.mxu1 %v714_v11  ;;  %1583 = vmatprep.subr.bf16.mxu0 %v1664_v27 }
 0x32e   :  { %1584 = vmatpush3.bf16.msra.mxu0 %v1664_v27 }
 0x331   :  { %1586 = vmatmul.mubr.msk.bf16.vlgmr.msra.gmra.mrb[20].mxu0 %vm97_vm0, %v1855_v12 }
 0x3f4   :  { %v1956_v3 = vpop.f32.mrb[12].mxu0 }
 0x3f5   :  { %v1958_v4 = vpop.f32.mrb[13].mxu0 }
 0x3f6   :  { %v1960_v7 = vpop.f32.mrb[14].mxu0 }
 0x3f7   :  { %v475_v8 = vpack.c.bf16 %v1960_v7, %v1956_v3  ;;  %v1964_v13 = vpop.f32.mrb[15].mxu0 }
 0x3f8   :  { %v474_v14 = vpack.c.bf16 %v1964_v13, %v1958_v4 }
 0x3fc   :  { %v1571_v15 = vpop.f32.mrb[16].mxu0 }
 0x3fd   :  { %v537_v17 = vpop.f32.mrb[17].mxu0  ;;  %v546_v19 = vadd.f32 %v1571_v15, %v1409_v16 }
 0x3fe   :  { %v1572_v18 = vpop.f32.mrb[18].mxu0  ;;  %v538_v22 = vadd.f32 %v1409_v16, %v537_v17 }
 0x3ff   :  { %v549_v20 = vadd.f32 %v1572_v18, %v1409_v16  ;;  %v540_v21 = vpop.f32.mrb[19].mxu0 }
 0x400   :  { %v541_v23 = vadd.f32 %v1409_v16, %v540_v21  ;;  %v1665_v21 = vld [vmem:[%s2111_s8 + $0x8] sm:$0xff]  }
 0x401   :  { %v701_v24 = vpack.c.bf16 %v549_v20, %v546_v19 }
 0x402   :  { %v700_v25 = vpack.c.bf16 %v541_v23, %v538_v22 }
 0x404   :  { %1593 = vmatprep.mubr.msk.bf16.mxu1 %vm301_vm1, %v700_v25  ;;  %v1587_v45 = vpop.f32.mrb[20].mxu0 }
 0x405   :  { %1594 = vmatmul.mubr.msk.bf16.vlgmr.msra.gmra.mrb[8].mxu1 %vm301_vm1, %v701_v24  ;;  %v685_v46 = vpop.f32.mrb[21].mxu0 }
 0x4d8   :  { %v1595_v28 = vpop.f32.mrb[8].mxu1 }
 0x4d9   :  { %v750_v29 = vpop.f32.mrb[9].mxu1  ;;  %v767_v30 = vmul.f32 0.25, %v1595_v28 }
 0x4da   :  { %v765_v31 = vmul.f32 0.25, %v750_v29  ;;  %v1596_v32 = vpop.f32.mrb[10].mxu1 }
 0x4db   :  { %v753_v33 = vpop.f32.mrb[11].mxu1  ;;  %v768_v34 = vmul.f32 0.25, %v1596_v32  ;;  %v771_v39 = vadd.f32 %v767_v30, %v1895_v41  ;;  %v1588_v41 = vpop.f32.mrb[22].mxu0 }
 0x4dc   :  { %v766_v35 = vmul.f32 0.25, %v753_v33  ;;  %v769_v36 = vadd.f32 %v765_v31, %v1900_v44  ;;  %v1429_v44 = vld [vmem:[%s2110_s7 + $0x1] ss:$0 sm:$0xff]  ;;  %v688_v18 = vpop.f32.mrb[23].mxu0 }
 0x4dd   :  { %v772_v12 = vadd.f32 %v768_v34, %v1905_v47  ;;  %v779_v42 = vsel %vm97_vm0, %v771_v39, -inf  ;;  %v697_v48 = vadd.f32 %v1588_v41, %v1429_v44  ;;  %v686_v17 = vadd.f32 %v1429_v44, %v685_v46 }
 0x4de   :  { %v773_v37 = vsel %vm97_vm0, %v769_v36, -inf  ;;  %v770_v38 = vadd.f32 %v766_v35, %v1911_v51  ;;  %v694_v51 = vadd.f32 %v1587_v45, %v1429_v44  ;;  %v689_v19 = vadd.f32 %v1429_v44, %v688_v18  ;;  %v1669_v18 = vld [vmem:[%s2114_s12] sm:$0xff]  }
 0x4df   :  { %774 = vmax.xlane.f32.xlu0 %v773_v37  ;;  %v782_v43 = vsel %vm97_vm0, %v772_v12, -inf }
 0x4e0   :  { %v776_v40 = vsel %vm97_vm0, %v770_v38, -inf  ;;  %v820_v49 = vpack.c.bf16 %v697_v48, %v694_v51  ;;  %v819_v20 = vpack.c.bf16 %v689_v19, %v686_v17  ;;  %v1668_v17 = vld [vmem:[%s2113_s10 + $0x8] sm:$0xff]  }
 0x4e1   :  { %777 = vmax.xlane.f32.xlu1 %v776_v40 }
 0x4e2   :  { %1597 = vmatprep.subr.bf16.mxu0 %v819_v20 }
 0x4e3   :  { %780 = vmax.xlane.f32.xlu0 %v779_v42  ;;  %1598 = vmatpush3.bf16.msra.mxu0 %v819_v20 }
 0x4e4   :  { %1599 = vmatprep.subr.bf16.mxu0 %v820_v49 }
 0x4e5   :  { %783 = vmax.xlane.f32.xlu1 %v782_v43  ;;  %v1446_v43 = vld [vmem:[%s2112_s9] ss:$0 sm:$0xff] }
 0x4e7   :  { %1600 = vmatpush3.bf16.msra.mxu0 %v820_v49 }
 0x4e8   :  { %1605 = vmatprep.subr.bf16.mxu0 %v1665_v21 }
 0x56c   :  { %v775_v50 = vpop.xlane.xlu0 %774 }
 0x56d   :  { %v785_v52 = vsub.f32 %v769_v36, %v775_v50  ;;  %v1666_v36 = vld [vmem:[%s2111_s8] sm:$0xff]  }
 0x56e   :  { %v778_v47 = vpop.xlane.xlu1 %777 }
 0x56f   :  { %v789_v53 = vmul.f32 1.442695, %v785_v52  ;;  %v786_v54 = vsub.f32 %v770_v38, %v778_v47 }
 0x570   :  { %v781_v55 = vpop.xlane.xlu0 %780 }
 0x571   :  { %1693 = vpow2.f32 %v789_v53  ;;  %v791_v56 = vmul.f32 1.442695, %v786_v54  ;;  %v787_v57 = vsub.f32 %v771_v39, %v781_v55 }
 0x572   :  { %v784_v58 = vpop.xlane.xlu1 %783 }
 0x573   :  { %1695 = vpow2.f32 %v791_v56  ;;  %v793_v59 = vmul.f32 1.442695, %v787_v57  ;;  %v788_v60 = vsub.f32 %v772_v12, %v784_v58 }
 0x575   :  { %1697 = vpow2.f32 %v793_v59  ;;  %v795_v61 = vmul.f32 1.442695, %v788_v60 }
 0x577   :  { %1699 = vpow2.f32 %v795_v61 }
 0x57b   :  { %v1694_v62 = vpop.eup %1693 }
 0x57c   :  { %v797_v63 = vsel %vm97_vm0, %v1694_v62, 0.0 }
 0x57d   :  { %v1696_v0 = vpop.eup %1695  ;;  %798 = vadd.xlane.f32.xlu0 %v797_v63 }
 0x57e   :  { %v800_v1 = vsel %vm97_vm0, %v1696_v0, 0.0 }
 0x57f   :  { %v1698_v2 = vpop.eup %1697  ;;  %801 = vadd.xlane.f32.xlu1 %v800_v1 }
 0x580   :  { %v803_v11 = vsel %vm97_vm0, %v1698_v2, 0.0 }
 0x581   :  { %v1700_v15 = vpop.eup %1699  ;;  %804 = vadd.xlane.f32.xlu0 %v803_v11 }
 0x582   :  { %v806_v16 = vsel %vm97_vm0, %v1700_v15, 0.0 }
 0x583   :  { %807 = vadd.xlane.f32.xlu1 %v806_v16  ;;  %v1667_v16 = vld [vmem:[%s2113_s10] sm:$0xff]  }
 0x584   :  { %1617 = vmatprep.subr.bf16.mxu1 %v1667_v16 }
 0x585   :  { %1618 = vmatpush3.bf16.msra.mxu1 %v1667_v16 }
 0x586   :  { %1619 = vmatprep.subr.bf16.mxu1 %v1668_v17 }
 0x589   :  { %1620 = vmatpush3.bf16.msra.mxu1 %v1668_v17 }
 0x58a   :  { %1625 = vmatprep.subr.bf16.mxu1 %v1669_v18 }
 0x60a   :  { %v799_v22 = vpop.xlane.xlu0 %798 }
 0x60b   :  { %1701 = vrcp.f32 %v799_v22 }
 0x60c   :  { %v802_v23 = vpop.xlane.xlu1 %801 }
 0x60d   :  { %1703 = vrcp.f32 %v802_v23 }
 0x60e   :  { %v805_v24 = vpop.xlane.xlu0 %804 }
 0x60f   :  { %1705 = vrcp.f32 %v805_v24 }
 0x610   :  { %v808_v25 = vpop.xlane.xlu1 %807 }
 0x611   :  { %1707 = vrcp.f32 %v808_v25 }
 0x615   :  { %v1702_v26 = vpop.eup %1701 }
 0x616   :  { %v813_v28 = vmul.f32 %v1702_v26, %v1694_v62 }
 0x617   :  { %v1704_v27 = vpop.eup %1703 }
 0x618   :  { %v814_v29 = vmul.f32 %v1704_v27, %v1696_v0 }
 0x619   :  { %v1706_v30 = vpop.eup %1705 }
 0x61a   :  { %v817_v31 = vpack.c.bf16 %v814_v29, %v813_v28  ;;  %v815_v33 = vmul.f32 %v1706_v30, %v1698_v2 }
 0x61b   :  { %v1708_v32 = vpop.eup %1707 }
 0x61c   :  { %v816_v34 = vmul.f32 %v1708_v32, %v1700_v15  ;;  %1601 = vmatprep.mubr.msk.bf16.mxu0 %vm97_vm0, %v817_v31  ;;  %v1447_v32 = vld [vmem:[%s2115_s14] ss:$0 sm:$0xff] }
 0x61e   :  { %v818_v35 = vpack.c.bf16 %v816_v34, %v815_v33 }
 0x620   :  { %1602 = vmatmul.mubr.msk.bf16.vlgmr.msra.gmra.mrb[24].mxu0 %vm97_vm0, %v818_v35 }
 0x621   :  { %1606 = vmatpush3.bf16.msra.mxu0 %v1665_v21 }
 0x622   :  { %1611 = vmatprep.subr.bf16.mxu0 %v1666_v36 }
 0x6f3   :  { %v1603_v37 = vpop.f32.mrb[24].mxu0 }
 0x6f4   :  { %v861_v38 = vpop.f32.mrb[25].mxu0 }
 0x6f5   :  { %v1604_v39 = vpop.f32.mrb[26].mxu0 }
 0x6f6   :  { %v877_v40 = vpack.c.bf16 %v1604_v39, %v1603_v37  ;;  %v864_v12 = vpop.f32.mrb[27].mxu0 }
 0x6f7   :  { %v876_v42 = vpack.c.bf16 %v864_v12, %v861_v38  ;;  %v1448_v38 = vld [vmem:[%s2116_s15] ss:$0 sm:$0xff] }
 0x6f9   :  { %1607 = vmatprep.mubr.msk.bf16.mxu0 %vm301_vm1, %v876_v42 }
 0x6fa   :  { %1608 = vmatmul.mubr.msk.bf16.vlgmr.msra.gmra.mrb[28].mxu0 %vm301_vm1, %v877_v40 }
 0x6fb   :  { %1612 = vmatpush3.bf16.msra.mxu0 %v1666_v36  ;;  %1613 = vmatprep.mubr.msk.bf16.mxu0 %vm301_vm1, %v474_v14 }
 0x706   :  { %1614 = vmatmul.mubr.msk.bf16.vlgmr.msra.gmra.mrb[28].mxu0 %vm301_vm1, %v475_v8 }
 0x7d9   :  { %v1615_v45 = vpop.f32.mrb[28].mxu0 }
 0x7da   :  { %v988_v44 = vpop.f32.mrb[29].mxu0  ;;  %v1012_v51 = vadd.f32 %v1615_v45, %v1446_v43 }
 0x7db   :  { %v1010_v46 = vadd.f32 %v1446_v43, %v988_v44  ;;  %v1616_v41 = vpop.f32.mrb[30].mxu0 }
 0x7dc   :  { %v991_v48 = vpop.f32.mrb[31].mxu0  ;;  %v1013_v49 = vadd.f32 %v1616_v41, %v1446_v43  ;;  %v1016_v7 = vadd.f32 %v1012_v51, %v1845_v9 }
 0x7dd   :  { %v1011_v50 = vadd.f32 %v1446_v43, %v991_v48  ;;  %v1014_v4 = vadd.f32 %v1010_v46, %v1835_v5 }
 0x7de   :  { %v1017_v14 = vadd.f32 %v1013_v49, %v1847_v10  ;;  %v1026_v52 = vsel %vm97_vm0, %v1016_v7, 0.0 }
 0x7df   :  { %v1020_v13 = vsel %vm97_vm0, %v1014_v4, 0.0  ;;  %v1015_v3 = vadd.f32 %v1011_v50, %v1837_v6  ;;  %v1670_v50 = vld [vmem:[%s2114_s12 + $0x8] sm:$0xff]  }
 0x7e0   :  { %1021 = vadd.xlane.f32.xlu0 %v1020_v13  ;;  %v1029_v47 = vsel %vm97_vm0, %v1017_v14, 0.0  ;;  %v1672_v13 = vld [vmem:[%s2114_s12 + $0x18] sm:$0xff]  }
 0x7e1   :  { %v1023_v8 = vsel %vm97_vm0, %v1015_v3, 0.0 }
 0x7e2   :  { %1024 = vadd.xlane.f32.xlu1 %v1023_v8  ;;  %v1675_v8 = vld [vmem:[%s2114_s12 + $0x30] sm:$0xff]  }
 0x7e4   :  { %1027 = vadd.xlane.f32.xlu0 %v1026_v52  ;;  %v1449_v52 = vld [vmem:[%s2117_s11] ss:$0 sm:$0xff] }
 0x7e6   :  { %1030 = vadd.xlane.f32.xlu1 %v1029_v47 }
 0x86d   :  { %v1022_v53 = vpop.xlane.xlu0 %1021 }
 0x86e   :  { %v1033_v5 = vmul.f32 0.03125, %v1022_v53 }
 0x86f   :  { %v1025_v54 = vpop.xlane.xlu1 %1024 }
 0x870   :  { %v1037_v55 = vsub.f32 %v1014_v4, %v1033_v5  ;;  %v1034_v56 = vmul.f32 0.03125, %v1025_v54  ;;  %v1671_v4 = vld [vmem:[%s2114_s12 + $0x10] sm:$0xff]  }
 0x871   :  { %v1028_v6 = vpop.xlane.xlu0 %1027 }
 0x872   :  { %v1038_v57 = vsub.f32 %v1015_v3, %v1034_v56  ;;  %v1035_v9 = vmul.f32 0.03125, %v1028_v6  ;;  %v1041_v58 = vmul.f32 %v1037_v55, %v1037_v55  ;;  %v1673_v3 = vld [vmem:[%s2114_s12 + $0x20] sm:$0xff]  }
 0x873   :  { %v1031_v59 = vpop.xlane.xlu1 %1030 }
 0x874   :  { %v1039_v60 = vsub.f32 %v1016_v7, %v1035_v9  ;;  %v1036_v61 = vmul.f32 0.03125, %v1031_v59  ;;  %v1045_v10 = vsel %vm97_vm0, %v1041_v58, 0.0  ;;  %v1042_v62 = vmul.f32 %v1038_v57, %v1038_v57  ;;  %v1674_v7 = vld [vmem:[%s2114_s12 + $0x28] sm:$0xff]  }
 0x875   :  { %1046 = vadd.xlane.f32.xlu0 %v1045_v10 }
 0x876   :  { %v1040_v63 = vsub.f32 %v1017_v14, %v1036_v61  ;;  %v1048_v0 = vsel %vm97_vm0, %v1042_v62, 0.0  ;;  %v1043_v1 = vmul.f32 %v1039_v60, %v1039_v60  ;;  %v1676_v14 = vld [vmem:[%s2114_s12 + $0x38] sm:$0xff]   ;;  %v1454_v62 = vld [vmem:[%s2118_s13] ss:$0 sm:$0xff] }
 0x877   :  { %1049 = vadd.xlane.f32.xlu1 %v1048_v0 }
 0x878   :  { %v1051_v2 = vsel %vm97_vm0, %v1043_v1, 0.0  ;;  %v1044_v11 = vmul.f32 %v1040_v63, %v1040_v63 }
 0x879   :  { %1052 = vadd.xlane.f32.xlu0 %v1051_v2 }
 0x87a   :  { %v1054_v15 = vsel %vm97_vm0, %v1044_v11, 0.0 }
 0x87b   :  { %1055 = vadd.xlane.f32.xlu1 %v1054_v15 }
 0x902   :  { %v1047_v19 = vpop.xlane.xlu0 %1046 }
 0x903   :  { %v1057_v20 = vmul.f32 0.03125, %v1047_v19 }
 0x904   :  { %v1050_v21 = vpop.xlane.xlu1 %1049 }
 0x905   :  { %v1061_v22 = vadd.f32 1e-05, %v1057_v20  ;;  %v1058_v23 = vmul.f32 0.03125, %v1050_v21 }
 0x906   :  { %v1053_v24 = vpop.xlane.xlu0 %1052 }
 0x907   :  { %1709 = vrsqrt.f32 %v1061_v22  ;;  %v1062_v25 = vadd.f32 1e-05, %v1058_v23  ;;  %v1059_v26 = vmul.f32 0.03125, %v1053_v24 }
 0x908   :  { %v1056_v27 = vpop.xlane.xlu1 %1055 }
 0x909   :  { %1711 = vrsqrt.f32 %v1062_v25  ;;  %v1063_v28 = vadd.f32 1e-05, %v1059_v26  ;;  %v1060_v29 = vmul.f32 0.03125, %v1056_v27 }
 0x90b   :  { %1713 = vrsqrt.f32 %v1063_v28  ;;  %v1064_v30 = vadd.f32 1e-05, %v1060_v29 }
 0x90d   :  { %1715 = vrsqrt.f32 %v1064_v30 }
 0x911   :  { %v1710_v31 = vpop.eup %1709 }
 0x912   :  { %v1069_v33 = vmul.f32 %v1710_v31, %v1037_v55 }
 0x913   :  { %v1712_v34 = vpop.eup %1711 }
 0x914   :  { %v1070_v35 = vmul.f32 %v1712_v34, %v1038_v57  ;;  %v1079_v36 = vmul.f32 %v1447_v32, %v1069_v33 }
 0x915   :  { %v1714_v37 = vpop.eup %1713 }
 0x916   :  { %v1071_v39 = vmul.f32 %v1714_v37, %v1039_v60  ;;  %v1080_v40 = vmul.f32 %v1447_v32, %v1070_v35  ;;  %v1089_v45 = vadd.f32 %v1448_v38, %v1079_v36 }
 0x917   :  { %v1716_v12 = vpop.eup %1715 }
 0x918   :  { %v1081_v42 = vmul.f32 %v1447_v32, %v1071_v39  ;;  %v1072_v43 = vmul.f32 %v1716_v12, %v1040_v63  ;;  %v1090_v44 = vadd.f32 %v1448_v38, %v1080_v40 }
 0x91a   :  { %v1082_v51 = vmul.f32 %v1447_v32, %v1072_v43  ;;  %v1093_v46 = vpack.c.bf16 %v1090_v44, %v1089_v45  ;;  %v1091_v41 = vadd.f32 %v1448_v38, %v1081_v42 }
 0x91c   :  { %1621 = vmatprep.mubr.msk.bf16.mxu1 %vm97_vm0, %v1093_v46  ;;  %v1092_v48 = vadd.f32 %v1448_v38, %v1082_v51 }
 0x91e   :  { %v1094_v49 = vpack.c.bf16 %v1092_v48, %v1091_v41 }
 0x920   :  { %1622 = vmatmul.mubr.msk.bf16.vlgmr.msra.gmra.mrb[12].mxu1 %vm97_vm0, %v1094_v49 }
 0x921   :  { %1626 = vmatpush3.bf16.msra.mxu1 %v1669_v18 }
 0x922   :  { %1627 = vmatprep.subr.bf16.mxu1 %v1670_v50 }
 0x925   :  { %1628 = vmatpush3.bf16.msra.mxu1 %v1670_v50 }
 0x926   :  { %1629 = vmatprep.subr.bf16.mxu1 %v1671_v4 }
 0x929   :  { %1630 = vmatpush3.bf16.msra.mxu1 %v1671_v4 }
 0x92a   :  { %1631 = vmatprep.subr.bf16.mxu1 %v1672_v13 }
 0x92d   :  { %1632 = vmatpush3.bf16.msra.mxu1 %v1672_v13 }
 0x92e   :  { %1633 = vmatprep.subr.bf16.mxu1 %v1673_v3 }
 0x931   :  { %1634 = vmatpush3.bf16.msra.mxu1 %v1673_v3 }
 0x932   :  { %1635 = vmatprep.subr.bf16.mxu1 %v1674_v7 }
 0x935   :  { %1636 = vmatpush3.bf16.msra.mxu1 %v1674_v7 }
 0x936   :  { %1637 = vmatprep.subr.bf16.mxu1 %v1675_v8 }
 0x939   :  { %1638 = vmatpush3.bf16.msra.mxu1 %v1675_v8 }
 0x93a   :  { %1639 = vmatprep.subr.bf16.mxu1 %v1676_v14 }
 0x93d   :  { %1640 = vmatpush3.bf16.msra.mxu1 %v1676_v14 }
 0x9f3   :  { %v1623_v47 = vpop.f32.mrb[12].mxu1 }
 0x9f4   :  { %v1167_v53 = vadd.f32 %v1623_v47, %v1449_v52  ;;  %v1158_v5 = vpop.f32.mrb[13].mxu1  ;;  %v1463_v47 = vld [vmem:[%s2119_s16] ss:$0 sm:$0xff] }
 0x9f5   :  { %v1159_v54 = vadd.f32 %v1449_v52, %v1158_v5  ;;  %v1624_v55 = vpop.f32.mrb[14].mxu1 }
 0x9f6   :  { %v1170_v56 = vadd.f32 %v1624_v55, %v1449_v52  ;;  %v1161_v6 = vpop.f32.mrb[15].mxu1  ;;  %v1175_v9 = vmax.f32 %v1167_v53, 0.0 }
 0x9f7   :  { %v1162_v57 = vadd.f32 %v1449_v52, %v1161_v6  ;;  %v1173_v59 = vmax.f32 %v1159_v54, 0.0  ;;  %v1464_v54 = vld [vmem:[%s2120_s17] ss:$0 sm:$0xff] }
 0x9f8   :  { %v1176_v58 = vmax.f32 %v1170_v56, 0.0 }
 0x9f9   :  { %v1174_v60 = vmax.f32 %v1162_v57, 0.0 }
 0x9fa   :  { %v1178_v61 = vpack.c.bf16 %v1176_v58, %v1175_v9 }
 0x9fb   :  { %v1177_v10 = vpack.c.bf16 %v1174_v60, %v1173_v59 }
 0x9fd   :  { %1641 = vmatprep.mubr.bf16.mxu1 %v1177_v10 }
 0x9fe   :  { %1642 = vmatmul.mubr.bf16.vlgmr.msra.gmra.mrb[16].mxu1 %v1178_v61 }
 0xad1   :  { %v1643_v63 = vpop.f32.mrb[16].mxu1 }
 0xad2   :  { %v1284_v0 = vpop.f32.mrb[17].mxu1  ;;  %v1293_v1 = vadd.f32 %v1643_v63, %v1454_v62 }
 0xad3   :  { %v1285_v2 = vadd.f32 %v1454_v62, %v1284_v0  ;;  %v1644_v11 = vpop.f32.mrb[18].mxu1 }
 0xad4   :  { %v1287_v15 = vpop.f32.mrb[19].mxu1  ;;  %v1296_v16 = vadd.f32 %v1644_v11, %v1454_v62  ;;  %v1301_v21 = vadd.f32 %v1293_v1, %v1091_v41 }
 0xad5   :  { %v1288_v17 = vadd.f32 %v1454_v62, %v1287_v15  ;;  %v1299_v18 = vadd.f32 %v1285_v2, %v1089_v45 }
 0xad6   :  { %v1302_v23 = vadd.f32 %v1296_v16, %v1092_v48  ;;  %v1311_v24 = vsel %vm97_vm0, %v1301_v21, 0.0 }
 0xad7   :  { %v1305_v19 = vsel %vm97_vm0, %v1299_v18, 0.0  ;;  %v1300_v20 = vadd.f32 %v1288_v17, %v1090_v44 }
 0xad8   :  { %1306 = vadd.xlane.f32.xlu0 %v1305_v19  ;;  %v1314_v25 = vsel %vm97_vm0, %v1302_v23, 0.0 }
 0xad9   :  { %v1308_v22 = vsel %vm97_vm0, %v1300_v20, 0.0 }
 0xada   :  { %1309 = vadd.xlane.f32.xlu1 %v1308_v22 }
 0xadc   :  { %1312 = vadd.xlane.f32.xlu0 %v1311_v24 }
 0xade   :  { %1315 = vadd.xlane.f32.xlu1 %v1314_v25 }
 0xb65   :  { %v1307_v26 = vpop.xlane.xlu0 %1306 }
 0xb66   :  { %v1317_v27 = vmul.f32 0.03125, %v1307_v26 }
 0xb67   :  { %v1310_v28 = vpop.xlane.xlu1 %1309 }
 0xb68   :  { %v1321_v29 = vsub.f32 %v1299_v18, %v1317_v27  ;;  %v1318_v30 = vmul.f32 0.03125, %v1310_v28 }
 0xb69   :  { %v1313_v31 = vpop.xlane.xlu0 %1312 }
 0xb6a   :  { %v1322_v32 = vsub.f32 %v1300_v20, %v1318_v30  ;;  %v1319_v33 = vmul.f32 0.03125, %v1313_v31  ;;  %v1325_v34 = vmul.f32 %v1321_v29, %v1321_v29 }
 0xb6b   :  { %v1316_v35 = vpop.xlane.xlu1 %1315 }
 0xb6c   :  { %v1323_v36 = vsub.f32 %v1301_v21, %v1319_v33  ;;  %v1320_v37 = vmul.f32 0.03125, %v1316_v35  ;;  %v1329_v38 = vsel %vm97_vm0, %v1325_v34, 0.0  ;;  %v1326_v39 = vmul.f32 %v1322_v32, %v1322_v32 }
 0xb6d   :  { %1330 = vadd.xlane.f32.xlu0 %v1329_v38 }
 0xb6e   :  { %v1324_v40 = vsub.f32 %v1302_v23, %v1320_v37  ;;  %v1332_v12 = vsel %vm97_vm0, %v1326_v39, 0.0  ;;  %v1327_v42 = vmul.f32 %v1323_v36, %v1323_v36 }
 0xb6f   :  { %1333 = vadd.xlane.f32.xlu1 %v1332_v12 }
 0xb70   :  { %v1335_v43 = vsel %vm97_vm0, %v1327_v42, 0.0  ;;  %v1328_v45 = vmul.f32 %v1324_v40, %v1324_v40 }
 0xb71   :  { %1336 = vadd.xlane.f32.xlu0 %v1335_v43 }
 0xb72   :  { %v1338_v44 = vsel %vm97_vm0, %v1328_v45, 0.0 }
 0xb73   :  { %1339 = vadd.xlane.f32.xlu1 %v1338_v44 }
 0xbfa   :  { %v1331_v51 = vpop.xlane.xlu0 %1330 }
 0xbfb   :  { %v1341_v46 = vmul.f32 0.03125, %v1331_v51 }
 0xbfc   :  { %v1334_v41 = vpop.xlane.xlu1 %1333 }
 0xbfd   :  { %v1345_v48 = vadd.f32 1e-05, %v1341_v46  ;;  %v1342_v49 = vmul.f32 0.03125, %v1334_v41 }
 0xbfe   :  { %v1337_v50 = vpop.xlane.xlu0 %1336 }
 0xbff   :  { %1717 = vrsqrt.f32 %v1345_v48  ;;  %v1346_v4 = vadd.f32 1e-05, %v1342_v49  ;;  %v1343_v13 = vmul.f32 0.03125, %v1337_v50 }
 0xc00   :  { %v1340_v3 = vpop.xlane.xlu1 %1339 }
 0xc01   :  { %1719 = vrsqrt.f32 %v1346_v4  ;;  %v1347_v7 = vadd.f32 1e-05, %v1343_v13  ;;  %v1344_v8 = vmul.f32 0.03125, %v1340_v3 }
 0xc03   :  { %1721 = vrsqrt.f32 %v1347_v7  ;;  %v1348_v14 = vadd.f32 1e-05, %v1344_v8 }
 0xc05   :  { %1723 = vrsqrt.f32 %v1348_v14 }
 0xc09   :  { %v1718_v52 = vpop.eup %1717 }
 0xc0a   :  { %v1353_v53 = vmul.f32 %v1718_v52, %v1321_v29 }
 0xc0b   :  { %v1720_v5 = vpop.eup %1719 }
 0xc0c   :  { %v1363_v55 = vmul.f32 %v1463_v47, %v1353_v53  ;;  %v1354_v56 = vmul.f32 %v1720_v5, %v1322_v32 }
 0xc0d   :  { %v1722_v6 = vpop.eup %1721 }
 0xc0e   :  { %v1373_v57 = vadd.f32 %v1464_v54, %v1363_v55  ;;  %v1364_v9 = vmul.f32 %v1463_v47, %v1354_v56  ;;  %v1355_v58 = vmul.f32 %v1722_v6, %v1323_v36 }
 0xc0f   :  { %v1724_v59 = vpop.eup %1723 }
 0xc10   :  { %1377 = vst.msk [vmem:[%s2121_s18] sm:$0xff] %vm97_vm0, %v1373_v57  ;;  %v1374_v60 = vadd.f32 %v1464_v54, %v1364_v9  ;;  %v1365_v61 = vmul.f32 %v1463_v47, %v1355_v58  ;;  %v1356_v10 = vmul.f32 %v1724_v59, %v1324_v40 }
 0xc12   :  { %1378 = vst.msk [vmem:[%s2121_s18 + $0x8] sm:$0xff] %vm97_vm0, %v1374_v60  ;;  %v1375_v62 = vadd.f32 %v1464_v54, %v1365_v61  ;;  %v1366_v63 = vmul.f32 %v1463_v47, %v1356_v10 }
 0xc14   :  { %1379 = vst.msk [vmem:[%s2121_s18 + $0x10] sm:$0xff] %vm97_vm0, %v1375_v62  ;;  %v1376_v0 = vadd.f32 %v1464_v54, %v1366_v63 }
 0xc16   :  { %1380 = vst.msk [vmem:[%s2121_s18 + $0x18] sm:$0xff] %vm97_vm0, %v1376_v0 }

// kernel: tsformer_forward.8
= control target key start
LH: loop header
LB: loop body
LE: loop exit
PB: predicated region body
PF: predicated region fallthrough
CT: control target
= control target key end

     0   :  { %vm93_vm0 = vcmask 261120   ;;  %vm297_vm1 = vcmask 130048   ;;  %s2099_s2 = inlined_call_operand.vmem [shape: bf16[2,32,16], index: 2, kind: input, shape index: {}]   ;;  %s2100_s0 = inlined_call_operand.vmem [shape: f32[32,32], index: 0, kind: input, shape index: {}]   ;;  %s2101_s3 = inlined_call_operand.vmem [shape: bf16[2,32,16], index: 3, kind: input, shape index: {}]   ;;  %s2102_s5 = inlined_call_operand.vmem [shape: f32[2,1,16], index: 5, kind: input, shape index: {}]   ;;  %s2103_s6 = inlined_call_operand.vmem [shape: f32[2,1,16], index: 6, kind: input, shape index: {}]   ;;  %s2104_s4 = inlined_call_operand.vmem [shape: bf16[2,32,16], index: 4, kind: input, shape index: {}]   ;;  %s2105_s1 = inlined_call_operand.vmem [shape: f32[32,32], index: 1, kind: input, shape index: {}]   ;;  %s2106_s7 = inlined_call_operand.vmem [shape: f32[2,1,16], index: 7, kind: input, shape index: {}]   ;;  %s2107_s8 = inlined_call_operand.vmem [shape: bf16[2,16,32], index: 8, kind: input, shape index: {}]   ;;  %s2108_s9 = inlined_call_operand.vmem [shape: f32[1,32], index: 9, kind: input, shape index: {}]   ;;  %s2109_s10 = inlined_call_operand.vmem [shape: bf16[32,128], index: 10, kind: input, shape index: {}]   ;;  %s2110_s12 = inlined_call_operand.vmem [shape: bf16[128,32], index: 12, kind: input, shape index: {}]   ;;  %s2111_s14 = inlined_call_operand.vmem [shape: f32[1,32], index: 14, kind: input, shape index: {}]   ;;  %s2112_s15 = inlined_call_operand.vmem [shape: f32[1,32], index: 15, kind: input, shape index: {}]   ;;  %s2113_s11 = inlined_call_operand.vmem [shape: f32[1,128], index: 11, kind: input, shape index: {}]   ;;  %s2114_s13 = inlined_call_operand.vmem [shape: f32[1,32], index: 13, kind: input, shape index: {}]   ;;  %s2115_s16 = inlined_call_operand.vmem [shape: f32[1,32], index: 16, kind: input, shape index: {}]   ;;  %s2116_s17 = inlined_call_operand.vmem [shape: f32[1,32], index: 17, kind: input, shape index: {}]   ;;  %s2117_s18 = inlined_call_operand.vmem [shape: f32[32,32], index: 18, kind: output, shape index: {}]  }
   0x1   :  { %2121 = sst [smem:[#allocation2_spill]] %s2099_s2  ;;  %v1381_v11 = vld [vmem:[%s2102_s5] ss:$0 sm:$0xff]  ;;  %v1654_v35 = vld [vmem:[%s2104_s4 + $0x8] sm:$0xff]   ;;  %v1891_v37 = vld [vmem:[%s2105_s1 + $0x10] sm:$0xff] }
   0x2   :  { %2122 = sst [smem:[#allocation3_spill]] %s2100_s0  ;;  %s2124_s29 = sld [smem:[#allocation2_spill]]  ;;  %v1386_v22 = vld [vmem:[%s2103_s6] ss:$0 sm:$0xff]  ;;  %v1901_v43 = vld [vmem:[%s2105_s1 + $0x18] sm:$0xff]  ;;  %v1907_v47 = vld [vmem:[%s2105_s1 + $0x8] sm:$0xff] }
   0x3   :  { %2123 = sst [smem:[#allocation4_spill]] %s2101_s3  ;;  %s2125_s20 = sld [smem:[#allocation3_spill]]  ;;  %v1653_v34 = vld [vmem:[%s2104_s4] sm:$0xff]  }
   0x4   :  { %s2126_s28 = sld [smem:[#allocation4_spill]]  ;;  %v1896_v40 = vld [vmem:[%s2105_s1] sm:$0xff] }
   0x8   :  { %v1649_v0 = vld [vmem:[%s2124_s29] sm:$0xff]   ;;  %v1650_v1 = vld [vmem:[%s2124_s29 + $0x8] sm:$0xff]  }
   0x9   :  { %1521 = vmatprep.subr.bf16.mxu0 %v1649_v0  ;;  %v1825_v2 = vld [vmem:[%s2125_s20] sm:$0xff]  ;;  %v1830_v3 = vld [vmem:[%s2125_s20 + $0x8] sm:$0xff]  ;;  %v1835_v4 = vld [vmem:[%s2125_s20 + $0x10] sm:$0xff] }
   0xa   :  { %1522 = vmatpush3.bf16.msra.mxu0 %v1649_v0  ;;  %v1839_v5 = vpack.c.bf16 %v1830_v3, %v1825_v2  ;;  %v1844_v6 = vld [vmem:[%s2125_s20 + $0x18] sm:$0xff]  ;;  %v1651_v7 = vld [vmem:[%s2126_s28] sm:$0xff]   ;;  %v1652_v9 = vld [vmem:[%s2126_s28 + $0x8] sm:$0xff]  }
   0xb   :  { %1523 = vmatprep.subr.bf16.mxu0 %v1650_v1  ;;  %v1853_v8 = vpack.c.bf16 %v1844_v6, %v1835_v4  ;;  %v1655_v56 = vld [vmem:[%s2126_s28 + $0x10] sm:$0xff]  }
   0xc   :  { %1525 = vmatprep.mubr.msk.bf16.mxu0 %vm93_vm0, %v1839_v5 }
   0xe   :  { %1524 = vmatpush3.bf16.msra.mxu0 %v1650_v1 }
   0xf   :  { %1529 = vmatprep.subr.bf16.mxu0 %v1651_v7 }
  0x11   :  { %1526 = vmatmul.mubr.msk.bf16.vlgmr.msra.gmra.mrb[0].mxu0 %vm93_vm0, %v1853_v8 }
  0x12   :  { %1530 = vmatpush3.bf16.msra.mxu0 %v1651_v7  ;;  %1533 = vmatprep.mubr.msk.bf16.mxu0 %vm93_vm0, %v1839_v5 }
  0x13   :  { %1531 = vmatprep.subr.bf16.mxu0 %v1652_v9 }
  0x16   :  { %1532 = vmatpush3.bf16.msra.mxu0 %v1652_v9 }
  0x17   :  { %1537 = vmatprep.subr.bf16.mxu0 %v1653_v34 }
  0x19   :  { %1534 = vmatmul.mubr.msk.bf16.vlgmr.msra.gmra.mrb[4].mxu0 %vm93_vm0, %v1853_v8 }
  0x1a   :  { %1541 = vmatprep.mubr.msk.bf16.mxu0 %vm93_vm0, %v1839_v5  ;;  %1538 = vmatpush3.bf16.msra.mxu0 %v1653_v34 }
  0x1b   :  { %1539 = vmatprep.subr.bf16.mxu0 %v1654_v35 }
  0x1e   :  { %1540 = vmatpush3.bf16.msra.mxu0 %v1654_v35 }
  0x21   :  { %1542 = vmatmul.mubr.msk.bf16.vlgmr.msra.gmra.mrb[8].mxu0 %vm93_vm0, %v1853_v8 }
  0xe4   :  { %v1527_v10 = vpop.f32.mrb[0].mxu0 }
  0xe5   :  { %v134_v12 = vpop.f32.mrb[1].mxu0  ;;  %v143_v14 = vadd.f32 %v1527_v10, %v1381_v11 }
  0xe6   :  { %v1528_v13 = vpop.f32.mrb[2].mxu0  ;;  %v135_v17 = vadd.f32 %v1381_v11, %v134_v12 }
  0xe7   :  { %v146_v15 = vadd.f32 %v1528_v13, %v1381_v11  ;;  %v137_v16 = vpop.f32.mrb[3].mxu0 }
  0xe8   :  { %v138_v18 = vadd.f32 %v1381_v11, %v137_v16 }
  0xe9   :  { %v294_v19 = vpack.c.bf16 %v146_v15, %v143_v14 }
  0xea   :  { %v293_v20 = vpack.c.bf16 %v138_v18, %v135_v17 }
  0xec   :  { %v1535_v21 = vpop.f32.mrb[4].mxu0  ;;  %1549 = vmatprep.mubr.msk.bf16.mxu1 %vm297_vm1, %v293_v20  ;;  %v1391_v20 = vld [vmem:[%s2106_s7] ss:$0 sm:$0xff] }
  0xed   :  { %v206_v23 = vpop.f32.mrb[5].mxu0  ;;  %v215_v25 = vadd.f32 %v1535_v21, %v1386_v22  ;;  %v1656_v21 = vld [vmem:[%s2126_s28 + $0x18] sm:$0xff]  }
  0xee   :  { %v1536_v24 = vpop.f32.mrb[6].mxu0  ;;  %v207_v28 = vadd.f32 %v1386_v22, %v206_v23 }
  0xef   :  { %v218_v26 = vadd.f32 %v1536_v24, %v1386_v22  ;;  %v209_v27 = vpop.f32.mrb[7].mxu0 }
  0xf0   :  { %v210_v29 = vadd.f32 %v1386_v22, %v209_v27 }
  0xf1   :  { %v296_v30 = vpack.c.bf16 %v218_v26, %v215_v25 }
  0xf2   :  { %v295_v31 = vpack.c.bf16 %v210_v29, %v207_v28 }
  0xf3   :  { %v308_v33 = vsel %vm297_vm1, %v296_v30, 0 }
  0xf4   :  { %1645 = vmatprep.subr.msk.bf16.mxu1 %vm297_vm1, %v295_v31  ;;  %v305_v32 = vsel %vm297_vm1, %v295_v31, 0  ;;  %v1543_v57 = vpop.f32.mrb[8].mxu0  ;;  %v1657_v31 = vld [vmem:[%s2124_s29 + $0x10] sm:$0xff]  }
  0xf5   :  { %1546 = vmatpush3.bf16.xpose.msra.mxu1 %v305_v32  ;;  %v287_v22 = vadd.f32 %v1543_v57, %v1391_v20  ;;  %v278_v23 = vpop.f32.mrb[9].mxu0 }
  0xf6   :  { %1646 = vmatprep.subr.msk.bf16.mxu1 %vm297_vm1, %v296_v30  ;;  %v279_v24 = vadd.f32 %v1391_v20, %v278_v23  ;;  %v1544_v25 = vpop.f32.mrb[10].mxu0  ;;  %v1660_v23 = vld [vmem:[%s2104_s4 + $0x18] sm:$0xff]  }
  0xf7   :  { %v290_v26 = vadd.f32 %v1544_v25, %v1391_v20  ;;  %v281_v27 = vpop.f32.mrb[11].mxu0 }
  0xf8   :  { %v282_v28 = vadd.f32 %v1391_v20, %v281_v27 }
  0xf9   :  { %v414_v29 = vpack.c.bf16 %v290_v26, %v287_v22  ;;  %v1659_v22 = vld [vmem:[%s2104_s4 + $0x10] sm:$0xff]  }
  0xfa   :  { %v413_v30 = vpack.c.bf16 %v282_v28, %v279_v24 }
  0xfc   :  { %1553 = vmatprep.subr.bf16.mxu0 %v413_v30 }
  0xfd   :  { %1548 = vmatpush3.bf16.xpose.msra.mxu1 %v308_v33  ;;  %1554 = vmatpush3.bf16.msra.mxu0 %v413_v30 }
  0xfe   :  { %1569 = vmatprep.subr.bf16.mxu1 %v1655_v56  ;;  %1555 = vmatprep.subr.bf16.mxu0 %v414_v29 }
 0x101   :  { %1556 = vmatpush3.bf16.msra.mxu0 %v414_v29 }
 0x102   :  { %1561 = vmatprep.subr.bf16.mxu0 %v1657_v31 }
 0x104   :  { %1550 = vmatmul.mubr.msk.bf16.vlgmr.msra.gmra.mrb[0].mxu1 %vm297_vm1, %v294_v19 }
 0x105   :  { %1573 = vmatprep.mubr.msk.bf16.mxu1 %vm93_vm0, %v1839_v5  ;;  %1570 = vmatpush3.bf16.msra.mxu1 %v1655_v56 }
 0x106   :  { %1571 = vmatprep.subr.bf16.mxu1 %v1656_v21 }
 0x109   :  { %1572 = vmatpush3.bf16.msra.mxu1 %v1656_v21 }
 0x10c   :  { %1574 = vmatmul.mubr.msk.bf16.vlgmr.msra.gmra.mrb[4].mxu1 %vm93_vm0, %v1853_v8 }
 0x1d7   :  { %v1551_v36 = vpop.f32.mrb[0].mxu1 }
 0x1d8   :  { %v361_v38 = vmul.f32 0.25, %v1551_v36  ;;  %v344_v39 = vpop.f32.mrb[1].mxu1 }
 0x1d9   :  { %v359_v41 = vmul.f32 0.25, %v344_v39  ;;  %v1552_v42 = vpop.f32.mrb[2].mxu1 }
 0x1da   :  { %v362_v44 = vmul.f32 0.25, %v1552_v42  ;;  %v347_v45 = vpop.f32.mrb[3].mxu1  ;;  %v365_v46 = vadd.f32 %v361_v38, %v1891_v37 }
 0x1db   :  { %v360_v48 = vmul.f32 0.25, %v347_v45  ;;  %v363_v49 = vadd.f32 %v359_v41, %v1896_v40 }
 0x1dc   :  { %v373_v50 = vsel %vm93_vm0, %v365_v46, -inf  ;;  %v366_v51 = vadd.f32 %v362_v44, %v1901_v43 }
 0x1dd   :  { %374 = vmax.xlane.f32.xlu1 %v373_v50  ;;  %v367_v52 = vsel %vm93_vm0, %v363_v49, -inf  ;;  %v364_v53 = vadd.f32 %v360_v48, %v1907_v47  ;;  %v1658_v50 = vld [vmem:[%s2124_s29 + $0x18] sm:$0xff]  }
 0x1de   :  { %368 = vmax.xlane.f32.xlu0 %v367_v52  ;;  %v376_v54 = vsel %vm93_vm0, %v366_v51, -inf }
 0x1df   :  { %v370_v55 = vsel %vm93_vm0, %v364_v53, -inf  ;;  %v1575_v52 = vpop.f32.mrb[4].mxu1 }
 0x1e1   :  { %377 = vmax.xlane.f32.xlu1 %v376_v54  ;;  %v607_v54 = vpop.f32.mrb[5].mxu1 }
 0x1e2   :  { %371 = vmax.xlane.f32.xlu0 %v370_v55  ;;  %v1576_v56 = vpop.f32.mrb[6].mxu1 }
 0x26a   :  { %v375_v58 = vpop.xlane.xlu1 %374 }
 0x26b   :  { %v381_v59 = vsub.f32 %v365_v46, %v375_v58  ;;  %v369_v60 = vpop.xlane.xlu0 %368  ;;  %v610_v58 = vpop.f32.mrb[7].mxu1 }
 0x26c   :  { %v379_v61 = vsub.f32 %v363_v49, %v369_v60 }
 0x26d   :  { %v387_v62 = vmul.f32 1.442695, %v381_v59 }
 0x26e   :  { %v383_v63 = vmul.f32 1.442695, %v379_v61  ;;  %v378_v0 = vpop.xlane.xlu1 %377 }
 0x26f   :  { %v382_v1 = vsub.f32 %v366_v51, %v378_v0  ;;  %v372_v7 = vpop.xlane.xlu0 %371  ;;  %v1415_v51 = vld [vmem:[%s2103_s6 + $0x1] ss:$0 sm:$0xff] }
 0x270   :  { %1673 = vpow2.f32 %v383_v63  ;;  %v380_v9 = vsub.f32 %v364_v53, %v372_v7  ;;  %v616_v53 = vadd.f32 %v1575_v52, %v1415_v51  ;;  %v608_v55 = vadd.f32 %v1415_v51, %v607_v54 }
 0x271   :  { %1675 = vpow2.f32 %v387_v62  ;;  %v389_v10 = vmul.f32 1.442695, %v382_v1  ;;  %v619_v57 = vadd.f32 %v1576_v56, %v1415_v51  ;;  %v611_v59 = vadd.f32 %v1415_v51, %v610_v58 }
 0x272   :  { %v385_v11 = vmul.f32 1.442695, %v380_v9 }
 0x273   :  { %v699_v60 = vpack.c.bf16 %v619_v57, %v616_v53  ;;  %v698_v61 = vpack.c.bf16 %v611_v59, %v608_v55 }
 0x274   :  { %1677 = vpow2.f32 %v385_v11 }
 0x275   :  { %1679 = vpow2.f32 %v389_v10  ;;  %1647 = vmatprep.subr.msk.bf16.mxu1 %vm297_vm1, %v698_v61  ;;  %v707_v62 = vsel %vm297_vm1, %v698_v61, 0 }
 0x276   :  { %1586 = vmatpush3.bf16.xpose.msra.mxu1 %v707_v62 }
 0x277   :  { %1648 = vmatprep.subr.msk.bf16.mxu1 %vm297_vm1, %v699_v60 }
 0x27a   :  { %v1674_v12 = vpop.eup %1673 }
 0x27b   :  { %v391_v13 = vsel %vm93_vm0, %v1674_v12, 0.0  ;;  %v1676_v14 = vpop.eup %1675 }
 0x27c   :  { %392 = vadd.xlane.f32.xlu0 %v391_v13  ;;  %v397_v16 = vsel %vm93_vm0, %v1676_v14, 0.0 }
 0x27e   :  { %v1678_v15 = vpop.eup %1677 }
 0x27f   :  { %v394_v17 = vsel %vm93_vm0, %v1678_v15, 0.0  ;;  %v1680_v18 = vpop.eup %1679 }
 0x280   :  { %398 = vadd.xlane.f32.xlu0 %v397_v16  ;;  %395 = vadd.xlane.f32.xlu1 %v394_v17  ;;  %v400_v19 = vsel %vm93_vm0, %v1680_v18, 0.0 }
 0x284   :  { %401 = vadd.xlane.f32.xlu1 %v400_v19 }
 0x309   :  { %v393_v32 = vpop.xlane.xlu0 %392 }
 0x30a   :  { %1681 = vrcp.f32 %v393_v32 }
 0x30d   :  { %v396_v33 = vpop.xlane.xlu1 %395  ;;  %v399_v34 = vpop.xlane.xlu0 %398 }
 0x30e   :  { %1683 = vrcp.f32 %v396_v33 }
 0x30f   :  { %1685 = vrcp.f32 %v399_v34 }
 0x311   :  { %v402_v35 = vpop.xlane.xlu1 %401 }
 0x312   :  { %1687 = vrcp.f32 %v402_v35 }
 0x314   :  { %v1682_v36 = vpop.eup %1681 }
 0x315   :  { %v407_v39 = vmul.f32 %v1682_v36, %v1674_v12  ;;  %v1405_v12 = vld [vmem:[%s2102_s5 + $0x1] ss:$0 sm:$0xff] }
 0x318   :  { %v1684_v38 = vpop.eup %1683 }
 0x319   :  { %v408_v41 = vmul.f32 %v1684_v38, %v1678_v15  ;;  %v1686_v42 = vpop.eup %1685 }
 0x31a   :  { %v409_v46 = vmul.f32 %v1686_v42, %v1676_v14 }
 0x31b   :  { %v411_v44 = vpack.c.bf16 %v408_v41, %v407_v39 }
 0x31c   :  { %v1688_v45 = vpop.eup %1687 }
 0x31d   :  { %v410_v48 = vmul.f32 %v1688_v45, %v1680_v18  ;;  %1557 = vmatprep.mubr.msk.bf16.mxu0 %vm93_vm0, %v411_v44 }
 0x31f   :  { %v412_v49 = vpack.c.bf16 %v410_v48, %v409_v46 }
 0x321   :  { %1558 = vmatmul.mubr.msk.bf16.vlgmr.msra.gmra.mrb[12].mxu0 %vm93_vm0, %v412_v49 }
 0x322   :  { %1562 = vmatpush3.bf16.msra.mxu0 %v1657_v31  ;;  %1565 = vmatprep.mubr.msk.bf16.mxu0 %vm93_vm0, %v1839_v5 }
 0x323   :  { %1563 = vmatprep.subr.bf16.mxu0 %v1658_v50 }
 0x326   :  { %1564 = vmatpush3.bf16.msra.mxu0 %v1658_v50 }
 0x327   :  { %1577 = vmatprep.subr.bf16.mxu0 %v1659_v22 }
 0x329   :  { %1566 = vmatmul.mubr.msk.bf16.vlgmr.msra.gmra.mrb[16].mxu0 %vm93_vm0, %v1853_v8 }
 0x32a   :  { %1581 = vmatprep.mubr.msk.bf16.mxu0 %vm93_vm0, %v1839_v5  ;;  %v710_v5 = vsel %vm297_vm1, %v699_v60, 0  ;;  %1578 = vmatpush3.bf16.msra.mxu0 %v1659_v22 }
 0x32b   :  { %1588 = vmatpush3.bf16.xpose.msra.mxu1 %v710_v5  ;;  %1579 = vmatprep.subr.bf16.mxu0 %v1660_v23 }
 0x32e   :  { %1580 = vmatpush3.bf16.msra.mxu0 %v1660_v23 }
 0x331   :  { %1582 = vmatmul.mubr.msk.bf16.vlgmr.msra.gmra.mrb[20].mxu0 %vm93_vm0, %v1853_v8 }
 0x3f4   :  { %v1952_v63 = vpop.f32.mrb[12].mxu0 }
 0x3f5   :  { %v1954_v0 = vpop.f32.mrb[13].mxu0 }
 0x3f6   :  { %v1956_v1 = vpop.f32.mrb[14].mxu0 }
 0x3f7   :  { %v471_v7 = vpack.c.bf16 %v1956_v1, %v1952_v63  ;;  %v1960_v9 = vpop.f32.mrb[15].mxu0 }
 0x3f8   :  { %v470_v10 = vpack.c.bf16 %v1960_v9, %v1954_v0 }
 0x3fc   :  { %v1567_v11 = vpop.f32.mrb[16].mxu0 }
 0x3fd   :  { %v533_v13 = vpop.f32.mrb[17].mxu0  ;;  %v542_v15 = vadd.f32 %v1567_v11, %v1405_v12 }
 0x3fe   :  { %v1568_v14 = vpop.f32.mrb[18].mxu0  ;;  %v534_v18 = vadd.f32 %v1405_v12, %v533_v13 }
 0x3ff   :  { %v545_v16 = vadd.f32 %v1568_v14, %v1405_v12  ;;  %v536_v17 = vpop.f32.mrb[19].mxu0 }
 0x400   :  { %v537_v19 = vadd.f32 %v1405_v12, %v536_v17  ;;  %v1661_v17 = vld [vmem:[%s2107_s8 + $0x8] sm:$0xff]  }
 0x401   :  { %v697_v20 = vpack.c.bf16 %v545_v16, %v542_v15 }
 0x402   :  { %v696_v21 = vpack.c.bf16 %v537_v19, %v534_v18 }
 0x404   :  { %1589 = vmatprep.mubr.msk.bf16.mxu1 %vm297_vm1, %v696_v21  ;;  %v1583_v41 = vpop.f32.mrb[20].mxu0 }
 0x405   :  { %1590 = vmatmul.mubr.msk.bf16.vlgmr.msra.gmra.mrb[8].mxu1 %vm297_vm1, %v697_v20  ;;  %v681_v42 = vpop.f32.mrb[21].mxu0 }
 0x4d8   :  { %v1591_v24 = vpop.f32.mrb[8].mxu1 }
 0x4d9   :  { %v746_v25 = vpop.f32.mrb[9].mxu1  ;;  %v763_v26 = vmul.f32 0.25, %v1591_v24 }
 0x4da   :  { %v761_v27 = vmul.f32 0.25, %v746_v25  ;;  %v1592_v28 = vpop.f32.mrb[10].mxu1 }
 0x4db   :  { %v749_v29 = vpop.f32.mrb[11].mxu1  ;;  %v764_v30 = vmul.f32 0.25, %v1592_v28  ;;  %v767_v35 = vadd.f32 %v763_v26, %v1891_v37  ;;  %v1584_v37 = vpop.f32.mrb[22].mxu0 }
 0x4dc   :  { %v762_v31 = vmul.f32 0.25, %v749_v29  ;;  %v765_v32 = vadd.f32 %v761_v27, %v1896_v40  ;;  %v1425_v40 = vld [vmem:[%s2106_s7 + $0x1] ss:$0 sm:$0xff]  ;;  %v684_v14 = vpop.f32.mrb[23].mxu0 }
 0x4dd   :  { %v768_v8 = vadd.f32 %v764_v30, %v1901_v43  ;;  %v775_v38 = vsel %vm93_vm0, %v767_v35, -inf  ;;  %v693_v44 = vadd.f32 %v1584_v37, %v1425_v40  ;;  %v682_v13 = vadd.f32 %v1425_v40, %v681_v42 }
 0x4de   :  { %v769_v33 = vsel %vm93_vm0, %v765_v32, -inf  ;;  %v766_v34 = vadd.f32 %v762_v31, %v1907_v47  ;;  %v690_v47 = vadd.f32 %v1583_v41, %v1425_v40  ;;  %v685_v15 = vadd.f32 %v1425_v40, %v684_v14  ;;  %v1665_v14 = vld [vmem:[%s2110_s12] sm:$0xff]  }
 0x4df   :  { %770 = vmax.xlane.f32.xlu0 %v769_v33  ;;  %v778_v39 = vsel %vm93_vm0, %v768_v8, -inf }
 0x4e0   :  { %v772_v36 = vsel %vm93_vm0, %v766_v34, -inf  ;;  %v816_v45 = vpack.c.bf16 %v693_v44, %v690_v47  ;;  %v815_v16 = vpack.c.bf16 %v685_v15, %v682_v13  ;;  %v1664_v13 = vld [vmem:[%s2109_s10 + $0x8] sm:$0xff]  }
 0x4e1   :  { %773 = vmax.xlane.f32.xlu1 %v772_v36 }
 0x4e2   :  { %1593 = vmatprep.subr.bf16.mxu0 %v815_v16 }
 0x4e3   :  { %776 = vmax.xlane.f32.xlu0 %v775_v38  ;;  %1594 = vmatpush3.bf16.msra.mxu0 %v815_v16 }
 0x4e4   :  { %1595 = vmatprep.subr.bf16.mxu0 %v816_v45 }
 0x4e5   :  { %779 = vmax.xlane.f32.xlu1 %v778_v39  ;;  %v1442_v39 = vld [vmem:[%s2108_s9] ss:$0 sm:$0xff] }
 0x4e7   :  { %1596 = vmatpush3.bf16.msra.mxu0 %v816_v45 }
 0x4e8   :  { %1601 = vmatprep.subr.bf16.mxu0 %v1661_v17 }
 0x56c   :  { %v771_v46 = vpop.xlane.xlu0 %770 }
 0x56d   :  { %v781_v48 = vsub.f32 %v765_v32, %v771_v46  ;;  %v1662_v32 = vld [vmem:[%s2107_s8] sm:$0xff]  }
 0x56e   :  { %v774_v43 = vpop.xlane.xlu1 %773 }
 0x56f   :  { %v785_v49 = vmul.f32 1.442695, %v781_v48  ;;  %v782_v50 = vsub.f32 %v766_v34, %v774_v43 }
 0x570   :  { %v777_v51 = vpop.xlane.xlu0 %776 }
 0x571   :  { %1689 = vpow2.f32 %v785_v49  ;;  %v787_v52 = vmul.f32 1.442695, %v782_v50  ;;  %v783_v53 = vsub.f32 %v767_v35, %v777_v51 }
 0x572   :  { %v780_v54 = vpop.xlane.xlu1 %779 }
 0x573   :  { %1691 = vpow2.f32 %v787_v52  ;;  %v789_v55 = vmul.f32 1.442695, %v783_v53  ;;  %v784_v56 = vsub.f32 %v768_v8, %v780_v54 }
 0x575   :  { %1693 = vpow2.f32 %v789_v55  ;;  %v791_v57 = vmul.f32 1.442695, %v784_v56 }
 0x577   :  { %1695 = vpow2.f32 %v791_v57 }
 0x57b   :  { %v1690_v58 = vpop.eup %1689 }
 0x57c   :  { %v793_v59 = vsel %vm93_vm0, %v1690_v58, 0.0 }
 0x57d   :  { %v1692_v60 = vpop.eup %1691  ;;  %794 = vadd.xlane.f32.xlu0 %v793_v59 }
 0x57e   :  { %v796_v61 = vsel %vm93_vm0, %v1692_v60, 0.0 }
 0x57f   :  { %v1694_v62 = vpop.eup %1693  ;;  %797 = vadd.xlane.f32.xlu1 %v796_v61 }
 0x580   :  { %v799_v5 = vsel %vm93_vm0, %v1694_v62, 0.0 }
 0x581   :  { %v1696_v11 = vpop.eup %1695  ;;  %800 = vadd.xlane.f32.xlu0 %v799_v5 }
 0x582   :  { %v802_v12 = vsel %vm93_vm0, %v1696_v11, 0.0 }
 0x583   :  { %803 = vadd.xlane.f32.xlu1 %v802_v12  ;;  %v1663_v12 = vld [vmem:[%s2109_s10] sm:$0xff]  }
 0x584   :  { %1613 = vmatprep.subr.bf16.mxu1 %v1663_v12 }
 0x585   :  { %1614 = vmatpush3.bf16.msra.mxu1 %v1663_v12 }
 0x586   :  { %1615 = vmatprep.subr.bf16.mxu1 %v1664_v13 }
 0x589   :  { %1616 = vmatpush3.bf16.msra.mxu1 %v1664_v13 }
 0x58a   :  { %1621 = vmatprep.subr.bf16.mxu1 %v1665_v14 }
 0x60a   :  { %v795_v18 = vpop.xlane.xlu0 %794 }
 0x60b   :  { %1697 = vrcp.f32 %v795_v18 }
 0x60c   :  { %v798_v19 = vpop.xlane.xlu1 %797 }
 0x60d   :  { %1699 = vrcp.f32 %v798_v19 }
 0x60e   :  { %v801_v20 = vpop.xlane.xlu0 %800 }
 0x60f   :  { %1701 = vrcp.f32 %v801_v20 }
 0x610   :  { %v804_v21 = vpop.xlane.xlu1 %803 }
 0x611   :  { %1703 = vrcp.f32 %v804_v21 }
 0x615   :  { %v1698_v22 = vpop.eup %1697 }
 0x616   :  { %v809_v24 = vmul.f32 %v1698_v22, %v1690_v58 }
 0x617   :  { %v1700_v23 = vpop.eup %1699 }
 0x618   :  { %v810_v25 = vmul.f32 %v1700_v23, %v1692_v60 }
 0x619   :  { %v1702_v26 = vpop.eup %1701 }
 0x61a   :  { %v813_v27 = vpack.c.bf16 %v810_v25, %v809_v24  ;;  %v811_v29 = vmul.f32 %v1702_v26, %v1694_v62 }
 0x61b   :  { %v1704_v28 = vpop.eup %1703 }
 0x61c   :  { %v812_v30 = vmul.f32 %v1704_v28, %v1696_v11  ;;  %1597 = vmatprep.mubr.msk.bf16.mxu0 %vm93_vm0, %v813_v27  ;;  %v1443_v28 = vld [vmem:[%s2111_s14] ss:$0 sm:$0xff] }
 0x61e   :  { %v814_v31 = vpack.c.bf16 %v812_v30, %v811_v29 }
 0x620   :  { %1598 = vmatmul.mubr.msk.bf16.vlgmr.msra.gmra.mrb[24].mxu0 %vm93_vm0, %v814_v31 }
 0x621   :  { %1602 = vmatpush3.bf16.msra.mxu0 %v1661_v17 }
 0x622   :  { %1607 = vmatprep.subr.bf16.mxu0 %v1662_v32 }
 0x6f3   :  { %v1599_v33 = vpop.f32.mrb[24].mxu0 }
 0x6f4   :  { %v857_v34 = vpop.f32.mrb[25].mxu0 }
 0x6f5   :  { %v1600_v35 = vpop.f32.mrb[26].mxu0 }
 0x6f6   :  { %v873_v36 = vpack.c.bf16 %v1600_v35, %v1599_v33  ;;  %v860_v8 = vpop.f32.mrb[27].mxu0 }
 0x6f7   :  { %v872_v38 = vpack.c.bf16 %v860_v8, %v857_v34  ;;  %v1444_v34 = vld [vmem:[%s2112_s15] ss:$0 sm:$0xff] }
 0x6f9   :  { %1603 = vmatprep.mubr.msk.bf16.mxu0 %vm297_vm1, %v872_v38 }
 0x6fa   :  { %1604 = vmatmul.mubr.msk.bf16.vlgmr.msra.gmra.mrb[28].mxu0 %vm297_vm1, %v873_v36 }
 0x6fb   :  { %1608 = vmatpush3.bf16.msra.mxu0 %v1662_v32  ;;  %1609 = vmatprep.mubr.msk.bf16.mxu0 %vm297_vm1, %v470_v10 }
 0x706   :  { %1610 = vmatmul.mubr.msk.bf16.vlgmr.msra.gmra.mrb[28].mxu0 %vm297_vm1, %v471_v7 }
 0x7d9   :  { %v1611_v41 = vpop.f32.mrb[28].mxu0 }
 0x7da   :  { %v984_v40 = vpop.f32.mrb[29].mxu0  ;;  %v1008_v47 = vadd.f32 %v1611_v41, %v1442_v39 }
 0x7db   :  { %v1006_v42 = vadd.f32 %v1442_v39, %v984_v40  ;;  %v1612_v37 = vpop.f32.mrb[30].mxu0 }
 0x7dc   :  { %v987_v44 = vpop.f32.mrb[31].mxu0  ;;  %v1009_v45 = vadd.f32 %v1612_v37, %v1442_v39  ;;  %v1012_v1 = vadd.f32 %v1008_v47, %v1835_v4 }
 0x7dd   :  { %v1007_v46 = vadd.f32 %v1442_v39, %v987_v44  ;;  %v1010_v0 = vadd.f32 %v1006_v42, %v1825_v2 }
 0x7de   :  { %v1013_v10 = vadd.f32 %v1009_v45, %v1844_v6  ;;  %v1022_v48 = vsel %vm93_vm0, %v1012_v1, 0.0 }
 0x7df   :  { %v1016_v9 = vsel %vm93_vm0, %v1010_v0, 0.0  ;;  %v1011_v63 = vadd.f32 %v1007_v46, %v1830_v3  ;;  %v1666_v46 = vld [vmem:[%s2110_s12 + $0x8] sm:$0xff]  }
 0x7e0   :  { %1017 = vadd.xlane.f32.xlu0 %v1016_v9  ;;  %v1025_v43 = vsel %vm93_vm0, %v1013_v10, 0.0  ;;  %v1668_v9 = vld [vmem:[%s2110_s12 + $0x18] sm:$0xff]  }
 0x7e1   :  { %v1019_v7 = vsel %vm93_vm0, %v1011_v63, 0.0 }
 0x7e2   :  { %1020 = vadd.xlane.f32.xlu1 %v1019_v7  ;;  %v1671_v7 = vld [vmem:[%s2110_s12 + $0x30] sm:$0xff]  }
 0x7e4   :  { %1023 = vadd.xlane.f32.xlu0 %v1022_v48  ;;  %v1445_v48 = vld [vmem:[%s2113_s11] ss:$0 sm:$0xff] }
 0x7e6   :  { %1026 = vadd.xlane.f32.xlu1 %v1025_v43 }
 0x86d   :  { %v1018_v49 = vpop.xlane.xlu0 %1017 }
 0x86e   :  { %v1029_v2 = vmul.f32 0.03125, %v1018_v49 }
 0x86f   :  { %v1021_v50 = vpop.xlane.xlu1 %1020 }
 0x870   :  { %v1033_v51 = vsub.f32 %v1010_v0, %v1029_v2  ;;  %v1030_v52 = vmul.f32 0.03125, %v1021_v50  ;;  %v1667_v0 = vld [vmem:[%s2110_s12 + $0x10] sm:$0xff]  }
 0x871   :  { %v1024_v3 = vpop.xlane.xlu0 %1023 }
 0x872   :  { %v1034_v53 = vsub.f32 %v1011_v63, %v1030_v52  ;;  %v1031_v4 = vmul.f32 0.03125, %v1024_v3  ;;  %v1037_v54 = vmul.f32 %v1033_v51, %v1033_v51  ;;  %v1669_v63 = vld [vmem:[%s2110_s12 + $0x20] sm:$0xff]  }
 0x873   :  { %v1027_v55 = vpop.xlane.xlu1 %1026 }
 0x874   :  { %v1035_v56 = vsub.f32 %v1012_v1, %v1031_v4  ;;  %v1032_v57 = vmul.f32 0.03125, %v1027_v55  ;;  %v1041_v6 = vsel %vm93_vm0, %v1037_v54, 0.0  ;;  %v1038_v58 = vmul.f32 %v1034_v53, %v1034_v53  ;;  %v1670_v1 = vld [vmem:[%s2110_s12 + $0x28] sm:$0xff]  }
 0x875   :  { %1042 = vadd.xlane.f32.xlu0 %v1041_v6 }
 0x876   :  { %v1036_v59 = vsub.f32 %v1013_v10, %v1032_v57  ;;  %v1044_v60 = vsel %vm93_vm0, %v1038_v58, 0.0  ;;  %v1039_v61 = vmul.f32 %v1035_v56, %v1035_v56  ;;  %v1672_v10 = vld [vmem:[%s2110_s12 + $0x38] sm:$0xff]   ;;  %v1450_v58 = vld [vmem:[%s2114_s13] ss:$0 sm:$0xff] }
 0x877   :  { %1045 = vadd.xlane.f32.xlu1 %v1044_v60 }
 0x878   :  { %v1047_v62 = vsel %vm93_vm0, %v1039_v61, 0.0  ;;  %v1040_v5 = vmul.f32 %v1036_v59, %v1036_v59 }
 0x879   :  { %1048 = vadd.xlane.f32.xlu0 %v1047_v62 }
 0x87a   :  { %v1050_v11 = vsel %vm93_vm0, %v1040_v5, 0.0 }
 0x87b   :  { %1051 = vadd.xlane.f32.xlu1 %v1050_v11 }
 0x902   :  { %v1043_v15 = vpop.xlane.xlu0 %1042 }
 0x903   :  { %v1053_v16 = vmul.f32 0.03125, %v1043_v15 }
 0x904   :  { %v1046_v17 = vpop.xlane.xlu1 %1045 }
 0x905   :  { %v1057_v18 = vadd.f32 1e-05, %v1053_v16  ;;  %v1054_v19 = vmul.f32 0.03125, %v1046_v17 }
 0x906   :  { %v1049_v20 = vpop.xlane.xlu0 %1048 }
 0x907   :  { %1705 = vrsqrt.f32 %v1057_v18  ;;  %v1058_v21 = vadd.f32 1e-05, %v1054_v19  ;;  %v1055_v22 = vmul.f32 0.03125, %v1049_v20 }
 0x908   :  { %v1052_v23 = vpop.xlane.xlu1 %1051 }
 0x909   :  { %1707 = vrsqrt.f32 %v1058_v21  ;;  %v1059_v24 = vadd.f32 1e-05, %v1055_v22  ;;  %v1056_v25 = vmul.f32 0.03125, %v1052_v23 }
 0x90b   :  { %1709 = vrsqrt.f32 %v1059_v24  ;;  %v1060_v26 = vadd.f32 1e-05, %v1056_v25 }
 0x90d   :  { %1711 = vrsqrt.f32 %v1060_v26 }
 0x911   :  { %v1706_v27 = vpop.eup %1705 }
 0x912   :  { %v1065_v29 = vmul.f32 %v1706_v27, %v1033_v51 }
 0x913   :  { %v1708_v30 = vpop.eup %1707 }
 0x914   :  { %v1066_v31 = vmul.f32 %v1708_v30, %v1034_v53  ;;  %v1075_v32 = vmul.f32 %v1443_v28, %v1065_v29 }
 0x915   :  { %v1710_v33 = vpop.eup %1709 }
 0x916   :  { %v1067_v35 = vmul.f32 %v1710_v33, %v1035_v56  ;;  %v1076_v36 = vmul.f32 %v1443_v28, %v1066_v31  ;;  %v1085_v41 = vadd.f32 %v1444_v34, %v1075_v32 }
 0x917   :  { %v1712_v8 = vpop.eup %1711 }
 0x918   :  { %v1077_v38 = vmul.f32 %v1443_v28, %v1067_v35  ;;  %v1068_v39 = vmul.f32 %v1712_v8, %v1036_v59  ;;  %v1086_v40 = vadd.f32 %v1444_v34, %v1076_v36 }
 0x91a   :  { %v1078_v47 = vmul.f32 %v1443_v28, %v1068_v39  ;;  %v1089_v42 = vpack.c.bf16 %v1086_v40, %v1085_v41  ;;  %v1087_v37 = vadd.f32 %v1444_v34, %v1077_v38 }
 0x91c   :  { %1617 = vmatprep.mubr.msk.bf16.mxu1 %vm93_vm0, %v1089_v42  ;;  %v1088_v44 = vadd.f32 %v1444_v34, %v1078_v47 }
 0x91e   :  { %v1090_v45 = vpack.c.bf16 %v1088_v44, %v1087_v37 }
 0x920   :  { %1618 = vmatmul.mubr.msk.bf16.vlgmr.msra.gmra.mrb[12].mxu1 %vm93_vm0, %v1090_v45 }
 0x921   :  { %1622 = vmatpush3.bf16.msra.mxu1 %v1665_v14 }
 0x922   :  { %1623 = vmatprep.subr.bf16.mxu1 %v1666_v46 }
 0x925   :  { %1624 = vmatpush3.bf16.msra.mxu1 %v1666_v46 }
 0x926   :  { %1625 = vmatprep.subr.bf16.mxu1 %v1667_v0 }
 0x929   :  { %1626 = vmatpush3.bf16.msra.mxu1 %v1667_v0 }
 0x92a   :  { %1627 = vmatprep.subr.bf16.mxu1 %v1668_v9 }
 0x92d   :  { %1628 = vmatpush3.bf16.msra.mxu1 %v1668_v9 }
 0x92e   :  { %1629 = vmatprep.subr.bf16.mxu1 %v1669_v63 }
 0x931   :  { %1630 = vmatpush3.bf16.msra.mxu1 %v1669_v63 }
 0x932   :  { %1631 = vmatprep.subr.bf16.mxu1 %v1670_v1 }
 0x935   :  { %1632 = vmatpush3.bf16.msra.mxu1 %v1670_v1 }
 0x936   :  { %1633 = vmatprep.subr.bf16.mxu1 %v1671_v7 }
 0x939   :  { %1634 = vmatpush3.bf16.msra.mxu1 %v1671_v7 }
 0x93a   :  { %1635 = vmatprep.subr.bf16.mxu1 %v1672_v10 }
 0x93d   :  { %1636 = vmatpush3.bf16.msra.mxu1 %v1672_v10 }
 0x9f3   :  { %v1619_v43 = vpop.f32.mrb[12].mxu1 }
 0x9f4   :  { %v1163_v49 = vadd.f32 %v1619_v43, %v1445_v48  ;;  %v1154_v2 = vpop.f32.mrb[13].mxu1  ;;  %v1459_v43 = vld [vmem:[%s2115_s16] ss:$0 sm:$0xff] }
 0x9f5   :  { %v1155_v50 = vadd.f32 %v1445_v48, %v1154_v2  ;;  %v1620_v51 = vpop.f32.mrb[14].mxu1 }
 0x9f6   :  { %v1166_v52 = vadd.f32 %v1620_v51, %v1445_v48  ;;  %v1157_v3 = vpop.f32.mrb[15].mxu1  ;;  %v1171_v4 = vmax.f32 %v1163_v49, 0.0 }
 0x9f7   :  { %v1158_v53 = vadd.f32 %v1445_v48, %v1157_v3  ;;  %v1169_v55 = vmax.f32 %v1155_v50, 0.0  ;;  %v1460_v50 = vld [vmem:[%s2116_s17] ss:$0 sm:$0xff] }
 0x9f8   :  { %v1172_v54 = vmax.f32 %v1166_v52, 0.0 }
 0x9f9   :  { %v1170_v56 = vmax.f32 %v1158_v53, 0.0 }
 0x9fa   :  { %v1174_v57 = vpack.c.bf16 %v1172_v54, %v1171_v4 }
 0x9fb   :  { %v1173_v6 = vpack.c.bf16 %v1170_v56, %v1169_v55 }
 0x9fd   :  { %1637 = vmatprep.mubr.bf16.mxu1 %v1173_v6 }
 0x9fe   :  { %1638 = vmatmul.mubr.bf16.vlgmr.msra.gmra.mrb[16].mxu1 %v1174_v57 }
 0xad1   :  { %v1639_v59 = vpop.f32.mrb[16].mxu1 }
 0xad2   :  { %v1280_v60 = vpop.f32.mrb[17].mxu1  ;;  %v1289_v61 = vadd.f32 %v1639_v59, %v1450_v58 }
 0xad3   :  { %v1281_v62 = vadd.f32 %v1450_v58, %v1280_v60  ;;  %v1640_v5 = vpop.f32.mrb[18].mxu1 }
 0xad4   :  { %v1283_v11 = vpop.f32.mrb[19].mxu1  ;;  %v1292_v12 = vadd.f32 %v1640_v5, %v1450_v58  ;;  %v1297_v17 = vadd.f32 %v1289_v61, %v1087_v37 }
 0xad5   :  { %v1284_v13 = vadd.f32 %v1450_v58, %v1283_v11  ;;  %v1295_v14 = vadd.f32 %v1281_v62, %v1085_v41 }
 0xad6   :  { %v1298_v19 = vadd.f32 %v1292_v12, %v1088_v44  ;;  %v1307_v20 = vsel %vm93_vm0, %v1297_v17, 0.0 }
 0xad7   :  { %v1301_v15 = vsel %vm93_vm0, %v1295_v14, 0.0  ;;  %v1296_v16 = vadd.f32 %v1284_v13, %v1086_v40 }
 0xad8   :  { %1302 = vadd.xlane.f32.xlu0 %v1301_v15  ;;  %v1310_v21 = vsel %vm93_vm0, %v1298_v19, 0.0 }
 0xad9   :  { %v1304_v18 = vsel %vm93_vm0, %v1296_v16, 0.0 }
 0xada   :  { %1305 = vadd.xlane.f32.xlu1 %v1304_v18 }
 0xadc   :  { %1308 = vadd.xlane.f32.xlu0 %v1307_v20 }
 0xade   :  { %1311 = vadd.xlane.f32.xlu1 %v1310_v21 }
 0xb65   :  { %v1303_v22 = vpop.xlane.xlu0 %1302 }
 0xb66   :  { %v1313_v23 = vmul.f32 0.03125, %v1303_v22 }
 0xb67   :  { %v1306_v24 = vpop.xlane.xlu1 %1305 }
 0xb68   :  { %v1317_v25 = vsub.f32 %v1295_v14, %v1313_v23  ;;  %v1314_v26 = vmul.f32 0.03125, %v1306_v24 }
 0xb69   :  { %v1309_v27 = vpop.xlane.xlu0 %1308 }
 0xb6a   :  { %v1318_v28 = vsub.f32 %v1296_v16, %v1314_v26  ;;  %v1315_v29 = vmul.f32 0.03125, %v1309_v27  ;;  %v1321_v30 = vmul.f32 %v1317_v25, %v1317_v25 }
 0xb6b   :  { %v1312_v31 = vpop.xlane.xlu1 %1311 }
 0xb6c   :  { %v1319_v32 = vsub.f32 %v1297_v17, %v1315_v29  ;;  %v1316_v33 = vmul.f32 0.03125, %v1312_v31  ;;  %v1325_v34 = vsel %vm93_vm0, %v1321_v30, 0.0  ;;  %v1322_v35 = vmul.f32 %v1318_v28, %v1318_v28 }
 0xb6d   :  { %1326 = vadd.xlane.f32.xlu0 %v1325_v34 }
 0xb6e   :  { %v1320_v36 = vsub.f32 %v1298_v19, %v1316_v33  ;;  %v1328_v8 = vsel %vm93_vm0, %v1322_v35, 0.0  ;;  %v1323_v38 = vmul.f32 %v1319_v32, %v1319_v32 }
 0xb6f   :  { %1329 = vadd.xlane.f32.xlu1 %v1328_v8 }
 0xb70   :  { %v1331_v39 = vsel %vm93_vm0, %v1323_v38, 0.0  ;;  %v1324_v41 = vmul.f32 %v1320_v36, %v1320_v36 }
 0xb71   :  { %1332 = vadd.xlane.f32.xlu0 %v1331_v39 }
 0xb72   :  { %v1334_v40 = vsel %vm93_vm0, %v1324_v41, 0.0 }
 0xb73   :  { %1335 = vadd.xlane.f32.xlu1 %v1334_v40 }
 0xbfa   :  { %v1327_v47 = vpop.xlane.xlu0 %1326 }
 0xbfb   :  { %v1337_v42 = vmul.f32 0.03125, %v1327_v47 }
 0xbfc   :  { %v1330_v37 = vpop.xlane.xlu1 %1329 }
 0xbfd   :  { %v1341_v44 = vadd.f32 1e-05, %v1337_v42  ;;  %v1338_v45 = vmul.f32 0.03125, %v1330_v37 }
 0xbfe   :  { %v1333_v46 = vpop.xlane.xlu0 %1332 }
 0xbff   :  { %1713 = vrsqrt.f32 %v1341_v44  ;;  %v1342_v0 = vadd.f32 1e-05, %v1338_v45  ;;  %v1339_v9 = vmul.f32 0.03125, %v1333_v46 }
 0xc00   :  { %v1336_v63 = vpop.xlane.xlu1 %1335 }
 0xc01   :  { %1715 = vrsqrt.f32 %v1342_v0  ;;  %v1343_v1 = vadd.f32 1e-05, %v1339_v9  ;;  %v1340_v7 = vmul.f32 0.03125, %v1336_v63 }
 0xc03   :  { %1717 = vrsqrt.f32 %v1343_v1  ;;  %v1344_v10 = vadd.f32 1e-05, %v1340_v7 }
 0xc05   :  { %1719 = vrsqrt.f32 %v1344_v10 }
 0xc09   :  { %v1714_v48 = vpop.eup %1713 }
 0xc0a   :  { %v1349_v49 = vmul.f32 %v1714_v48, %v1317_v25 }
 0xc0b   :  { %v1716_v2 = vpop.eup %1715 }
 0xc0c   :  { %v1359_v51 = vmul.f32 %v1459_v43, %v1349_v49  ;;  %v1350_v52 = vmul.f32 %v1716_v2, %v1318_v28 }
 0xc0d   :  { %v1718_v3 = vpop.eup %1717 }
 0xc0e   :  { %v1369_v53 = vadd.f32 %v1460_v50, %v1359_v51  ;;  %v1360_v4 = vmul.f32 %v1459_v43, %v1350_v52  ;;  %v1351_v54 = vmul.f32 %v1718_v3, %v1319_v32 }
 0xc0f   :  { %v1720_v55 = vpop.eup %1719 }
 0xc10   :  { %1373 = vst.msk [vmem:[%s2117_s18] sm:$0xff] %vm93_vm0, %v1369_v53  ;;  %v1370_v56 = vadd.f32 %v1460_v50, %v1360_v4  ;;  %v1361_v57 = vmul.f32 %v1459_v43, %v1351_v54  ;;  %v1352_v6 = vmul.f32 %v1720_v55, %v1320_v36 }
 0xc12   :  { %1374 = vst.msk [vmem:[%s2117_s18 + $0x8] sm:$0xff] %vm93_vm0, %v1370_v56  ;;  %v1371_v58 = vadd.f32 %v1460_v50, %v1361_v57  ;;  %v1362_v59 = vmul.f32 %v1459_v43, %v1352_v6 }
 0xc14   :  { %1375 = vst.msk [vmem:[%s2117_s18 + $0x10] sm:$0xff] %vm93_vm0, %v1371_v58  ;;  %v1372_v60 = vadd.f32 %v1460_v50, %v1362_v59 }
 0xc16   :  { %1376 = vst.msk [vmem:[%s2117_s18 + $0x18] sm:$0xff] %vm93_vm0, %v1372_v60 }

// kernel: tsformer_forward.11
= control target key start
LH: loop header
LB: loop body
LE: loop exit
PB: predicated region body
PF: predicated region fallthrough
CT: control target
= control target key end

     0   :  { %vm31_vm0 = vcmask 261120   ;;  %vm269_vm1 = vcmask 31744   ;;  %s492_s0 = inlined_call_operand.vmem [shape: f32[64,32], index: 0, kind: input, shape index: {}]   ;;  %s493_s3 = inlined_call_operand.vmem [shape: bf16[32,4], index: 3, kind: input, shape index: {}]   ;;  %s494_s1 = inlined_call_operand.vmem [shape: f32[1,32], index: 1, kind: input, shape index: {}]   ;;  %s495_s2 = inlined_call_operand.vmem [shape: f32[1,32], index: 2, kind: input, shape index: {}]   ;;  %s496_s4 = inlined_call_operand.vmem [shape: f32[1,4], index: 4, kind: input, shape index: {}]   ;;  %s497_s5 = inlined_call_operand.vmem [shape: f32[64,4], index: 5, kind: output, shape index: {}]  }
   0x1   :  { %v21_v0 = vld [vmem:[%s492_s0] sm:$0xff]  ;;  %v22_v2 = vld [vmem:[%s492_s0 + $0x8] sm:$0xff]  ;;  %v23_v8 = vld [vmem:[%s492_s0 + $0x10] sm:$0xff] }
   0x2   :  { %v25_v1 = vld [vmem:[%s492_s0 + $0x20] sm:$0xff]  ;;  %v32_v3 = vsel %vm31_vm0, %v21_v0, 0.0  ;;  %v26_v5 = vld [vmem:[%s492_s0 + $0x28] sm:$0xff]  ;;  %v35_v6 = vsel %vm31_vm0, %v22_v2, 0.0  ;;  %v24_v9 = vld [vmem:[%s492_s0 + $0x18] sm:$0xff]  ;;  %v38_v10 = vsel %vm31_vm0, %v23_v8, 0.0 }
   0x3   :  { %v44_v4 = vsel %vm31_vm0, %v25_v1, 0.0  ;;  %33 = vadd.xlane.f32.xlu0 %v32_v3  ;;  %v47_v7 = vsel %vm31_vm0, %v26_v5, 0.0  ;;  %v41_v11 = vsel %vm31_vm0, %v24_v9, 0.0  ;;  %v27_v12 = vld [vmem:[%s492_s0 + $0x30] sm:$0xff]  ;;  %v28_v13 = vld [vmem:[%s492_s0 + $0x38] sm:$0xff]  ;;  %v313_v56 = vld [vmem:[%s493_s3] sm:$0xff]  }
   0x4   :  { %45 = vadd.xlane.f32.xlu1 %v44_v4  ;;  %v50_v14 = vsel %vm31_vm0, %v27_v12, 0.0  ;;  %v53_v15 = vsel %vm31_vm0, %v28_v13, 0.0  ;;  %297 = vmatprep.subr.bf16.mxu0 %v313_v56  ;;  %v314_v57 = vld [vmem:[%s493_s3 + $0x8] sm:$0xff]  }
   0x5   :  { %309 = vmatprep.subr.bf16.mxu1 %v313_v56  ;;  %298 = vmatpush3.bf16.msra.mxu0 %v313_v56 }
   0x6   :  { %311 = vmatpush3.bf16.msra.mxu1 %v313_v56  ;;  %299 = vmatprep.subr.bf16.mxu0 %v314_v57 }
   0x7   :  { %36 = vadd.xlane.f32.xlu0 %v35_v6  ;;  %310 = vmatprep.subr.bf16.mxu1 %v314_v57 }
   0x8   :  { %48 = vadd.xlane.f32.xlu1 %v47_v7 }
   0x9   :  { %300 = vmatpush3.bf16.msra.mxu0 %v314_v57 }
   0xa   :  { %312 = vmatpush3.bf16.msra.mxu1 %v314_v57 }
   0xb   :  { %39 = vadd.xlane.f32.xlu0 %v38_v10 }
   0xc   :  { %42 = vadd.xlane.f32.xlu1 %v41_v11 }
   0xf   :  { %51 = vadd.xlane.f32.xlu0 %v50_v14 }
  0x10   :  { %54 = vadd.xlane.f32.xlu1 %v53_v15 }
  0x90   :  { %v34_v16 = vpop.xlane.xlu0 %33 }
  0x91   :  { %v46_v17 = vpop.xlane.xlu1 %45  ;;  %v57_v18 = vmul.f32 0.03125, %v34_v16 }
  0x92   :  { %v61_v19 = vmul.f32 0.03125, %v46_v17 }
  0x93   :  { %v393_v20 = vsub.f32 %v21_v0, %v57_v18 }
  0x94   :  { %v395_v21 = vsub.f32 %v25_v1, %v61_v19  ;;  %v37_v22 = vpop.xlane.xlu0 %36  ;;  %v282_v19 = vld [vmem:[%s494_s1] ss:$0 sm:$0xff] }
  0x95   :  { %v49_v23 = vpop.xlane.xlu1 %48  ;;  %v58_v24 = vmul.f32 0.03125, %v37_v22  ;;  %v73_v26 = vmul.f32 %v393_v20, %v393_v20 }
  0x96   :  { %v62_v25 = vmul.f32 0.03125, %v49_v23  ;;  %v77_v27 = vmul.f32 %v395_v21, %v395_v21 }
  0x97   :  { %v401_v28 = vsub.f32 %v22_v2, %v58_v24  ;;  %v81_v30 = vsel %vm31_vm0, %v73_v26, 0.0 }
  0x98   :  { %v403_v29 = vsub.f32 %v26_v5, %v62_v25  ;;  %82 = vadd.xlane.f32.xlu0 %v81_v30  ;;  %v40_v31 = vpop.xlane.xlu0 %39  ;;  %v93_v33 = vsel %vm31_vm0, %v77_v27, 0.0  ;;  %v283_v27 = vld [vmem:[%s495_s2] ss:$0 sm:$0xff] }
  0x99   :  { %v43_v32 = vpop.xlane.xlu1 %42  ;;  %v59_v34 = vmul.f32 0.03125, %v40_v31  ;;  %v74_v36 = vmul.f32 %v401_v28, %v401_v28 }
  0x9a   :  { %v60_v35 = vmul.f32 0.03125, %v43_v32  ;;  %v78_v37 = vmul.f32 %v403_v29, %v403_v29 }
  0x9b   :  { %v411_v38 = vsub.f32 %v23_v8, %v59_v34  ;;  %v84_v40 = vsel %vm31_vm0, %v74_v36, 0.0 }
  0x9c   :  { %v413_v39 = vsub.f32 %v24_v9, %v60_v35  ;;  %94 = vadd.xlane.f32.xlu0 %v93_v33  ;;  %85 = vadd.xlane.f32.xlu1 %v84_v40  ;;  %v52_v41 = vpop.xlane.xlu0 %51  ;;  %v96_v43 = vsel %vm31_vm0, %v78_v37, 0.0 }
  0x9d   :  { %v55_v42 = vpop.xlane.xlu1 %54  ;;  %v63_v44 = vmul.f32 0.03125, %v52_v41  ;;  %v75_v46 = vmul.f32 %v411_v38, %v411_v38 }
  0x9e   :  { %v64_v45 = vmul.f32 0.03125, %v55_v42  ;;  %v76_v47 = vmul.f32 %v413_v39, %v413_v39 }
  0x9f   :  { %v421_v48 = vsub.f32 %v27_v12, %v63_v44  ;;  %v87_v50 = vsel %vm31_vm0, %v75_v46, 0.0 }
  0xa0   :  { %v423_v49 = vsub.f32 %v28_v13, %v64_v45  ;;  %97 = vadd.xlane.f32.xlu1 %v96_v43  ;;  %88 = vadd.xlane.f32.xlu0 %v87_v50  ;;  %v90_v51 = vsel %vm31_vm0, %v76_v47, 0.0 }
  0xa1   :  { %v79_v52 = vmul.f32 %v421_v48, %v421_v48 }
  0xa2   :  { %v80_v53 = vmul.f32 %v423_v49, %v423_v49 }
  0xa3   :  { %v99_v54 = vsel %vm31_vm0, %v79_v52, 0.0 }
  0xa4   :  { %91 = vadd.xlane.f32.xlu1 %v90_v51  ;;  %100 = vadd.xlane.f32.xlu0 %v99_v54  ;;  %v102_v55 = vsel %vm31_vm0, %v80_v53, 0.0 }
  0xa8   :  { %103 = vadd.xlane.f32.xlu1 %v102_v55 }
 0x125   :  { %v83_v58 = vpop.xlane.xlu0 %82 }
 0x126   :  { %v105_v59 = vmul.f32 0.03125, %v83_v58 }
 0x128   :  { %v113_v60 = vadd.f32 1e-05, %v105_v59 }
 0x129   :  { %v86_v61 = vpop.xlane.xlu1 %85  ;;  %v95_v62 = vpop.xlane.xlu0 %94 }
 0x12a   :  { %315 = vrsqrt.f32 %v113_v60  ;;  %v106_v63 = vmul.f32 0.03125, %v86_v61  ;;  %v109_v0 = vmul.f32 0.03125, %v95_v62 }
 0x12c   :  { %v114_v1 = vadd.f32 1e-05, %v106_v63  ;;  %v117_v2 = vadd.f32 1e-05, %v109_v0 }
 0x12d   :  { %v98_v3 = vpop.xlane.xlu1 %97  ;;  %v89_v4 = vpop.xlane.xlu0 %88 }
 0x12e   :  { %317 = vrsqrt.f32 %v114_v1  ;;  %v110_v5 = vmul.f32 0.03125, %v98_v3  ;;  %v107_v6 = vmul.f32 0.03125, %v89_v4 }
 0x12f   :  { %319 = vrsqrt.f32 %v117_v2 }
 0x130   :  { %v118_v7 = vadd.f32 1e-05, %v110_v5  ;;  %v115_v8 = vadd.f32 1e-05, %v107_v6 }
 0x131   :  { %v92_v9 = vpop.xlane.xlu1 %91  ;;  %v101_v10 = vpop.xlane.xlu0 %100 }
 0x132   :  { %321 = vrsqrt.f32 %v118_v7  ;;  %v108_v11 = vmul.f32 0.03125, %v92_v9  ;;  %v111_v12 = vmul.f32 0.03125, %v101_v10 }
 0x133   :  { %323 = vrsqrt.f32 %v115_v8 }
 0x134   :  { %v316_v13 = vpop.eup %315  ;;  %v116_v14 = vadd.f32 1e-05, %v108_v11  ;;  %v119_v15 = vadd.f32 1e-05, %v111_v12 }
 0x135   :  { %v104_v16 = vpop.xlane.xlu1 %103  ;;  %v129_v17 = vmul.f32 %v316_v13, %v393_v20 }
 0x136   :  { %325 = vrsqrt.f32 %v116_v14  ;;  %v112_v18 = vmul.f32 0.03125, %v104_v16 }
 0x137   :  { %327 = vrsqrt.f32 %v119_v15  ;;  %v143_v26 = vmul.f32 %v282_v19, %v129_v17 }
 0x138   :  { %v318_v22 = vpop.eup %317  ;;  %v120_v23 = vadd.f32 1e-05, %v112_v18 }
 0x139   :  { %v320_v24 = vpop.eup %319  ;;  %v130_v25 = vmul.f32 %v318_v22, %v401_v28  ;;  %v157_v33 = vadd.f32 %v283_v27, %v143_v26 }
 0x13a   :  { %329 = vrsqrt.f32 %v120_v23  ;;  %v133_v20 = vmul.f32 %v320_v24, %v395_v21 }
 0x13b   :  { %v144_v30 = vmul.f32 %v282_v19, %v130_v25 }
 0x13c   :  { %v322_v31 = vpop.eup %321  ;;  %v147_v36 = vmul.f32 %v282_v19, %v133_v20 }
 0x13d   :  { %v324_v32 = vpop.eup %323  ;;  %v158_v34 = vadd.f32 %v283_v27, %v144_v30  ;;  %v134_v35 = vmul.f32 %v322_v31, %v403_v29 }
 0x13e   :  { %v131_v37 = vmul.f32 %v324_v32, %v411_v38  ;;  %v161_v44 = vadd.f32 %v283_v27, %v147_v36 }
 0x13f   :  { %v165_v40 = vpack.c.bf16 %v158_v34, %v157_v33  ;;  %v148_v28 = vmul.f32 %v282_v19, %v134_v35 }
 0x140   :  { %v326_v41 = vpop.eup %325  ;;  %v145_v45 = vmul.f32 %v282_v19, %v131_v37 }
 0x141   :  { %v328_v42 = vpop.eup %327  ;;  %v132_v43 = vmul.f32 %v326_v41, %v413_v39  ;;  %301 = vmatprep.mubr.msk.bf16.mxu0 %vm31_vm0, %v165_v40  ;;  %v162_v21 = vadd.f32 %v283_v27, %v148_v28 }
 0x142   :  { %v135_v46 = vmul.f32 %v328_v42, %v421_v48  ;;  %v159_v38 = vadd.f32 %v283_v27, %v145_v45  ;;  %v284_v48 = vld [vmem:[%s496_s4] ss:$0 sm:$0xff] }
 0x143   :  { %v167_v47 = vpack.c.bf16 %v162_v21, %v161_v44  ;;  %v146_v50 = vmul.f32 %v282_v19, %v132_v43 }
 0x144   :  { %v330_v51 = vpop.eup %329  ;;  %v149_v53 = vmul.f32 %v282_v19, %v135_v46 }
 0x145   :  { %v136_v29 = vmul.f32 %v330_v51, %v423_v49  ;;  %305 = vmatprep.mubr.msk.bf16.mxu1 %vm31_vm0, %v167_v47  ;;  %v160_v52 = vadd.f32 %v283_v27, %v146_v50 }
 0x146   :  { %v163_v39 = vadd.f32 %v283_v27, %v149_v53 }
 0x147   :  { %v166_v54 = vpack.c.bf16 %v160_v52, %v159_v38  ;;  %v150_v55 = vmul.f32 %v282_v19, %v136_v29 }
 0x149   :  { %302 = vmatmul.mubr.msk.bf16.vlgmr.msra.gmra.mrb[0].mxu0 %vm31_vm0, %v166_v54  ;;  %v164_v56 = vadd.f32 %v283_v27, %v150_v55 }
 0x14b   :  { %v168_v57 = vpack.c.bf16 %v164_v56, %v163_v39 }
 0x14d   :  { %306 = vmatmul.mubr.msk.bf16.vlgmr.msra.gmra.mrb[0].mxu1 %vm31_vm0, %v168_v57 }
 0x21c   :  { %v303_v58 = vpop.f32.mrb[0].mxu0 }
 0x21d   :  { %v247_v49 = vadd.f32 %v303_v58, %v284_v48  ;;  %v238_v59 = vpop.f32.mrb[1].mxu0 }
 0x21e   :  { %v239_v60 = vadd.f32 %v284_v48, %v238_v59  ;;  %v304_v61 = vpop.f32.mrb[2].mxu0 }
 0x21f   :  { %272 = vst.msk [vmem:[%s497_s5 + $0x10] sm:$0xff] %vm269_vm1, %v247_v49  ;;  %v250_v62 = vadd.f32 %v304_v61, %v284_v48  ;;  %v241_v63 = vpop.f32.mrb[3].mxu0 }
 0x220   :  { %270 = vst.msk [vmem:[%s497_s5] sm:$0xff] %vm269_vm1, %v239_v60  ;;  %v242_v0 = vadd.f32 %v284_v48, %v241_v63  ;;  %v307_v1 = vpop.f32.mrb[0].mxu1 }
 0x221   :  { %273 = vst.msk [vmem:[%s497_s5 + $0x18] sm:$0xff] %vm269_vm1, %v250_v62  ;;  %v263_v2 = vadd.f32 %v307_v1, %v284_v48  ;;  %v254_v3 = vpop.f32.mrb[1].mxu1 }
 0x222   :  { %271 = vst.msk [vmem:[%s497_s5 + $0x8] sm:$0xff] %vm269_vm1, %v242_v0  ;;  %v255_v4 = vadd.f32 %v284_v48, %v254_v3  ;;  %v308_v5 = vpop.f32.mrb[2].mxu1 }
 0x223   :  { %276 = vst.msk [vmem:[%s497_s5 + $0x30] sm:$0xff] %vm269_vm1, %v263_v2  ;;  %v266_v6 = vadd.f32 %v308_v5, %v284_v48  ;;  %v257_v7 = vpop.f32.mrb[3].mxu1 }
 0x224   :  { %274 = vst.msk [vmem:[%s497_s5 + $0x20] sm:$0xff] %vm269_vm1, %v255_v4  ;;  %v258_v8 = vadd.f32 %v284_v48, %v257_v7 }
 0x225   :  { %277 = vst.msk [vmem:[%s497_s5 + $0x38] sm:$0xff] %vm269_vm1, %v266_v6 }
 0x226   :  { %275 = vst.msk [vmem:[%s497_s5 + $0x28] sm:$0xff] %vm269_vm1, %v258_v8 }

// kernel: tsformer_forward.10
= control target key start
LH: loop header
LB: loop body
LE: loop exit
PB: predicated region body
PF: predicated region fallthrough
CT: control target
= control target key end

     0   :  { %vm111_vm0 = vcmask 261120   ;;  %vm373_vm1 = vcmask 130048   ;;  %vm479_vm2 = vcmask 523264   ;;  %s3245_s3 = inlined_call_operand.vmem [shape: bf16[2,32,16], index: 3, kind: input, shape index: {}]   ;;  %s3246_s0 = inlined_call_operand.vmem [shape: f32[64,32], index: 0, kind: input, shape index: {}]   ;;  %s3247_s2 = inlined_call_operand.vmem [shape: bf16[2,32,16], index: 2, kind: input, shape index: {}]   ;;  %s3248_s6 = inlined_call_operand.vmem [shape: f32[2,1,16], index: 6, kind: input, shape index: {}]   ;;  %s3249_s5 = inlined_call_operand.vmem [shape: f32[2,1,16], index: 5, kind: input, shape index: {}]   ;;  %s3250_s4 = inlined_call_operand.vmem [shape: bf16[2,32,16], index: 4, kind: input, shape index: {}]   ;;  %s3251_s1 = inlined_call_operand.vmem [shape: f32[64,64], index: 1, kind: input, shape index: {}]   ;;  %s3252_s7 = inlined_call_operand.vmem [shape: f32[2,1,16], index: 7, kind: input, shape index: {}]   ;;  %s3253_s8 = inlined_call_operand.vmem [shape: bf16[2,16,32], index: 8, kind: input, shape index: {}]   ;;  %s3254_s9 = inlined_call_operand.vmem [shape: f32[1,32], index: 9, kind: input, shape index: {}]   ;;  %s3255_s10 = inlined_call_operand.vmem [shape: bf16[32,128], index: 10, kind: input, shape index: {}]   ;;  %s3256_s12 = inlined_call_operand.vmem [shape: bf16[128,32], index: 12, kind: input, shape index: {}]   ;;  %s3257_s14 = inlined_call_operand.vmem [shape: f32[1,32], index: 14, kind: input, shape index: {}]   ;;  %s3258_s15 = inlined_call_operand.vmem [shape: f32[1,32], index: 15, kind: input, shape index: {}]   ;;  %s3259_s11 = inlined_call_operand.vmem [shape: f32[1,128], index: 11, kind: input, shape index: {}]   ;;  %s3260_s13 = inlined_call_operand.vmem [shape: f32[1,32], index: 13, kind: input, shape index: {}]   ;;  %s3261_s16 = inlined_call_operand.vmem [shape: f32[1,32], index: 16, kind: input, shape index: {}]   ;;  %s3262_s17 = inlined_call_operand.vmem [shape: f32[1,32], index: 17, kind: input, shape index: {}]   ;;  %s3263_s18 = inlined_call_operand.vmem [shape: f32[64,32], index: 18, kind: output, shape index: {}]  }
   0x1   :  { %3267 = sst [smem:[#allocation2_spill]] %s3245_s3  ;;  %v1959_v25 = vld [vmem:[%s3248_s6] ss:$0 sm:$0xff] }
   0x2   :  { %3268 = sst [smem:[#allocation3_spill]] %s3246_s0  ;;  %s3270_s29 = sld [smem:[#allocation2_spill]]  ;;  %v1952_v33 = vld [vmem:[%s3249_s5] ss:$0 sm:$0xff] }
   0x3   :  { %3269 = sst [smem:[#allocation4_spill]] %s3247_s2  ;;  %s3271_s20 = sld [smem:[#allocation3_spill]] }
   0x4   :  { %s3272_s23 = sld [smem:[#allocation4_spill]] }
   0x8   :  { %v2362_v0 = vld [vmem:[%s3270_s29] sm:$0xff]   ;;  %v2363_v1 = vld [vmem:[%s3270_s29 + $0x8] sm:$0xff]  }
   0x9   :  { %2166 = vmatprep.subr.bf16.mxu1 %v2362_v0  ;;  %v60_v2 = vld [vmem:[%s3271_s20] sm:$0xff]  ;;  %v61_v3 = vld [vmem:[%s3271_s20 + $0x8] sm:$0xff]  ;;  %v62_v4 = vld [vmem:[%s3271_s20 + $0x10] sm:$0xff] }
   0xa   :  { %2167 = vmatpush3.bf16.msra.mxu1 %v2362_v0  ;;  %v2592_v5 = vmul.f32 5.656854, %v60_v2  ;;  %v2594_v6 = vmul.f32 5.656854, %v61_v3  ;;  %v63_v7 = vld [vmem:[%s3271_s20 + $0x18] sm:$0xff]  ;;  %v64_v8 = vld [vmem:[%s3271_s20 + $0x20] sm:$0xff] }
   0xb   :  { %2168 = vmatprep.subr.bf16.mxu1 %v2363_v1  ;;  %v2602_v9 = vmul.f32 5.656854, %v62_v4  ;;  %v2604_v10 = vmul.f32 5.656854, %v63_v7  ;;  %v65_v11 = vld [vmem:[%s3271_s20 + $0x28] sm:$0xff]  ;;  %v66_v12 = vld [vmem:[%s3271_s20 + $0x30] sm:$0xff] }
   0xc   :  { %v2614_v13 = vpack.c.bf16 %v2594_v6, %v2592_v5  ;;  %v2616_v14 = vmul.f32 5.656854, %v64_v8  ;;  %v2618_v15 = vmul.f32 5.656854, %v65_v11  ;;  %v67_v16 = vld [vmem:[%s3271_s20 + $0x38] sm:$0xff]  ;;  %v2364_v17 = vld [vmem:[%s3272_s23] sm:$0xff]  }
   0xd   :  { %v2628_v18 = vpack.c.bf16 %v2604_v10, %v2602_v9  ;;  %v2630_v19 = vmul.f32 5.656854, %v66_v12  ;;  %v2632_v20 = vmul.f32 5.656854, %v67_v16  ;;  %2154 = vmatprep.subr.bf16.mxu0 %v2364_v17  ;;  %v2365_v22 = vld [vmem:[%s3272_s23 + $0x8] sm:$0xff]   ;;  %v2366_v8 = vld [vmem:[%s3250_s4] sm:$0xff]  }
   0xe   :  { %2169 = vmatpush3.bf16.msra.mxu1 %v2363_v1  ;;  %2170 = vmatprep.mubr.msk.bf16.mxu1 %vm111_vm0, %v2614_v13  ;;  %v2638_v21 = vpack.c.bf16 %v2618_v15, %v2616_v14  ;;  %v2367_v11 = vld [vmem:[%s3250_s4 + $0x8] sm:$0xff]   ;;  %v2698_v16 = vld [vmem:[%s3251_s1 + $0x10] sm:$0xff] }
   0xf   :  { %2158 = vmatprep.mubr.msk.bf16.mxu0 %vm111_vm0, %v2614_v13  ;;  %2155 = vmatpush3.bf16.msra.mxu0 %v2364_v17  ;;  %v2651_v23 = vpack.c.bf16 %v2632_v20, %v2630_v19 }
  0x10   :  { %2156 = vmatprep.subr.bf16.mxu0 %v2365_v22 }
  0x11   :  { %2171 = vmatmul.mubr.msk.bf16.vlgmr.msra.gmra.mrb[0].mxu1 %vm111_vm0, %v2628_v18 }
  0x12   :  { %2174 = vmatprep.mubr.msk.bf16.mxu1 %vm111_vm0, %v2638_v21 }
  0x13   :  { %2157 = vmatpush3.bf16.msra.mxu0 %v2365_v22 }
  0x14   :  { %2178 = vmatprep.subr.bf16.mxu0 %v2366_v8 }
  0x16   :  { %2159 = vmatmul.mubr.msk.bf16.vlgmr.msra.gmra.mrb[0].mxu0 %vm111_vm0, %v2628_v18 }
  0x17   :  { %2162 = vmatprep.mubr.msk.bf16.mxu0 %vm111_vm0, %v2638_v21  ;;  %2179 = vmatpush3.bf16.msra.mxu0 %v2366_v8 }
  0x18   :  { %2180 = vmatprep.subr.bf16.mxu0 %v2367_v11 }
  0x19   :  { %2175 = vmatmul.mubr.msk.bf16.gmra.mrb[4].mxu1 %vm111_vm0, %v2651_v23 }
  0x1b   :  { %2181 = vmatpush3.bf16.msra.mxu0 %v2367_v11 }
  0x1e   :  { %2163 = vmatmul.mubr.msk.bf16.gmra.mrb[4].mxu0 %vm111_vm0, %v2651_v23 }
  0x1f   :  { %2182 = vmatprep.mubr.msk.bf16.mxu0 %vm111_vm0, %v2614_v13 }
  0x26   :  { %2183 = vmatmul.mubr.msk.bf16.vlgmr.msra.gmra.mrb[8].mxu0 %vm111_vm0, %v2628_v18 }
  0x27   :  { %2186 = vmatprep.mubr.msk.bf16.mxu0 %vm111_vm0, %v2638_v21 }
  0x2e   :  { %2187 = vmatmul.mubr.msk.bf16.gmra.mrb[12].mxu0 %vm111_vm0, %v2651_v23 }
  0xe4   :  { %v2172_v24 = vpop.f32.mrb[0].mxu1 }
  0xe5   :  { %v246_v26 = vpop.f32.mrb[1].mxu1  ;;  %v255_v28 = vadd.f32 %v2172_v24, %v1959_v25  ;;  %v2703_v24 = vld [vmem:[%s3251_s1] sm:$0xff] }
  0xe6   :  { %v2173_v27 = vpop.f32.mrb[2].mxu1  ;;  %v247_v31 = vadd.f32 %v1959_v25, %v246_v26 }
  0xe7   :  { %v258_v29 = vadd.f32 %v2173_v27, %v1959_v25  ;;  %v249_v30 = vpop.f32.mrb[3].mxu1  ;;  %v2708_v27 = vld [vmem:[%s3251_s1 + $0x18] sm:$0xff] }
  0xe8   :  { %v250_v32 = vadd.f32 %v1959_v25, %v249_v30 }
  0xe9   :  { %v370_v34 = vpack.c.bf16 %v258_v29, %v255_v28  ;;  %v2160_v36 = vpop.f32.mrb[0].mxu0 }
  0xea   :  { %v369_v35 = vpack.c.bf16 %v250_v32, %v247_v31  ;;  %v167_v37 = vadd.f32 %v2160_v36, %v1952_v33  ;;  %v158_v38 = vpop.f32.mrb[1].mxu0  ;;  %v2716_v31 = vld [vmem:[%s3251_s1 + $0x8] sm:$0xff] }
  0xeb   :  { %v159_v41 = vadd.f32 %v1952_v33, %v158_v38  ;;  %v2161_v42 = vpop.f32.mrb[2].mxu0  ;;  %v390_v60 = vsel %vm373_vm1, %v370_v34, 0 }
  0xec   :  { %2354 = vmatprep.subr.msk.bf16.mxu1 %vm373_vm1, %v369_v35  ;;  %v387_v39 = vsel %vm373_vm1, %v369_v35, 0  ;;  %v2176_v40 = vpop.f32.mrb[4].mxu1  ;;  %v170_v45 = vadd.f32 %v2161_v42, %v1952_v33  ;;  %v161_v46 = vpop.f32.mrb[3].mxu0 }
  0xed   :  { %2191 = vmatpush3.bf16.xpose.msra.mxu1 %v387_v39  ;;  %v271_v43 = vadd.f32 %v2176_v40, %v1959_v25  ;;  %v262_v44 = vpop.f32.mrb[5].mxu1  ;;  %v162_v49 = vadd.f32 %v1952_v33, %v161_v46 }
  0xee   :  { %2355 = vmatprep.subr.msk.bf16.mxu1 %vm373_vm1, %v370_v34  ;;  %v263_v47 = vadd.f32 %v1959_v25, %v262_v44  ;;  %v2177_v48 = vpop.f32.mrb[6].mxu1  ;;  %v366_v52 = vpack.c.bf16 %v170_v45, %v167_v37 }
  0xef   :  { %v274_v50 = vadd.f32 %v2177_v48, %v1959_v25  ;;  %v265_v51 = vpop.f32.mrb[7].mxu1  ;;  %v365_v54 = vpack.c.bf16 %v162_v49, %v159_v41  ;;  %v2736_v41 = vld [vmem:[%s3251_s1 + $0x20] sm:$0xff]  ;;  %v2748_v48 = vld [vmem:[%s3251_s1 + $0x30] sm:$0xff] }
  0xf0   :  { %v266_v53 = vadd.f32 %v1959_v25, %v265_v51 }
  0xf1   :  { %v372_v55 = vpack.c.bf16 %v274_v50, %v271_v43  ;;  %2198 = vmatprep.mubr.msk.bf16.mxu1 %vm373_vm1, %v365_v54  ;;  %v2164_v57 = vpop.f32.mrb[4].mxu0 }
  0xf2   :  { %v371_v56 = vpack.c.bf16 %v266_v53, %v263_v47  ;;  %v183_v58 = vadd.f32 %v2164_v57, %v1952_v33  ;;  %v174_v59 = vpop.f32.mrb[5].mxu0  ;;  %v2743_v47 = vld [vmem:[%s3251_s1 + $0x28] sm:$0xff] }
  0xf3   :  { %v175_v61 = vadd.f32 %v1952_v33, %v174_v59  ;;  %v2165_v62 = vpop.f32.mrb[6].mxu0  ;;  %v396_v7 = vsel %vm373_vm1, %v372_v55, 0 }
  0xf4   :  { %v186_v63 = vadd.f32 %v2165_v62, %v1952_v33  ;;  %v177_v0 = vpop.f32.mrb[7].mxu0  ;;  %v393_v4 = vsel %vm373_vm1, %v371_v56, 0  ;;  %v2784_v62 = vld [vmem:[%s3252_s7] ss:$0 sm:$0xff] }
  0xf5   :  { %2193 = vmatpush3.bf16.xpose.msra.mxu1 %v390_v60  ;;  %v178_v1 = vadd.f32 %v1952_v33, %v177_v0  ;;  %v2368_v60 = vld [vmem:[%s3270_s29 + $0x10] sm:$0xff]  }
  0xf6   :  { %2356 = vmatprep.subr.msk.bf16.mxu1 %vm373_vm1, %v371_v56  ;;  %v368_v2 = vpack.c.bf16 %v186_v63, %v183_v58 }
  0xf7   :  { %v367_v3 = vpack.c.bf16 %v178_v1, %v175_v61  ;;  %v2369_v61 = vld [vmem:[%s3270_s29 + $0x18] sm:$0xff]  }
  0xf9   :  { %v2184_v63 = vpop.f32.mrb[8].mxu0 }
  0xfa   :  { %v343_v0 = vadd.f32 %v2184_v63, %v2784_v62  ;;  %v334_v1 = vpop.f32.mrb[9].mxu0 }
  0xfd   :  { %2195 = vmatpush3.bf16.xpose.msra.mxu1 %v393_v4 }
  0xfe   :  { %2357 = vmatprep.subr.msk.bf16.mxu1 %vm373_vm1, %v372_v55 }
 0x105   :  { %2197 = vmatpush3.bf16.xpose.msra.mxu1 %v396_v7 }
 0x106   :  { %2234 = vmatprep.subr.bf16.mxu1 %v2368_v60 }
 0x10c   :  { %2199 = vmatmul.mubr.msk.bf16.vlgmr.msra.gmra.mrb[8].mxu1 %vm373_vm1, %v366_v52  ;;  %v2754_v52 = vld [vmem:[%s3251_s1 + $0x38] sm:$0xff] }
 0x10d   :  { %2202 = vmatprep.mubr.msk.bf16.mxu1 %vm373_vm1, %v367_v3  ;;  %2235 = vmatpush3.bf16.msra.mxu1 %v2368_v60  ;;  %v2185_v3 = vpop.f32.mrb[10].mxu0 }
 0x10e   :  { %2236 = vmatprep.subr.bf16.mxu1 %v2369_v61  ;;  %v346_v4 = vadd.f32 %v2185_v3, %v2784_v62  ;;  %v337_v7 = vpop.f32.mrb[11].mxu0 }
 0x10f   :  { %v338_v8 = vadd.f32 %v2784_v62, %v337_v7 }
 0x110   :  { %v573_v11 = vpack.c.bf16 %v346_v4, %v343_v0 }
 0x111   :  { %2237 = vmatpush3.bf16.msra.mxu1 %v2369_v61 }
 0x114   :  { %2203 = vmatmul.mubr.msk.bf16.gmra.mrb[12].mxu1 %vm373_vm1, %v368_v2  ;;  %v335_v2 = vadd.f32 %v2784_v62, %v334_v1 }
 0x115   :  { %2238 = vmatprep.mubr.msk.bf16.mxu1 %vm111_vm0, %v2614_v13 }
 0x11c   :  { %2239 = vmatmul.mubr.msk.bf16.vlgmr.msra.gmra.mrb[16].mxu1 %vm111_vm0, %v2628_v18 }
 0x11d   :  { %2242 = vmatprep.mubr.msk.bf16.mxu1 %vm111_vm0, %v2638_v21 }
 0x124   :  { %2243 = vmatmul.mubr.msk.bf16.gmra.mrb[20].mxu1 %vm111_vm0, %v2651_v23 }
 0x1df   :  { %v2200_v12 = vpop.f32.mrb[8].mxu1 }
 0x1e0   :  { %v465_v17 = vmul.f32 0.25, %v2200_v12  ;;  %v432_v22 = vpop.f32.mrb[9].mxu1  ;;  %v572_v12 = vpack.c.bf16 %v338_v8, %v335_v2 }
 0x1e1   :  { %v463_v25 = vmul.f32 0.25, %v432_v22  ;;  %v2201_v26 = vpop.f32.mrb[10].mxu1 }
 0x1e2   :  { %v466_v28 = vmul.f32 0.25, %v2201_v26  ;;  %v435_v29 = vpop.f32.mrb[11].mxu1  ;;  %v2711_v30 = vadd.f32 %v465_v17, %v2698_v16  ;;  %v2188_v17 = vpop.f32.mrb[12].mxu0  ;;  %2206 = vmatprep.subr.bf16.mxu0 %v572_v12 }
 0x1e3   :  { %v464_v32 = vmul.f32 0.25, %v435_v29  ;;  %v2719_v33 = vadd.f32 %v463_v25, %v2703_v24  ;;  %v2791_v22 = vadd.f32 %v2188_v17, %v2784_v62  ;;  %v350_v25 = vpop.f32.mrb[13].mxu0  ;;  %2207 = vmatpush3.bf16.msra.mxu0 %v572_v12 }
 0x1e4   :  { %v486_v34 = vsel %vm479_vm2, %v2711_v30, -inf  ;;  %v2724_v35 = vadd.f32 %v466_v28, %v2708_v27  ;;  %2208 = vmatprep.subr.bf16.mxu0 %v573_v11  ;;  %v351_v12 = vadd.f32 %v2784_v62, %v350_v25  ;;  %v2189_v17 = vpop.f32.mrb[14].mxu0  ;;  %v2838_v25 = vld [vmem:[%s3272_s23 + $0x10] sm:$0xff]  }
 0x1e5   :  { %487 = vmax.xlane.f32.xlu1 %v486_v34  ;;  %v480_v36 = vsel %vm479_vm2, %v2719_v33, -inf  ;;  %v2729_v37 = vadd.f32 %v464_v32, %v2716_v31 }
 0x1e6   :  { %481 = vmax.xlane.f32.xlu0 %v480_v36  ;;  %v489_v40 = vsel %vm479_vm2, %v2724_v35, -inf }
 0x1e7   :  { %v2204_v38 = vpop.f32.mrb[12].mxu1  ;;  %v483_v45 = vsel %vm479_vm2, %v2729_v37, -inf  ;;  %2209 = vmatpush3.bf16.msra.mxu0 %v573_v11 }
 0x1e8   :  { %v448_v39 = vpop.f32.mrb[13].mxu1  ;;  %v469_v42 = vmul.f32 0.25, %v2204_v38 }
 0x1e9   :  { %v467_v43 = vmul.f32 0.25, %v448_v39  ;;  %490 = vmax.xlane.f32.xlu1 %v489_v40  ;;  %v2205_v44 = vpop.f32.mrb[14].mxu1 }
 0x1ea   :  { %484 = vmax.xlane.f32.xlu0 %v483_v45  ;;  %v451_v46 = vpop.f32.mrb[15].mxu1  ;;  %v470_v49 = vmul.f32 0.25, %v2205_v44  ;;  %v2759_v55 = vadd.f32 %v469_v42, %v2748_v48 }
 0x1eb   :  { %v468_v50 = vmul.f32 0.25, %v451_v46  ;;  %v475_v51 = vadd.f32 %v467_v43, %v2736_v41 }
 0x1ec   :  { %v2763_v57 = vadd.f32 %v470_v49, %v2754_v52  ;;  %v498_v58 = vsel %vm479_vm2, %v2759_v55, -inf }
 0x1ed   :  { %v492_v53 = vsel %vm479_vm2, %v475_v51, -inf  ;;  %v476_v54 = vadd.f32 %v468_v50, %v2743_v47 }
 0x1ee   :  { %493 = vmax.xlane.f32.xlu0 %v492_v53  ;;  %v501_v59 = vsel %vm479_vm2, %v2763_v57, -inf }
 0x1ef   :  { %v495_v56 = vsel %vm479_vm2, %v476_v54, -inf }
 0x1f0   :  { %496 = vmax.xlane.f32.xlu1 %v495_v56 }
 0x1f2   :  { %499 = vmax.xlane.f32.xlu0 %v498_v58 }
 0x1f4   :  { %502 = vmax.xlane.f32.xlu1 %v501_v59 }
 0x272   :  { %v488_v26 = vpop.xlane.xlu1 %487 }
 0x273   :  { %v506_v28 = vsub.f32 %v2711_v30, %v488_v26  ;;  %v482_v29 = vpop.xlane.xlu0 %481 }
 0x274   :  { %v504_v32 = vsub.f32 %v2719_v33, %v482_v29  ;;  %v353_v29 = vpop.f32.mrb[15].mxu0 }
 0x275   :  { %v516_v34 = vmul.f32 1.442695, %v506_v28  ;;  %v362_v28 = vadd.f32 %v2189_v17, %v2784_v62 }
 0x276   :  { %v512_v36 = vmul.f32 1.442695, %v504_v32  ;;  %v491_v38 = vpop.xlane.xlu1 %490  ;;  %v354_v32 = vadd.f32 %v2784_v62, %v353_v29 }
 0x277   :  { %v507_v39 = vsub.f32 %v2724_v35, %v491_v38  ;;  %v485_v40 = vpop.xlane.xlu0 %484  ;;  %v1998_v38 = vld [vmem:[%s3248_s6 + $0x1] ss:$0 sm:$0xff] }
 0x278   :  { %2386 = vpow2.f32 %v512_v36  ;;  %v505_v42 = vsub.f32 %v2729_v37, %v485_v40  ;;  %v574_v36 = vpack.c.bf16 %v354_v32, %v351_v12 }
 0x279   :  { %2388 = vpow2.f32 %v516_v34  ;;  %v518_v43 = vmul.f32 1.442695, %v507_v39  ;;  %v575_v34 = vpack.c.bf16 %v362_v28, %v2791_v22  ;;  %v2240_v39 = vpop.f32.mrb[16].mxu1 }
 0x27a   :  { %v514_v44 = vmul.f32 1.442695, %v505_v42  ;;  %2210 = vmatprep.subr.bf16.mxu0 %v574_v36  ;;  %v817_v62 = vadd.f32 %v2240_v39, %v1998_v38  ;;  %v808_v40 = vpop.f32.mrb[17].mxu1 }
 0x27b   :  { %v494_v45 = vpop.xlane.xlu0 %493  ;;  %2211 = vmatpush3.bf16.msra.mxu0 %v574_v36  ;;  %v809_v22 = vadd.f32 %v1998_v38, %v808_v40  ;;  %v2241_v42 = vpop.f32.mrb[18].mxu1 }
 0x27c   :  { %2390 = vpow2.f32 %v514_v44  ;;  %v508_v46 = vsub.f32 %v475_v51, %v494_v45  ;;  %2212 = vmatprep.subr.bf16.mxu0 %v575_v34  ;;  %v811_v44 = vpop.f32.mrb[19].mxu1 }
 0x27d   :  { %v497_v49 = vpop.xlane.xlu1 %496  ;;  %2392 = vpow2.f32 %v518_v43  ;;  %v820_v43 = vadd.f32 %v2241_v42, %v1998_v38  ;;  %v812_v45 = vadd.f32 %v1998_v38, %v811_v44 }
 0x27e   :  { %v520_v30 = vmul.f32 1.442695, %v508_v46  ;;  %v509_v50 = vsub.f32 %v476_v54, %v497_v49 }
 0x27f   :  { %v500_v33 = vpop.xlane.xlu0 %499  ;;  %2213 = vmatpush3.bf16.msra.mxu0 %v575_v34  ;;  %v934_v46 = vpack.c.bf16 %v820_v43, %v817_v62  ;;  %v933_v49 = vpack.c.bf16 %v812_v45, %v809_v22  ;;  %v2371_v45 = vld [vmem:[%s3272_s23 + $0x18] sm:$0xff]  }
 0x280   :  { %2394 = vpow2.f32 %v520_v30  ;;  %v522_v53 = vmul.f32 1.442695, %v509_v50  ;;  %v510_v56 = vsub.f32 %v2759_v55, %v500_v33  ;;  %2222 = vmatprep.subr.bf16.mxu0 %v2838_v25  ;;  %v2244_v50 = vpop.f32.mrb[20].mxu1 }
 0x281   :  { %v503_v35 = vpop.xlane.xlu1 %502  ;;  %2358 = vmatprep.subr.msk.bf16.mxu1 %vm373_vm1, %v933_v49  ;;  %v950_v30 = vsel %vm373_vm1, %v933_v49, 0  ;;  %v833_v33 = vadd.f32 %v2244_v50, %v1998_v38 }
 0x282   :  { %v2798_v58 = vpop.eup %2386  ;;  %2396 = vpow2.f32 %v522_v53  ;;  %v524_v37 = vmul.f32 1.442695, %v510_v56  ;;  %v511_v59 = vsub.f32 %v2763_v57, %v503_v35  ;;  %2259 = vmatpush3.bf16.xpose.msra.mxu1 %v950_v30  ;;  %v824_v53 = vpop.f32.mrb[21].mxu1 }
 0x283   :  { %v528_v60 = vsel %vm479_vm2, %v2798_v58, 0.0  ;;  %v2803_v51 = vpop.eup %2388  ;;  %2359 = vmatprep.subr.msk.bf16.mxu1 %vm373_vm1, %v934_v46  ;;  %v825_v56 = vadd.f32 %v1998_v38, %v824_v53  ;;  %v2245_v35 = vpop.f32.mrb[22].mxu1 }
 0x284   :  { %2398 = vpow2.f32 %v524_v37  ;;  %v526_v61 = vmul.f32 1.442695, %v511_v59  ;;  %529 = vadd.xlane.f32.xlu0 %v528_v60  ;;  %v534_v55 = vsel %vm479_vm2, %v2803_v51, 0.0  ;;  %v836_v37 = vadd.f32 %v2245_v35, %v1998_v38  ;;  %v827_v59 = vpop.f32.mrb[23].mxu1 }
 0x285   :  { %v828_v60 = vadd.f32 %v1998_v38, %v827_v59 }
 0x286   :  { %v2805_v54 = vpop.eup %2390  ;;  %2400 = vpow2.f32 %v526_v61  ;;  %v936_v61 = vpack.c.bf16 %v836_v37, %v833_v33 }
 0x287   :  { %v531_v63 = vsel %vm479_vm2, %v2805_v54, 0.0  ;;  %v2811_v0 = vpop.eup %2392 }
 0x288   :  { %535 = vadd.xlane.f32.xlu0 %v534_v55  ;;  %532 = vadd.xlane.f32.xlu1 %v531_v63  ;;  %v537_v2 = vsel %vm479_vm2, %v2811_v0, 0.0  ;;  %v953_v55 = vsel %vm373_vm1, %v934_v46, 0  ;;  %v935_v63 = vpack.c.bf16 %v828_v60, %v825_v56 }
 0x28a   :  { %v2813_v57 = vpop.eup %2394  ;;  %2261 = vmatpush3.bf16.xpose.msra.mxu1 %v953_v55 }
 0x28b   :  { %v540_v1 = vsel %vm479_vm2, %v2813_v57, 0.0  ;;  %2360 = vmatprep.subr.msk.bf16.mxu1 %vm373_vm1, %v935_v63 }
 0x28c   :  { %v2819_v3 = vpop.eup %2396  ;;  %541 = vadd.xlane.f32.xlu0 %v540_v1  ;;  %538 = vadd.xlane.f32.xlu1 %v537_v2  ;;  %v956_v1 = vsel %vm373_vm1, %v935_v63, 0  ;;  %v1986_v63 = vld [vmem:[%s3249_s5 + $0x1] ss:$0 sm:$0xff] }
 0x28d   :  { %v543_v8 = vsel %vm479_vm2, %v2819_v3, 0.0 }
 0x28e   :  { %v2821_v4 = vpop.eup %2398 }
 0x28f   :  { %v546_v7 = vsel %vm479_vm2, %v2821_v4, 0.0 }
 0x290   :  { %v2827_v11 = vpop.eup %2400  ;;  %547 = vadd.xlane.f32.xlu0 %v546_v7  ;;  %544 = vadd.xlane.f32.xlu1 %v543_v8 }
 0x291   :  { %v549_v26 = vsel %vm479_vm2, %v2827_v11, 0.0 }
 0x292   :  { %2263 = vmatpush3.bf16.xpose.msra.mxu1 %v956_v1 }
 0x293   :  { %2361 = vmatprep.subr.msk.bf16.mxu1 %vm373_vm1, %v936_v61 }
 0x294   :  { %550 = vadd.xlane.f32.xlu1 %v549_v26 }
 0x311   :  { %v530_v2 = vpop.xlane.xlu0 %529 }
 0x312   :  { %2402 = vrcp.f32 %v530_v2 }
 0x315   :  { %v536_v7 = vpop.xlane.xlu0 %535  ;;  %v533_v8 = vpop.xlane.xlu1 %532 }
 0x316   :  { %2404 = vrcp.f32 %v533_v8 }
 0x317   :  { %2406 = vrcp.f32 %v536_v7 }
 0x319   :  { %v542_v12 = vpop.xlane.xlu0 %541  ;;  %v539_v17 = vpop.xlane.xlu1 %538 }
 0x31a   :  { %2408 = vrcp.f32 %v539_v17 }
 0x31b   :  { %2410 = vrcp.f32 %v542_v12 }
 0x31c   :  { %v2403_v29 = vpop.eup %2402 }
 0x31d   :  { %v548_v26 = vpop.xlane.xlu0 %547  ;;  %v545_v28 = vpop.xlane.xlu1 %544  ;;  %v560_v36 = vmul.f32 %v2403_v29, %v2798_v58 }
 0x31e   :  { %2412 = vrcp.f32 %v545_v28 }
 0x31f   :  { %2414 = vrcp.f32 %v548_v26 }
 0x320   :  { %v2405_v32 = vpop.eup %2404 }
 0x321   :  { %v551_v34 = vpop.xlane.xlu1 %550  ;;  %v561_v38 = vmul.f32 %v2405_v32, %v2805_v54  ;;  %v2407_v39 = vpop.eup %2406 }
 0x322   :  { %2416 = vrcp.f32 %v551_v34  ;;  %v562_v22 = vmul.f32 %v2407_v39, %v2803_v51 }
 0x323   :  { %v568_v62 = vpack.c.bf16 %v561_v38, %v560_v36 }
 0x324   :  { %v2409_v40 = vpop.eup %2408 }
 0x325   :  { %v563_v42 = vmul.f32 %v2409_v40, %v2811_v0  ;;  %2214 = vmatprep.mubr.msk.bf16.mxu0 %vm479_vm2, %v568_v62  ;;  %v2411_v43 = vpop.eup %2410 }
 0x326   :  { %v564_v58 = vmul.f32 %v2411_v43, %v2813_v57  ;;  %v959_v57 = vsel %vm373_vm1, %v936_v61, 0 }
 0x327   :  { %v569_v44 = vpack.c.bf16 %v563_v42, %v562_v22  ;;  %2265 = vmatpush3.bf16.xpose.msra.mxu1 %v959_v57 }
 0x328   :  { %v2413_v46 = vpop.eup %2412 }
 0x329   :  { %v2415_v49 = vpop.eup %2414  ;;  %2215 = vmatmul.mubr.msk.bf16.vlgmr.msra.gmra.mrb[16].mxu0 %vm479_vm2, %v569_v44  ;;  %v565_v54 = vmul.f32 %v2413_v46, %v2819_v3  ;;  %v2372_v44 = vld [vmem:[%s3250_s4 + $0x10] sm:$0xff]  }
 0x32a   :  { %2223 = vmatpush3.bf16.msra.mxu0 %v2838_v25  ;;  %v566_v30 = vmul.f32 %v2415_v49, %v2821_v4 }
 0x32b   :  { %v570_v0 = vpack.c.bf16 %v565_v54, %v564_v58  ;;  %2224 = vmatprep.subr.bf16.mxu0 %v2371_v45 }
 0x32c   :  { %v2417_v51 = vpop.eup %2416 }
 0x32d   :  { %v567_v50 = vmul.f32 %v2417_v51, %v2827_v11  ;;  %2218 = vmatprep.mubr.msk.bf16.mxu0 %vm479_vm2, %v570_v0 }
 0x32e   :  { %2225 = vmatpush3.bf16.msra.mxu0 %v2371_v45  ;;  %v2373_v45 = vld [vmem:[%s3250_s4 + $0x18] sm:$0xff]  }
 0x32f   :  { %v571_v33 = vpack.c.bf16 %v567_v50, %v566_v30  ;;  %2246 = vmatprep.subr.bf16.mxu0 %v2372_v44 }
 0x331   :  { %2219 = vmatmul.mubr.msk.bf16.gmra.mrb[20].mxu0 %vm479_vm2, %v571_v33 }
 0x332   :  { %2226 = vmatprep.mubr.msk.bf16.mxu0 %vm111_vm0, %v2614_v13 }
 0x339   :  { %2227 = vmatmul.mubr.msk.bf16.vlgmr.msra.gmra.mrb[24].mxu0 %vm111_vm0, %v2628_v18 }
 0x33a   :  { %2230 = vmatprep.mubr.msk.bf16.mxu0 %vm111_vm0, %v2638_v21  ;;  %2247 = vmatpush3.bf16.msra.mxu0 %v2372_v44 }
 0x33b   :  { %2248 = vmatprep.subr.bf16.mxu0 %v2373_v45 }
 0x33e   :  { %2249 = vmatpush3.bf16.msra.mxu0 %v2373_v45 }
 0x341   :  { %2231 = vmatmul.mubr.msk.bf16.gmra.mrb[28].mxu0 %vm111_vm0, %v2651_v23 }
 0x342   :  { %2250 = vmatprep.mubr.msk.bf16.mxu0 %vm111_vm0, %v2614_v13 }
 0x349   :  { %2251 = vmatmul.mubr.msk.bf16.vlgmr.msra.gmra.mrb[32].mxu0 %vm111_vm0, %v2628_v18 }
 0x34a   :  { %2254 = vmatprep.mubr.msk.bf16.mxu0 %vm111_vm0, %v2638_v21 }
 0x351   :  { %2255 = vmatmul.mubr.msk.bf16.gmra.mrb[36].mxu0 %vm111_vm0, %v2651_v23 }
 0x3fc   :  { %v2878_v3 = vpop.f32.mrb[16].mxu0 }
 0x3fd   :  { %v2880_v4 = vpop.f32.mrb[17].mxu0 }
 0x3fe   :  { %v2882_v11 = vpop.f32.mrb[18].mxu0 }
 0x3ff   :  { %v654_v25 = vpack.c.bf16 %v2882_v11, %v2878_v3  ;;  %v2886_v53 = vpop.f32.mrb[19].mxu0 }
 0x400   :  { %v653_v56 = vpack.c.bf16 %v2886_v53, %v2880_v4  ;;  %v2037_v4 = vld [vmem:[%s3254_s9] ss:$0 sm:$0xff] }
 0x404   :  { %v2890_v35 = vpop.f32.mrb[20].mxu0 }
 0x405   :  { %v2892_v13 = vpop.f32.mrb[21].mxu0 }
 0x406   :  { %v2894_v37 = vpop.f32.mrb[22].mxu0 }
 0x407   :  { %v656_v59 = vpack.c.bf16 %v2894_v37, %v2890_v35  ;;  %v2898_v60 = vpop.f32.mrb[23].mxu0 }
 0x408   :  { %v655_v61 = vpack.c.bf16 %v2898_v60, %v2892_v13 }
 0x40c   :  { %v2228_v55 = vpop.f32.mrb[24].mxu0 }
 0x40d   :  { %v718_v1 = vpop.f32.mrb[25].mxu0  ;;  %v727_v7 = vadd.f32 %v2228_v55, %v1986_v63 }
 0x40e   :  { %v2229_v2 = vpop.f32.mrb[26].mxu0  ;;  %v719_v17 = vadd.f32 %v1986_v63, %v718_v1 }
 0x40f   :  { %v730_v8 = vadd.f32 %v2229_v2, %v1986_v63  ;;  %v721_v12 = vpop.f32.mrb[27].mxu0 }
 0x410   :  { %v722_v26 = vadd.f32 %v1986_v63, %v721_v12 }
 0x411   :  { %v930_v28 = vpack.c.bf16 %v730_v8, %v727_v7 }
 0x412   :  { %v929_v29 = vpack.c.bf16 %v722_v26, %v719_v17 }
 0x414   :  { %v2232_v32 = vpop.f32.mrb[28].mxu0  ;;  %2266 = vmatprep.mubr.msk.bf16.mxu1 %vm373_vm1, %v929_v29 }
 0x415   :  { %v734_v34 = vpop.f32.mrb[29].mxu0  ;;  %2267 = vmatmul.mubr.msk.bf16.vlgmr.msra.gmra.mrb[24].mxu1 %vm373_vm1, %v930_v28  ;;  %v743_v38 = vadd.f32 %v2232_v32, %v1986_v63 }
 0x416   :  { %v2233_v36 = vpop.f32.mrb[30].mxu0  ;;  %v735_v40 = vadd.f32 %v1986_v63, %v734_v34 }
 0x417   :  { %v746_v39 = vadd.f32 %v2233_v36, %v1986_v63  ;;  %v737_v62 = vpop.f32.mrb[31].mxu0 }
 0x418   :  { %v738_v22 = vadd.f32 %v1986_v63, %v737_v62 }
 0x419   :  { %v932_v42 = vpack.c.bf16 %v746_v39, %v743_v38 }
 0x41a   :  { %v931_v43 = vpack.c.bf16 %v738_v22, %v735_v40 }
 0x41c   :  { %2270 = vmatprep.mubr.msk.bf16.mxu1 %vm373_vm1, %v931_v43 }
 0x41d   :  { %2271 = vmatmul.mubr.msk.bf16.gmra.mrb[28].mxu1 %vm373_vm1, %v932_v42 }
 0x4e8   :  { %v2268_v46 = vpop.f32.mrb[24].mxu1 }
 0x4e9   :  { %v995_v49 = vpop.f32.mrb[25].mxu1  ;;  %v1028_v58 = vmul.f32 0.25, %v2268_v46 }
 0x4ea   :  { %v1026_v54 = vmul.f32 0.25, %v995_v49  ;;  %v2269_v51 = vpop.f32.mrb[26].mxu1 }
 0x4eb   :  { %v998_v0 = vpop.f32.mrb[27].mxu1  ;;  %v1029_v30 = vmul.f32 0.25, %v2269_v51  ;;  %v2930_v21 = vadd.f32 %v1028_v58, %v2698_v16 }
 0x4ec   :  { %v1027_v50 = vmul.f32 0.25, %v998_v0  ;;  %v2922_v33 = vadd.f32 %v1026_v54, %v2703_v24 }
 0x4ed   :  { %v2935_v63 = vadd.f32 %v1029_v30, %v2708_v27 }
 0x4ee   :  { %v1042_v18 = vsel %vm479_vm2, %v2922_v33, -inf  ;;  %v2927_v57 = vadd.f32 %v1027_v50, %v2716_v31  ;;  %v1048_v31 = vsel %vm479_vm2, %v2930_v21, -inf }
 0x4ef   :  { %1043 = vmax.xlane.f32.xlu0 %v1042_v18  ;;  %v1051_v17 = vsel %vm479_vm2, %v2935_v63, -inf }
 0x4f0   :  { %v2272_v23 = vpop.f32.mrb[28].mxu1  ;;  %v1045_v55 = vsel %vm479_vm2, %v2927_v57, -inf }
 0x4f1   :  { %1046 = vmax.xlane.f32.xlu1 %v1045_v55  ;;  %v1011_v24 = vpop.f32.mrb[29].mxu1  ;;  %v1032_v1 = vmul.f32 0.25, %v2272_v23 }
 0x4f2   :  { %v1030_v2 = vmul.f32 0.25, %v1011_v24  ;;  %v2273_v7 = vpop.f32.mrb[30].mxu1 }
 0x4f3   :  { %1049 = vmax.xlane.f32.xlu0 %v1048_v31  ;;  %v1014_v8 = vpop.f32.mrb[31].mxu1  ;;  %v1033_v16 = vmul.f32 0.25, %v2273_v7  ;;  %v2945_v29 = vadd.f32 %v1032_v1, %v2748_v48  ;;  %v2252_v48 = vpop.f32.mrb[32].mxu0 }
 0x4f4   :  { %v1031_v12 = vmul.f32 0.25, %v1014_v8  ;;  %v1038_v26 = vadd.f32 %v1030_v2, %v2736_v41  ;;  %v898_v39 = vpop.f32.mrb[33].mxu0 }
 0x4f5   :  { %1052 = vmax.xlane.f32.xlu1 %v1051_v17  ;;  %v2949_v34 = vadd.f32 %v1033_v16, %v2754_v52  ;;  %v1060_v36 = vsel %vm479_vm2, %v2945_v29, -inf  ;;  %v2253_v40 = vpop.f32.mrb[34].mxu0 }
 0x4f6   :  { %v1054_v27 = vsel %vm479_vm2, %v1038_v26, -inf  ;;  %v1039_v28 = vadd.f32 %v1031_v12, %v2743_v47  ;;  %v2010_v47 = vld [vmem:[%s3252_s7 + $0x1] ss:$0 sm:$0xff]  ;;  %v901_v22 = vpop.f32.mrb[35].mxu0 }
 0x4f7   :  { %1055 = vmax.xlane.f32.xlu0 %v1054_v27  ;;  %v1063_v41 = vsel %vm479_vm2, %v2949_v34, -inf  ;;  %v907_v38 = vadd.f32 %v2252_v48, %v2010_v47  ;;  %v899_v62 = vadd.f32 %v2010_v47, %v898_v39  ;;  %v910_v52 = vadd.f32 %v2253_v40, %v2010_v47  ;;  %v2256_v45 = vpop.f32.mrb[36].mxu0 }
 0x4f8   :  { %v1057_v32 = vsel %vm479_vm2, %v1039_v28, -inf  ;;  %v902_v42 = vadd.f32 %v2010_v47, %v901_v22  ;;  %v923_v46 = vadd.f32 %v2256_v45, %v2010_v47  ;;  %v914_v49 = vpop.f32.mrb[37].mxu0 }
 0x4f9   :  { %1058 = vmax.xlane.f32.xlu1 %v1057_v32  ;;  %v1135_v43 = vpack.c.bf16 %v910_v52, %v907_v38  ;;  %v915_v58 = vadd.f32 %v2010_v47, %v914_v49  ;;  %v2257_v54 = vpop.f32.mrb[38].mxu0 }
 0x4fa   :  { %v1134_v44 = vpack.c.bf16 %v902_v42, %v899_v62  ;;  %v926_v51 = vadd.f32 %v2257_v54, %v2010_v47  ;;  %v917_v0 = vpop.f32.mrb[39].mxu0 }
 0x4fb   :  { %1061 = vmax.xlane.f32.xlu0 %v1060_v36  ;;  %v918_v30 = vadd.f32 %v2010_v47, %v917_v0  ;;  %v2374_v0 = vld [vmem:[%s3253_s8 + $0x8] sm:$0xff]  }
 0x4fc   :  { %2274 = vmatprep.subr.bf16.mxu0 %v1134_v44  ;;  %v1137_v50 = vpack.c.bf16 %v926_v51, %v923_v46 }
 0x4fd   :  { %1064 = vmax.xlane.f32.xlu1 %v1063_v41  ;;  %2275 = vmatpush3.bf16.msra.mxu0 %v1134_v44  ;;  %v1136_v18 = vpack.c.bf16 %v918_v30, %v915_v58 }
 0x4fe   :  { %2276 = vmatprep.subr.bf16.mxu0 %v1135_v43 }
 0x501   :  { %2277 = vmatpush3.bf16.msra.mxu0 %v1135_v43 }
 0x502   :  { %2278 = vmatprep.subr.bf16.mxu0 %v1136_v18 }
 0x505   :  { %2279 = vmatpush3.bf16.msra.mxu0 %v1136_v18 }
 0x506   :  { %2280 = vmatprep.subr.bf16.mxu0 %v1137_v50 }
 0x509   :  { %2281 = vmatpush3.bf16.msra.mxu0 %v1137_v50 }
 0x50a   :  { %2290 = vmatprep.subr.bf16.mxu0 %v2374_v0 }
 0x57c   :  { %v1044_v23 = vpop.xlane.xlu0 %1043 }
 0x57d   :  { %v1066_v55 = vsub.f32 %v2922_v33, %v1044_v23 }
 0x57e   :  { %v1047_v24 = vpop.xlane.xlu1 %1046 }
 0x57f   :  { %v1074_v1 = vmul.f32 1.442695, %v1066_v55  ;;  %v1067_v2 = vsub.f32 %v2927_v57, %v1047_v24 }
 0x580   :  { %v1050_v7 = vpop.xlane.xlu0 %1049 }
 0x581   :  { %2418 = vpow2.f32 %v1074_v1  ;;  %v1076_v31 = vmul.f32 1.442695, %v1067_v2  ;;  %v1068_v8 = vsub.f32 %v2930_v21, %v1050_v7 }
 0x582   :  { %v1053_v16 = vpop.xlane.xlu1 %1052 }
 0x583   :  { %2420 = vpow2.f32 %v1076_v31  ;;  %v1078_v12 = vmul.f32 1.442695, %v1068_v8  ;;  %v1069_v17 = vsub.f32 %v2935_v63, %v1053_v16 }
 0x584   :  { %v1056_v27 = vpop.xlane.xlu0 %1055 }
 0x585   :  { %2422 = vpow2.f32 %v1078_v12  ;;  %v1080_v32 = vmul.f32 1.442695, %v1069_v17  ;;  %v1070_v36 = vsub.f32 %v1038_v26, %v1056_v27 }
 0x586   :  { %v1059_v41 = vpop.xlane.xlu1 %1058 }
 0x587   :  { %2424 = vpow2.f32 %v1080_v32  ;;  %v1082_v33 = vmul.f32 1.442695, %v1070_v36  ;;  %v1071_v47 = vsub.f32 %v1039_v28, %v1059_v41 }
 0x588   :  { %v1062_v48 = vpop.xlane.xlu0 %1061 }
 0x589   :  { %2426 = vpow2.f32 %v1082_v33  ;;  %v1084_v57 = vmul.f32 1.442695, %v1071_v47  ;;  %v1072_v38 = vsub.f32 %v2945_v29, %v1062_v48 }
 0x58a   :  { %v1065_v39 = vpop.xlane.xlu1 %1064 }
 0x58b   :  { %v2419_v21 = vpop.eup %2418  ;;  %2428 = vpow2.f32 %v1084_v57  ;;  %v1086_v62 = vmul.f32 1.442695, %v1072_v38  ;;  %v1073_v40 = vsub.f32 %v2949_v34, %v1065_v39 }
 0x58c   :  { %v1090_v63 = vsel %vm479_vm2, %v2419_v21, 0.0 }
 0x58d   :  { %v2421_v52 = vpop.eup %2420  ;;  %2430 = vpow2.f32 %v1086_v62  ;;  %v1088_v26 = vmul.f32 1.442695, %v1073_v40  ;;  %1091 = vadd.xlane.f32.xlu0 %v1090_v63 }
 0x58e   :  { %v1093_v22 = vsel %vm479_vm2, %v2421_v52, 0.0 }
 0x58f   :  { %v2423_v28 = vpop.eup %2422  ;;  %2432 = vpow2.f32 %v1088_v26  ;;  %1094 = vadd.xlane.f32.xlu1 %v1093_v22 }
 0x590   :  { %v1096_v42 = vsel %vm479_vm2, %v2423_v28, 0.0 }
 0x591   :  { %v2425_v29 = vpop.eup %2424  ;;  %1097 = vadd.xlane.f32.xlu0 %v1096_v42 }
 0x592   :  { %v1099_v43 = vsel %vm479_vm2, %v2425_v29, 0.0 }
 0x593   :  { %v2427_v44 = vpop.eup %2426  ;;  %1100 = vadd.xlane.f32.xlu1 %v1099_v43 }
 0x594   :  { %v1102_v34 = vsel %vm479_vm2, %v2427_v44, 0.0 }
 0x595   :  { %v2429_v45 = vpop.eup %2428  ;;  %1103 = vadd.xlane.f32.xlu0 %v1102_v34 }
 0x596   :  { %v1105_v46 = vsel %vm479_vm2, %v2429_v45, 0.0 }
 0x597   :  { %v2431_v49 = vpop.eup %2430  ;;  %1106 = vadd.xlane.f32.xlu1 %v1105_v46 }
 0x598   :  { %v1108_v58 = vsel %vm479_vm2, %v2431_v49, 0.0 }
 0x599   :  { %v2433_v54 = vpop.eup %2432  ;;  %1109 = vadd.xlane.f32.xlu0 %v1108_v58 }
 0x59a   :  { %v1111_v51 = vsel %vm479_vm2, %v2433_v54, 0.0 }
 0x59b   :  { %1112 = vadd.xlane.f32.xlu1 %v1111_v51 }
 0x61a   :  { %v1092_v30 = vpop.xlane.xlu0 %1091 }
 0x61b   :  { %2434 = vrcp.f32 %v1092_v30 }
 0x61c   :  { %v1095_v50 = vpop.xlane.xlu1 %1094 }
 0x61d   :  { %2436 = vrcp.f32 %v1095_v50 }
 0x61e   :  { %v1098_v18 = vpop.xlane.xlu0 %1097 }
 0x61f   :  { %2438 = vrcp.f32 %v1098_v18 }
 0x620   :  { %v1101_v23 = vpop.xlane.xlu1 %1100 }
 0x621   :  { %2440 = vrcp.f32 %v1101_v23 }
 0x622   :  { %v1104_v55 = vpop.xlane.xlu0 %1103 }
 0x623   :  { %2442 = vrcp.f32 %v1104_v55 }
 0x624   :  { %v1107_v24 = vpop.xlane.xlu1 %1106 }
 0x625   :  { %v2435_v1 = vpop.eup %2434  ;;  %2444 = vrcp.f32 %v1107_v24 }
 0x626   :  { %v1110_v2 = vpop.xlane.xlu0 %1109  ;;  %v1122_v8 = vmul.f32 %v2435_v1, %v2419_v21 }
 0x627   :  { %v2437_v7 = vpop.eup %2436  ;;  %2446 = vrcp.f32 %v1110_v2 }
 0x628   :  { %v1113_v31 = vpop.xlane.xlu1 %1112  ;;  %v1123_v16 = vmul.f32 %v2437_v7, %v2421_v52  ;;  %v2375_v52 = vld [vmem:[%s3253_s8] sm:$0xff]  }
 0x629   :  { %v2439_v12 = vpop.eup %2438  ;;  %2448 = vrcp.f32 %v1113_v31 }
 0x62a   :  { %v1130_v17 = vpack.c.bf16 %v1123_v16, %v1122_v8  ;;  %v1124_v32 = vmul.f32 %v2439_v12, %v2423_v28 }
 0x62b   :  { %v2441_v27 = vpop.eup %2440 }
 0x62c   :  { %v1125_v36 = vmul.f32 %v2441_v27, %v2425_v29  ;;  %2282 = vmatprep.mubr.msk.bf16.mxu0 %vm479_vm2, %v1130_v17 }
 0x62d   :  { %v2443_v41 = vpop.eup %2442 }
 0x62e   :  { %v1131_v33 = vpack.c.bf16 %v1125_v36, %v1124_v32  ;;  %v1126_v48 = vmul.f32 %v2443_v41, %v2427_v44 }
 0x62f   :  { %v2445_v47 = vpop.eup %2444 }
 0x630   :  { %2283 = vmatmul.mubr.msk.bf16.vlgmr.msra.gmra.mrb[40].mxu0 %vm479_vm2, %v1131_v33  ;;  %v1127_v57 = vmul.f32 %v2445_v47, %v2429_v45 }
 0x631   :  { %v2447_v38 = vpop.eup %2446  ;;  %2291 = vmatpush3.bf16.msra.mxu0 %v2374_v0 }
 0x632   :  { %v1132_v39 = vpack.c.bf16 %v1127_v57, %v1126_v48  ;;  %v1128_v62 = vmul.f32 %v2447_v38, %v2431_v49  ;;  %2300 = vmatprep.subr.bf16.mxu0 %v2375_v52 }
 0x633   :  { %v2449_v21 = vpop.eup %2448 }
 0x634   :  { %2286 = vmatprep.mubr.msk.bf16.mxu0 %vm479_vm2, %v1132_v39  ;;  %v1129_v40 = vmul.f32 %v2449_v21, %v2433_v54 }
 0x636   :  { %v1133_v63 = vpack.c.bf16 %v1129_v40, %v1128_v62 }
 0x638   :  { %2287 = vmatmul.mubr.msk.bf16.gmra.mrb[44].mxu0 %vm479_vm2, %v1133_v63 }
 0x703   :  { %v2284_v26 = vpop.f32.mrb[40].mxu0 }
 0x704   :  { %v1184_v22 = vpop.f32.mrb[41].mxu0 }
 0x705   :  { %v2285_v28 = vpop.f32.mrb[42].mxu0 }
 0x706   :  { %v1216_v42 = vpack.c.bf16 %v2285_v28, %v2284_v26  ;;  %v1187_v29 = vpop.f32.mrb[43].mxu0 }
 0x707   :  { %v1215_v43 = vpack.c.bf16 %v1187_v29, %v1184_v22 }
 0x709   :  { %2292 = vmatprep.mubr.msk.bf16.mxu0 %vm373_vm1, %v1215_v43 }
 0x70a   :  { %2293 = vmatmul.mubr.msk.bf16.vlgmr.msra.gmra.mrb[48].mxu0 %vm373_vm1, %v1216_v42 }
 0x70b   :  { %2301 = vmatpush3.bf16.msra.mxu0 %v2375_v52  ;;  %v2288_v44 = vpop.f32.mrb[44].mxu0 }
 0x70c   :  { %v1200_v34 = vpop.f32.mrb[45].mxu0 }
 0x70d   :  { %v2289_v45 = vpop.f32.mrb[46].mxu0 }
 0x70e   :  { %v1218_v46 = vpack.c.bf16 %v2289_v45, %v2288_v44  ;;  %v1203_v49 = vpop.f32.mrb[47].mxu0 }
 0x70f   :  { %v1217_v58 = vpack.c.bf16 %v1203_v49, %v1200_v34 }
 0x711   :  { %2296 = vmatprep.mubr.msk.bf16.mxu0 %vm373_vm1, %v1217_v58 }
 0x712   :  { %2297 = vmatmul.mubr.msk.bf16.gmra.mrb[52].mxu0 %vm373_vm1, %v1218_v46 }
 0x713   :  { %2302 = vmatprep.mubr.msk.bf16.mxu0 %vm373_vm1, %v653_v56 }
 0x71a   :  { %2303 = vmatmul.mubr.msk.bf16.vlgmr.msra.gmra.mrb[48].mxu0 %vm373_vm1, %v654_v25 }
 0x71b   :  { %2306 = vmatprep.mubr.msk.bf16.mxu0 %vm373_vm1, %v655_v61 }
 0x722   :  { %2307 = vmatmul.mubr.msk.bf16.gmra.mrb[52].mxu0 %vm373_vm1, %v656_v59 }
 0x7ed   :  { %v2304_v53 = vpop.f32.mrb[48].mxu0 }
 0x7ee   :  { %v1357_v56 = vpop.f32.mrb[49].mxu0  ;;  %v1397_v54 = vadd.f32 %v2304_v53, %v2037_v4 }
 0x7ef   :  { %v1395_v3 = vadd.f32 %v2037_v4, %v1357_v56  ;;  %v2305_v11 = vpop.f32.mrb[50].mxu0 }
 0x7f0   :  { %v1360_v25 = vpop.f32.mrb[51].mxu0  ;;  %v1398_v51 = vadd.f32 %v2305_v11, %v2037_v4  ;;  %v1405_v37 = vadd.f32 %v1397_v54, %v2602_v9 }
 0x7f1   :  { %v1396_v0 = vadd.f32 %v2037_v4, %v1360_v25  ;;  %v1403_v13 = vadd.f32 %v1395_v3, %v2592_v5 }
 0x7f2   :  { %v1406_v30 = vadd.f32 %v1398_v51, %v2604_v10  ;;  %v1419_v24 = vsel %vm111_vm0, %v1405_v37, 0.0 }
 0x7f3   :  { %v1413_v60 = vsel %vm111_vm0, %v1403_v13, 0.0  ;;  %v1404_v35 = vadd.f32 %v1396_v0, %v2594_v6 }
 0x7f4   :  { %1414 = vadd.xlane.f32.xlu0 %v1413_v60  ;;  %v1422_v6 = vsel %vm111_vm0, %v1406_v30, 0.0  ;;  %v2377_v60 = vld [vmem:[%s3255_s10 + $0x8] sm:$0xff]  }
 0x7f5   :  { %v2308_v59 = vpop.f32.mrb[52].mxu0  ;;  %v1416_v61 = vsel %vm111_vm0, %v1404_v35, 0.0 }
 0x7f6   :  { %1417 = vadd.xlane.f32.xlu1 %v1416_v61  ;;  %v1373_v50 = vpop.f32.mrb[53].mxu0  ;;  %v1401_v18 = vadd.f32 %v2308_v59, %v2037_v4 }
 0x7f7   :  { %v1399_v23 = vadd.f32 %v2037_v4, %v1373_v50  ;;  %v2309_v55 = vpop.f32.mrb[54].mxu0 }
 0x7f8   :  { %1420 = vadd.xlane.f32.xlu0 %v1419_v24  ;;  %v1376_v5 = vpop.f32.mrb[55].mxu0  ;;  %v1402_v1 = vadd.f32 %v2309_v55, %v2037_v4  ;;  %v1409_v31 = vadd.f32 %v1401_v18, %v2630_v19 }
 0x7f9   :  { %v1400_v2 = vadd.f32 %v2037_v4, %v1376_v5  ;;  %v1407_v9 = vadd.f32 %v1399_v23, %v2616_v14 }
 0x7fa   :  { %1423 = vadd.xlane.f32.xlu1 %v1422_v6  ;;  %v1410_v16 = vadd.f32 %v1402_v1, %v2632_v20  ;;  %v1431_v12 = vsel %vm111_vm0, %v1409_v31, 0.0 }
 0x7fb   :  { %v1425_v7 = vsel %vm111_vm0, %v1407_v9, 0.0  ;;  %v1408_v10 = vadd.f32 %v1400_v2, %v2618_v15 }
 0x7fc   :  { %1426 = vadd.xlane.f32.xlu0 %v1425_v7  ;;  %v1434_v17 = vsel %vm111_vm0, %v1410_v16, 0.0 }
 0x7fd   :  { %v1428_v8 = vsel %vm111_vm0, %v1408_v10, 0.0 }
 0x7fe   :  { %1429 = vadd.xlane.f32.xlu1 %v1428_v8 }
 0x800   :  { %1432 = vadd.xlane.f32.xlu0 %v1431_v12 }
 0x802   :  { %1435 = vadd.xlane.f32.xlu1 %v1434_v17 }
 0x881   :  { %v1415_v14 = vpop.xlane.xlu0 %1414 }
 0x882   :  { %v1438_v27 = vmul.f32 0.03125, %v1415_v14 }
 0x883   :  { %v1418_v32 = vpop.xlane.xlu1 %1417 }
 0x884   :  { %v3021_v36 = vsub.f32 %v1403_v13, %v1438_v27  ;;  %v1439_v15 = vmul.f32 0.03125, %v1418_v32  ;;  %v2376_v13 = vld [vmem:[%s3255_s10] sm:$0xff]  }
 0x885   :  { %v1421_v41 = vpop.xlane.xlu0 %1420  ;;  %2310 = vmatprep.subr.bf16.mxu1 %v2376_v13  ;;  %v2038_v27 = vld [vmem:[%s3257_s14] ss:$0 sm:$0xff] }
 0x886   :  { %v3023_v19 = vsub.f32 %v1404_v35, %v1439_v15  ;;  %v1440_v33 = vmul.f32 0.03125, %v1421_v41  ;;  %v1454_v20 = vmul.f32 %v3021_v36, %v3021_v36  ;;  %2311 = vmatpush3.bf16.msra.mxu1 %v2376_v13  ;;  %v3070_v35 = vld [vmem:[%s3256_s12] sm:$0xff]   ;;  %v2380_v13 = vld [vmem:[%s3256_s12 + $0x10] sm:$0xff]  }
 0x887   :  { %v1424_v47 = vpop.xlane.xlu1 %1423  ;;  %2312 = vmatprep.subr.bf16.mxu1 %v2377_v60 }
 0x888   :  { %v3027_v48 = vsub.f32 %v1405_v37, %v1440_v33  ;;  %v1441_v57 = vmul.f32 0.03125, %v1424_v47  ;;  %v1462_v38 = vsel %vm111_vm0, %v1454_v20, 0.0  ;;  %v1455_v39 = vmul.f32 %v3023_v19, %v3023_v19 }
 0x889   :  { %1463 = vadd.xlane.f32.xlu0 %v1462_v38  ;;  %v1427_v21 = vpop.xlane.xlu0 %1426 }
 0x88a   :  { %v3032_v62 = vsub.f32 %v1406_v30, %v1441_v57  ;;  %v1442_v40 = vmul.f32 0.03125, %v1427_v21  ;;  %v1465_v63 = vsel %vm111_vm0, %v1455_v39, 0.0  ;;  %v1456_v52 = vmul.f32 %v3027_v48, %v3027_v48  ;;  %2313 = vmatpush3.bf16.msra.mxu1 %v2377_v60  ;;  %v2039_v39 = vld [vmem:[%s3258_s15] ss:$0 sm:$0xff] }
 0x88b   :  { %1466 = vadd.xlane.f32.xlu1 %v1465_v63  ;;  %v1430_v26 = vpop.xlane.xlu1 %1429  ;;  %2322 = vmatprep.subr.bf16.mxu1 %v3070_v35 }
 0x88c   :  { %v3037_v22 = vsub.f32 %v1407_v9, %v1442_v40  ;;  %v1443_v28 = vmul.f32 0.03125, %v1430_v26  ;;  %v1468_v42 = vsel %vm111_vm0, %v1456_v52, 0.0  ;;  %v1457_v29 = vmul.f32 %v3032_v62, %v3032_v62 }
 0x88d   :  { %1469 = vadd.xlane.f32.xlu0 %v1468_v42  ;;  %v1433_v43 = vpop.xlane.xlu0 %1432 }
 0x88e   :  { %v3042_v44 = vsub.f32 %v1408_v10, %v1443_v28  ;;  %v1444_v34 = vmul.f32 0.03125, %v1433_v43  ;;  %v1471_v45 = vsel %vm111_vm0, %v1457_v29, 0.0  ;;  %v1458_v46 = vmul.f32 %v3037_v22, %v3037_v22 }
 0x88f   :  { %1472 = vadd.xlane.f32.xlu1 %v1471_v45  ;;  %v1436_v49 = vpop.xlane.xlu1 %1435 }
 0x890   :  { %v3047_v58 = vsub.f32 %v1409_v31, %v1444_v34  ;;  %v1445_v4 = vmul.f32 0.03125, %v1436_v49  ;;  %v1474_v53 = vsel %vm111_vm0, %v1458_v46, 0.0  ;;  %v1459_v56 = vmul.f32 %v3042_v44, %v3042_v44 }
 0x891   :  { %1475 = vadd.xlane.f32.xlu0 %v1474_v53 }
 0x892   :  { %v3052_v54 = vsub.f32 %v1410_v16, %v1445_v4  ;;  %v1477_v3 = vsel %vm111_vm0, %v1459_v56, 0.0  ;;  %v1460_v11 = vmul.f32 %v3047_v58, %v3047_v58  ;;  %v2379_v56 = vld [vmem:[%s3256_s12 + $0x8] sm:$0xff]  }
 0x893   :  { %1478 = vadd.xlane.f32.xlu1 %v1477_v3 }
 0x894   :  { %v1480_v25 = vsel %vm111_vm0, %v1460_v11, 0.0  ;;  %v1461_v51 = vmul.f32 %v3052_v54, %v3052_v54 }
 0x895   :  { %1481 = vadd.xlane.f32.xlu0 %v1480_v25 }
 0x896   :  { %v1483_v0 = vsel %vm111_vm0, %v1461_v51, 0.0 }
 0x897   :  { %1484 = vadd.xlane.f32.xlu1 %v1483_v0 }
 0x916   :  { %v1464_v37 = vpop.xlane.xlu0 %1463 }
 0x917   :  { %v1486_v59 = vmul.f32 0.03125, %v1464_v37 }
 0x918   :  { %v1467_v61 = vpop.xlane.xlu1 %1466 }
 0x919   :  { %v1494_v30 = vadd.f32 1e-05, %v1486_v59  ;;  %v1487_v50 = vmul.f32 0.03125, %v1467_v61  ;;  %v2382_v59 = vld [vmem:[%s3256_s12 + $0x20] sm:$0xff]   ;;  %v2383_v61 = vld [vmem:[%s3256_s12 + $0x28] sm:$0xff]  }
 0x91a   :  { %v1470_v18 = vpop.xlane.xlu0 %1469 }
 0x91b   :  { %2450 = vrsqrt.f32 %v1494_v30  ;;  %v1495_v23 = vadd.f32 1e-05, %v1487_v50  ;;  %v1488_v55 = vmul.f32 0.03125, %v1470_v18  ;;  %v2384_v30 = vld [vmem:[%s3256_s12 + $0x30] sm:$0xff]   ;;  %v2385_v50 = vld [vmem:[%s3256_s12 + $0x38] sm:$0xff]  }
 0x91c   :  { %v1473_v24 = vpop.xlane.xlu1 %1472  ;;  %v2040_v18 = vld [vmem:[%s3259_s11] ss:$0 sm:$0xff] }
 0x91d   :  { %2452 = vrsqrt.f32 %v1495_v23  ;;  %v1496_v5 = vadd.f32 1e-05, %v1488_v55  ;;  %v1489_v1 = vmul.f32 0.03125, %v1473_v24 }
 0x91e   :  { %v1476_v2 = vpop.xlane.xlu0 %1475 }
 0x91f   :  { %2454 = vrsqrt.f32 %v1496_v5  ;;  %v1497_v6 = vadd.f32 1e-05, %v1489_v1  ;;  %v1490_v9 = vmul.f32 0.03125, %v1476_v2 }
 0x920   :  { %v1479_v7 = vpop.xlane.xlu1 %1478 }
 0x921   :  { %2456 = vrsqrt.f32 %v1497_v6  ;;  %v1498_v10 = vadd.f32 1e-05, %v1490_v9  ;;  %v1491_v31 = vmul.f32 0.03125, %v1479_v7 }
 0x922   :  { %v1482_v8 = vpop.xlane.xlu0 %1481 }
 0x923   :  { %2458 = vrsqrt.f32 %v1498_v10  ;;  %v1499_v16 = vadd.f32 1e-05, %v1491_v31  ;;  %v1492_v12 = vmul.f32 0.03125, %v1482_v8 }
 0x924   :  { %v1485_v17 = vpop.xlane.xlu1 %1484 }
 0x925   :  { %v2451_v14 = vpop.eup %2450  ;;  %2460 = vrsqrt.f32 %v1499_v16  ;;  %v1500_v32 = vadd.f32 1e-05, %v1492_v12  ;;  %v1493_v15 = vmul.f32 0.03125, %v1485_v17 }
 0x926   :  { %v1510_v41 = vmul.f32 %v2451_v14, %v3021_v36 }
 0x927   :  { %v2453_v33 = vpop.eup %2452  ;;  %2462 = vrsqrt.f32 %v1500_v32  ;;  %v1501_v20 = vadd.f32 1e-05, %v1493_v15 }
 0x928   :  { %v1511_v47 = vmul.f32 %v2453_v33, %v3023_v19  ;;  %v1524_v57 = vmul.f32 %v2038_v27, %v1510_v41 }
 0x929   :  { %v2455_v38 = vpop.eup %2454  ;;  %2464 = vrsqrt.f32 %v1501_v20 }
 0x92a   :  { %v1512_v21 = vmul.f32 %v2455_v38, %v3027_v48  ;;  %v1525_v40 = vmul.f32 %v2038_v27, %v1511_v47  ;;  %v3083_v36 = vadd.f32 %v2039_v39, %v1524_v57 }
 0x92b   :  { %v2457_v63 = vpop.eup %2456 }
 0x92c   :  { %v1526_v52 = vmul.f32 %v2038_v27, %v1512_v21  ;;  %v1513_v26 = vmul.f32 %v2457_v63, %v3032_v62  ;;  %v3085_v28 = vadd.f32 %v2039_v39, %v1525_v40  ;;  %v2047_v63 = vld [vmem:[%s3260_s13] ss:$0 sm:$0xff] }
 0x92d   :  { %v2459_v42 = vpop.eup %2458 }
 0x92e   :  { %v1527_v19 = vmul.f32 %v2038_v27, %v1513_v26  ;;  %v1514_v29 = vmul.f32 %v2459_v42, %v3037_v22  ;;  %v1546_v43 = vpack.c.bf16 %v3085_v28, %v3083_v36  ;;  %v3090_v45 = vadd.f32 %v2039_v39, %v1526_v52 }
 0x92f   :  { %v2461_v34 = vpop.eup %2460 }
 0x930   :  { %v3092_v48 = vadd.f32 %v2039_v39, %v1527_v19  ;;  %v1515_v46 = vmul.f32 %v2461_v34, %v3042_v44  ;;  %2314 = vmatprep.mubr.msk.bf16.mxu1 %vm111_vm0, %v1546_v43  ;;  %v1528_v62 = vmul.f32 %v2038_v27, %v1514_v29 }
 0x931   :  { %v2463_v49 = vpop.eup %2462 }
 0x932   :  { %v1516_v4 = vmul.f32 %v2463_v49, %v3047_v58  ;;  %v1547_v53 = vpack.c.bf16 %v3092_v48, %v3090_v45  ;;  %v1529_v22 = vmul.f32 %v2038_v27, %v1515_v46  ;;  %v3104_v44 = vadd.f32 %v2039_v39, %v1528_v62 }
 0x933   :  { %v2465_v3 = vpop.eup %2464 }
 0x934   :  { %v1517_v11 = vmul.f32 %v2465_v3, %v3052_v54  ;;  %2315 = vmatmul.mubr.msk.bf16.vlgmr.msra.gmra.mrb[32].mxu1 %vm111_vm0, %v1547_v53  ;;  %v3106_v25 = vadd.f32 %v2039_v39, %v1529_v22  ;;  %v1530_v51 = vmul.f32 %v2038_v27, %v1516_v4 }
 0x935   :  { %2323 = vmatpush3.bf16.msra.mxu1 %v3070_v35  ;;  %v2381_v35 = vld [vmem:[%s3256_s12 + $0x18] sm:$0xff]  }
 0x936   :  { %v1548_v58 = vpack.c.bf16 %v3106_v25, %v3104_v44  ;;  %v1531_v0 = vmul.f32 %v2038_v27, %v1517_v11  ;;  %2324 = vmatprep.subr.bf16.mxu1 %v2379_v56  ;;  %v3115_v54 = vadd.f32 %v2039_v39, %v1530_v51 }
 0x938   :  { %2318 = vmatprep.mubr.msk.bf16.mxu1 %vm111_vm0, %v1548_v58  ;;  %v3117_v60 = vadd.f32 %v2039_v39, %v1531_v0 }
 0x939   :  { %2325 = vmatpush3.bf16.msra.mxu1 %v2379_v56 }
 0x93a   :  { %v1549_v37 = vpack.c.bf16 %v3117_v60, %v3115_v54  ;;  %2326 = vmatprep.subr.bf16.mxu1 %v2380_v13 }
 0x93c   :  { %2319 = vmatmul.mubr.msk.bf16.gmra.mrb[36].mxu1 %vm111_vm0, %v1549_v37 }
 0x93d   :  { %2327 = vmatpush3.bf16.msra.mxu1 %v2380_v13 }
 0x93e   :  { %2328 = vmatprep.subr.bf16.mxu1 %v2381_v35 }
 0x941   :  { %2329 = vmatpush3.bf16.msra.mxu1 %v2381_v35 }
 0x942   :  { %2330 = vmatprep.subr.bf16.mxu1 %v2382_v59 }
 0x945   :  { %2331 = vmatpush3.bf16.msra.mxu1 %v2382_v59 }
 0x946   :  { %2332 = vmatprep.subr.bf16.mxu1 %v2383_v61 }
 0x949   :  { %2333 = vmatpush3.bf16.msra.mxu1 %v2383_v61 }
 0x94a   :  { %2334 = vmatprep.subr.bf16.mxu1 %v2384_v30 }
 0x94d   :  { %2335 = vmatpush3.bf16.msra.mxu1 %v2384_v30 }
 0x94e   :  { %2336 = vmatprep.subr.bf16.mxu1 %v2385_v50 }
 0x951   :  { %2337 = vmatpush3.bf16.msra.mxu1 %v2385_v50 }
 0xa07   :  { %v2316_v23 = vpop.f32.mrb[32].mxu1 }
 0xa08   :  { %v1628_v55 = vadd.f32 %v2316_v23, %v2040_v18  ;;  %v1619_v24 = vpop.f32.mrb[33].mxu1 }
 0xa09   :  { %v1620_v5 = vadd.f32 %v2040_v18, %v1619_v24  ;;  %v2317_v1 = vpop.f32.mrb[34].mxu1 }
 0xa0a   :  { %v1631_v2 = vadd.f32 %v2317_v1, %v2040_v18  ;;  %v1622_v6 = vpop.f32.mrb[35].mxu1  ;;  %v1652_v7 = vmax.f32 %v1628_v55, 0.0 }
 0xa0b   :  { %v1623_v9 = vadd.f32 %v2040_v18, %v1622_v6  ;;  %v1650_v31 = vmax.f32 %v1620_v5, 0.0 }
 0xa0c   :  { %v1653_v10 = vmax.f32 %v1631_v2, 0.0 }
 0xa0d   :  { %v1651_v8 = vmax.f32 %v1623_v9, 0.0 }
 0xa0e   :  { %v1659_v16 = vpack.c.bf16 %v1653_v10, %v1652_v7 }
 0xa0f   :  { %v1658_v12 = vpack.c.bf16 %v1651_v8, %v1650_v31  ;;  %v2320_v17 = vpop.f32.mrb[36].mxu1 }
 0xa10   :  { %v1644_v14 = vadd.f32 %v2320_v17, %v2040_v18  ;;  %v1635_v27 = vpop.f32.mrb[37].mxu1 }
 0xa11   :  { %v1636_v32 = vadd.f32 %v2040_v18, %v1635_v27  ;;  %v2321_v15 = vpop.f32.mrb[38].mxu1  ;;  %2338 = vmatprep.mubr.bf16.mxu1 %v1658_v12 }
 0xa12   :  { %v1647_v41 = vadd.f32 %v2321_v15, %v2040_v18  ;;  %v1638_v33 = vpop.f32.mrb[39].mxu1  ;;  %2339 = vmatmul.mubr.bf16.vlgmr.msra.gmra.mrb[40].mxu1 %v1659_v16  ;;  %v1656_v47 = vmax.f32 %v1644_v14, 0.0 }
 0xa13   :  { %v1639_v20 = vadd.f32 %v2040_v18, %v1638_v33  ;;  %v1654_v38 = vmax.f32 %v1636_v32, 0.0 }
 0xa14   :  { %v1657_v57 = vmax.f32 %v1647_v41, 0.0 }
 0xa15   :  { %v1655_v39 = vmax.f32 %v1639_v20, 0.0 }
 0xa16   :  { %v1661_v21 = vpack.c.bf16 %v1657_v57, %v1656_v47 }
 0xa17   :  { %v1660_v40 = vpack.c.bf16 %v1655_v39, %v1654_v38 }
 0xa19   :  { %2342 = vmatprep.mubr.bf16.mxu1 %v1660_v40 }
 0xa1a   :  { %2343 = vmatmul.mubr.bf16.gmra.mrb[44].mxu1 %v1661_v21 }
 0xae5   :  { %v2340_v52 = vpop.f32.mrb[40].mxu1 }
 0xae6   :  { %v1776_v26 = vadd.f32 %v2340_v52, %v2047_v63  ;;  %v1767_v42 = vpop.f32.mrb[41].mxu1 }
 0xae7   :  { %v1768_v19 = vadd.f32 %v2047_v63, %v1767_v42  ;;  %v2341_v29 = vpop.f32.mrb[42].mxu1 }
 0xae8   :  { %v1779_v43 = vadd.f32 %v2341_v29, %v2047_v63  ;;  %v1770_v34 = vpop.f32.mrb[43].mxu1  ;;  %v1800_v46 = vadd.f32 %v1776_v26, %v3090_v45 }
 0xae9   :  { %v1771_v62 = vadd.f32 %v2047_v63, %v1770_v34  ;;  %v1798_v53 = vadd.f32 %v1768_v19, %v3083_v36 }
 0xaea   :  { %v1814_v49 = vsel %vm111_vm0, %v1800_v46, 0.0  ;;  %v1801_v4 = vadd.f32 %v1779_v43, %v3092_v48 }
 0xaeb   :  { %1815 = vadd.xlane.f32.xlu0 %v1814_v49  ;;  %v1799_v56 = vadd.f32 %v1771_v62, %v3085_v28  ;;  %v1808_v51 = vsel %vm111_vm0, %v1798_v53, 0.0 }
 0xaec   :  { %v1817_v22 = vsel %vm111_vm0, %v1801_v4, 0.0 }
 0xaed   :  { %1818 = vadd.xlane.f32.xlu1 %v1817_v22  ;;  %v2344_v3 = vpop.f32.mrb[44].mxu1  ;;  %v1811_v37 = vsel %vm111_vm0, %v1799_v56, 0.0 }
 0xaee   :  { %v1783_v11 = vpop.f32.mrb[45].mxu1  ;;  %v1792_v58 = vadd.f32 %v2344_v3, %v2047_v63 }
 0xaef   :  { %v1784_v0 = vadd.f32 %v2047_v63, %v1783_v11  ;;  %1809 = vadd.xlane.f32.xlu0 %v1808_v51  ;;  %v2345_v45 = vpop.f32.mrb[46].mxu1 }
 0xaf0   :  { %v1786_v13 = vpop.f32.mrb[47].mxu1  ;;  %v1795_v48 = vadd.f32 %v2345_v45, %v2047_v63  ;;  %v1804_v61 = vadd.f32 %v1792_v58, %v3115_v54 }
 0xaf1   :  { %v1787_v35 = vadd.f32 %v2047_v63, %v1786_v13  ;;  %1812 = vadd.xlane.f32.xlu1 %v1811_v37  ;;  %v1802_v36 = vadd.f32 %v1784_v0, %v3104_v44 }
 0xaf2   :  { %v1805_v50 = vadd.f32 %v1795_v48, %v3117_v60  ;;  %v1826_v18 = vsel %vm111_vm0, %v1804_v61, 0.0 }
 0xaf3   :  { %v1820_v59 = vsel %vm111_vm0, %v1802_v36, 0.0  ;;  %v1803_v28 = vadd.f32 %v1787_v35, %v3106_v25 }
 0xaf4   :  { %1821 = vadd.xlane.f32.xlu0 %v1820_v59  ;;  %v1829_v23 = vsel %vm111_vm0, %v1805_v50, 0.0 }
 0xaf5   :  { %v1823_v30 = vsel %vm111_vm0, %v1803_v28, 0.0 }
 0xaf6   :  { %1824 = vadd.xlane.f32.xlu1 %v1823_v30 }
 0xaf8   :  { %1827 = vadd.xlane.f32.xlu0 %v1826_v18 }
 0xafa   :  { %1830 = vadd.xlane.f32.xlu1 %v1829_v23 }
 0xb78   :  { %v1816_v55 = vpop.xlane.xlu0 %1815 }
 0xb79   :  { %v1834_v44 = vmul.f32 0.03125, %v1816_v55 }
 0xb7a   :  { %v1819_v24 = vpop.xlane.xlu1 %1818 }
 0xb7b   :  { %v3159_v5 = vsub.f32 %v1800_v46, %v1834_v44  ;;  %v1835_v25 = vmul.f32 0.03125, %v1819_v24 }
 0xb7c   :  { %v1810_v1 = vpop.xlane.xlu0 %1809 }
 0xb7d   :  { %v3161_v54 = vsub.f32 %v1801_v4, %v1835_v25  ;;  %v1832_v2 = vmul.f32 0.03125, %v1810_v1  ;;  %v1850_v60 = vmul.f32 %v3159_v5, %v3159_v5  ;;  %v2057_v25 = vld [vmem:[%s3262_s17] ss:$0 sm:$0xff] }
 0xb7e   :  { %v1813_v6 = vpop.xlane.xlu1 %1812 }
 0xb7f   :  { %v3165_v9 = vsub.f32 %v1798_v53, %v1832_v2  ;;  %v1833_v7 = vmul.f32 0.03125, %v1813_v6  ;;  %v1862_v10 = vsel %vm111_vm0, %v1850_v60, 0.0  ;;  %v1851_v31 = vmul.f32 %v3161_v54, %v3161_v54 }
 0xb80   :  { %1863 = vadd.xlane.f32.xlu0 %v1862_v10 }
 0xb81   :  { %v3170_v8 = vsub.f32 %v1799_v56, %v1833_v7  ;;  %v1822_v16 = vpop.xlane.xlu0 %1821  ;;  %v1865_v12 = vsel %vm111_vm0, %v1851_v31, 0.0  ;;  %v1848_v17 = vmul.f32 %v3165_v9, %v3165_v9 }
 0xb82   :  { %v1836_v14 = vmul.f32 0.03125, %v1822_v16  ;;  %1866 = vadd.xlane.f32.xlu1 %v1865_v12 }
 0xb83   :  { %v1825_v27 = vpop.xlane.xlu1 %1824  ;;  %v1856_v32 = vsel %vm111_vm0, %v1848_v17, 0.0  ;;  %v1849_v15 = vmul.f32 %v3170_v8, %v3170_v8 }
 0xb84   :  { %v3178_v41 = vsub.f32 %v1802_v36, %v1836_v14  ;;  %v1837_v33 = vmul.f32 0.03125, %v1825_v27  ;;  %1857 = vadd.xlane.f32.xlu0 %v1856_v32 }
 0xb85   :  { %v1828_v20 = vpop.xlane.xlu0 %1827  ;;  %v1859_v47 = vsel %vm111_vm0, %v1849_v15, 0.0 }
 0xb86   :  { %v3181_v57 = vsub.f32 %v1803_v28, %v1837_v33  ;;  %v1838_v38 = vmul.f32 0.03125, %v1828_v20  ;;  %1860 = vadd.xlane.f32.xlu1 %v1859_v47  ;;  %v1852_v39 = vmul.f32 %v3178_v41, %v3178_v41 }
 0xb87   :  { %v1831_v21 = vpop.xlane.xlu1 %1830 }
 0xb88   :  { %v3185_v40 = vsub.f32 %v1804_v61, %v1838_v38  ;;  %v1839_v63 = vmul.f32 0.03125, %v1831_v21  ;;  %v1868_v52 = vsel %vm111_vm0, %v1852_v39, 0.0  ;;  %v1853_v26 = vmul.f32 %v3181_v57, %v3181_v57 }
 0xb89   :  { %1869 = vadd.xlane.f32.xlu0 %v1868_v52 }
 0xb8a   :  { %v3190_v42 = vsub.f32 %v1805_v50, %v1839_v63  ;;  %v1871_v19 = vsel %vm111_vm0, %v1853_v26, 0.0  ;;  %v1854_v29 = vmul.f32 %v3185_v40, %v3185_v40  ;;  %v2056_v50 = vld [vmem:[%s3261_s16] ss:$0 sm:$0xff] }
 0xb8b   :  { %1872 = vadd.xlane.f32.xlu1 %v1871_v19 }
 0xb8c   :  { %v1874_v43 = vsel %vm111_vm0, %v1854_v29, 0.0  ;;  %v1855_v34 = vmul.f32 %v3190_v42, %v3190_v42 }
 0xb8d   :  { %1875 = vadd.xlane.f32.xlu0 %v1874_v43 }
 0xb8e   :  { %v1877_v46 = vsel %vm111_vm0, %v1855_v34, 0.0 }
 0xb8f   :  { %1878 = vadd.xlane.f32.xlu1 %v1877_v46 }
 0xc0d   :  { %v1864_v62 = vpop.xlane.xlu0 %1863 }
 0xc0e   :  { %v1882_v49 = vmul.f32 0.03125, %v1864_v62 }
 0xc0f   :  { %v1867_v4 = vpop.xlane.xlu1 %1866 }
 0xc10   :  { %v1890_v53 = vadd.f32 1e-05, %v1882_v49  ;;  %v1883_v22 = vmul.f32 0.03125, %v1867_v4 }
 0xc11   :  { %v1858_v56 = vpop.xlane.xlu0 %1857 }
 0xc12   :  { %2466 = vrsqrt.f32 %v1890_v53  ;;  %v1891_v3 = vadd.f32 1e-05, %v1883_v22  ;;  %v1880_v11 = vmul.f32 0.03125, %v1858_v56 }
 0xc13   :  { %v1861_v51 = vpop.xlane.xlu1 %1860 }
 0xc14   :  { %2468 = vrsqrt.f32 %v1891_v3  ;;  %v1888_v58 = vadd.f32 1e-05, %v1880_v11  ;;  %v1881_v0 = vmul.f32 0.03125, %v1861_v51 }
 0xc16   :  { %2470 = vrsqrt.f32 %v1888_v58  ;;  %v1889_v45 = vadd.f32 1e-05, %v1881_v0  ;;  %v1870_v13 = vpop.xlane.xlu0 %1869 }
 0xc17   :  { %v1884_v37 = vmul.f32 0.03125, %v1870_v13 }
 0xc18   :  { %2472 = vrsqrt.f32 %v1889_v45  ;;  %v1873_v48 = vpop.xlane.xlu1 %1872 }
 0xc19   :  { %v1892_v35 = vadd.f32 1e-05, %v1884_v37  ;;  %v1885_v36 = vmul.f32 0.03125, %v1873_v48 }
 0xc1a   :  { %v1876_v59 = vpop.xlane.xlu0 %1875 }
 0xc1b   :  { %2474 = vrsqrt.f32 %v1892_v35  ;;  %v1893_v28 = vadd.f32 1e-05, %v1885_v36  ;;  %v1886_v61 = vmul.f32 0.03125, %v1876_v59 }
 0xc1c   :  { %v2467_v30 = vpop.eup %2466  ;;  %v1879_v18 = vpop.xlane.xlu1 %1878 }
 0xc1d   :  { %v1906_v23 = vmul.f32 %v2467_v30, %v3159_v5  ;;  %2476 = vrsqrt.f32 %v1893_v28  ;;  %v1894_v55 = vadd.f32 1e-05, %v1886_v61  ;;  %v1887_v44 = vmul.f32 0.03125, %v1879_v18 }
 0xc1e   :  { %v2469_v24 = vpop.eup %2468 }
 0xc1f   :  { %v1920_v1 = vmul.f32 %v2056_v50, %v1906_v23  ;;  %v1907_v2 = vmul.f32 %v2469_v24, %v3161_v54  ;;  %2478 = vrsqrt.f32 %v1894_v55  ;;  %v1895_v60 = vadd.f32 1e-05, %v1887_v44 }
 0xc20   :  { %v2471_v6 = vpop.eup %2470 }
 0xc21   :  { %v1934_v7 = vadd.f32 %v2057_v25, %v1920_v1  ;;  %v1921_v10 = vmul.f32 %v2056_v50, %v1907_v2  ;;  %v1904_v31 = vmul.f32 %v2471_v6, %v3165_v9  ;;  %2480 = vrsqrt.f32 %v1895_v60 }
 0xc22   :  { %v2473_v5 = vpop.eup %2472 }
 0xc23   :  { %1942 = vst.msk [vmem:[%s3263_s18 + $0x10] sm:$0xff] %vm111_vm0, %v1934_v7  ;;  %v1935_v16 = vadd.f32 %v2057_v25, %v1921_v10  ;;  %v1918_v12 = vmul.f32 %v2056_v50, %v1904_v31  ;;  %v1905_v17 = vmul.f32 %v2473_v5, %v3170_v8 }
 0xc25   :  { %v2475_v14 = vpop.eup %2474  ;;  %1943 = vst.msk [vmem:[%s3263_s18 + $0x18] sm:$0xff] %vm111_vm0, %v1935_v16  ;;  %v1932_v54 = vadd.f32 %v2057_v25, %v1918_v12  ;;  %v1919_v27 = vmul.f32 %v2056_v50, %v1905_v17 }
 0xc26   :  { %v1908_v9 = vmul.f32 %v2475_v14, %v3178_v41 }
 0xc27   :  { %v2477_v32 = vpop.eup %2476  ;;  %1940 = vst.msk [vmem:[%s3263_s18] sm:$0xff] %vm111_vm0, %v1932_v54  ;;  %v1933_v15 = vadd.f32 %v2057_v25, %v1919_v27 }
 0xc28   :  { %v1922_v33 = vmul.f32 %v2056_v50, %v1908_v9  ;;  %v1909_v8 = vmul.f32 %v2477_v32, %v3181_v57 }
 0xc29   :  { %v2479_v20 = vpop.eup %2478  ;;  %1941 = vst.msk [vmem:[%s3263_s18 + $0x8] sm:$0xff] %vm111_vm0, %v1933_v15 }
 0xc2a   :  { %v1936_v47 = vadd.f32 %v2057_v25, %v1922_v33  ;;  %v1923_v38 = vmul.f32 %v2056_v50, %v1909_v8  ;;  %v1910_v41 = vmul.f32 %v2479_v20, %v3185_v40 }
 0xc2b   :  { %v2481_v39 = vpop.eup %2480 }
 0xc2c   :  { %1944 = vst.msk [vmem:[%s3263_s18 + $0x20] sm:$0xff] %vm111_vm0, %v1936_v47  ;;  %v1937_v21 = vadd.f32 %v2057_v25, %v1923_v38  ;;  %v1924_v63 = vmul.f32 %v2056_v50, %v1910_v41  ;;  %v1911_v57 = vmul.f32 %v2481_v39, %v3190_v42 }
 0xc2e   :  { %1945 = vst.msk [vmem:[%s3263_s18 + $0x28] sm:$0xff] %vm111_vm0, %v1937_v21  ;;  %v1938_v52 = vadd.f32 %v2057_v25, %v1924_v63  ;;  %v1925_v26 = vmul.f32 %v2056_v50, %v1911_v57 }
 0xc30   :  { %1946 = vst.msk [vmem:[%s3263_s18 + $0x30] sm:$0xff] %vm111_vm0, %v1938_v52  ;;  %v1939_v40 = vadd.f32 %v2057_v25, %v1925_v26 }
 0xc32   :  { %1947 = vst.msk [vmem:[%s3263_s18 + $0x38] sm:$0xff] %vm111_vm0, %v1939_v40 }

</bundles_post_ra>
